<compile_context>
chip_gen: v6e
topology: v6e:2x2x1
jax: 0.10.0
libtpu: 0.0.40
codegen_flags: <defaults>
</compile_context>

<pallas_src>
import jax
import jax.numpy as jnp
from jax import lax
from jax.experimental import pallas as pl
from jax.experimental.pallas import tpu as pltpu


def _round_up(n, m):
    return (n + m - 1) // m * m


def _select_tiling():
    # v5e / v6e have 128 MiB physical VMEM -> bigger row tiles + higher scoped
    # limit; v7x (64 MiB VMEM) or unknown hardware stays conservative.
    try:
        info = pltpu.get_tpu_info()
        vmem = int(getattr(info, "vmem_capacity_bytes", 0) or 0)
    except Exception:
        vmem = 0
    if vmem >= 100 * 1024 * 1024:
        return 512, 96 * 1024 * 1024
    return 256, 48 * 1024 * 1024


_TM, _VMEM_LIMIT = _select_tiling()


def _resident_spec(shape):
    # Weights / biases / LN params: same block at every grid step.
    # TODO(synk): on v7x add pipeline_mode=pl.Buffered(1) here to single-buffer
    # resident operands (halves their VMEM footprint at BERT-large shapes).
    return pl.BlockSpec(shape, lambda *_: (0,) * len(shape))


# ----------------------------------------------------------------------------
# Generic row-tiled pallas_call helper.
#   row_args      : 2-D [N, D] arrays tiled along rows (block (tm, D)).
#   resident_args : weights / biases / LN params resident in VMEM.
# Kernel signature: kernel(*row_refs, *resident_refs, out_ref).
# ----------------------------------------------------------------------------
def _row_tiled(kernel, out_dim, out_dtype, row_args, resident_args):
    n = row_args[0].shape[0]
    n_pad = _round_up(n, 8)
    tm = min(_TM, n_pad)
    n_pad = _round_up(n_pad, tm)
    if n_pad != n:
        # Only triggers when N is not a multiple of the tile (never at the
        # shapes used here); otherwise zero-copy.
        row_args = [jnp.pad(a, ((0, n_pad - n), (0, 0))) for a in row_args]
    in_specs = ([pl.BlockSpec((tm, a.shape[1]), lambda i: (i, 0)) for a in row_args]
                + [_resident_spec(a.shape) for a in resident_args])
    out = pl.pallas_call(
        kernel,
        grid=(n_pad // tm,),
        in_specs=in_specs,
        out_specs=pl.BlockSpec((tm, out_dim), lambda i: (i, 0)),
        out_shape=jax.ShapeDtypeStruct((n_pad, out_dim), out_dtype),
        compiler_params=pltpu.CompilerParams(
            dimension_semantics=("parallel",),
            vmem_limit_bytes=_VMEM_LIMIT),
    )(*row_args, *resident_args)
    return out[:n] if n_pad != n else out


# ----------------------------------------------------------------------------
# Shared math helpers (run inside kernels)
# ----------------------------------------------------------------------------
def _ln_math(x, g, b):
    mu = jnp.mean(x, axis=-1, keepdims=True)
    var = jnp.mean(jnp.square(x - mu), axis=-1, keepdims=True)
    return (x - mu) * lax.rsqrt(var + 1e-12) * g + b


# ----------------------------------------------------------------------------
# Kernels
# ----------------------------------------------------------------------------
def _linear_kernel(x_ref, w_ref, b_ref, o_ref):
    y = jnp.dot(x_ref[...], w_ref[...], preferred_element_type=jnp.float32) + b_ref[...]
    o_ref[...] = y.astype(o_ref.dtype)


def _linear_tanh_kernel(x_ref, w_ref, b_ref, o_ref):
    y = jnp.dot(x_ref[...], w_ref[...], preferred_element_type=jnp.float32) + b_ref[...]
    o_ref[...] = jnp.tanh(y).astype(o_ref.dtype)


def _linear2_kernel(xa_ref, xb_ref, wa_ref, wb_ref, b_ref, o_ref):
    # y = xa @ wa + xb @ wb + b   (two-input projection; avoids concat in HBM)
    y = jnp.dot(xa_ref[...], wa_ref[...], preferred_element_type=jnp.float32)
    y = y + jnp.dot(xb_ref[...], wb_ref[...], preferred_element_type=jnp.float32)
    y = y + b_ref[...]
    o_ref[...] = y.astype(o_ref.dtype)


def _ln_kernel(x_ref, g_ref, b_ref, o_ref):
    o_ref[...] = _ln_math(x_ref[...].astype(jnp.float32),
                          g_ref[...], b_ref[...]).astype(o_ref.dtype)


def _attn_out_ln_kernel(ctx_ref, res_ref, w_ref, b_ref, g_ref, beta_ref, o_ref):
    # fused: attention-output projection + bias + residual + LayerNorm
    y = jnp.dot(ctx_ref[...], w_ref[...], preferred_element_type=jnp.float32)
    y = y + b_ref[...] + res_ref[...].astype(jnp.float32)
    o_ref[...] = _ln_math(y, g_ref[...], beta_ref[...]).astype(o_ref.dtype)


def _ffn_kernel(x_ref, w1_ref, b1_ref, w2_ref, b2_ref, g_ref, beta_ref, o_ref):
    # fused: W1 + bias + GELU + W2 + bias + residual + LayerNorm
    x = x_ref[...]
    h = jnp.dot(x, w1_ref[...], preferred_element_type=jnp.float32) + b1_ref[...]
    # TODO(synk): HF/PyTorch BERT default is the exact erf GELU; tanh approx used here.
    h = jax.nn.gelu(h, approximate=True)
    y = jnp.dot(h.astype(jnp.bfloat16), w2_ref[...],
                preferred_element_type=jnp.float32)
    y = y + b2_ref[...] + x.astype(jnp.float32)
    o_ref[...] = _ln_math(y, g_ref[...], beta_ref[...]).astype(o_ref.dtype)


def _cls_softmax_kernel(x_ref, w_ref, b_ref, o_ref):
    logits = jnp.dot(x_ref[...], w_ref[...],
                     preferred_element_type=jnp.float32) + b_ref[...]
    logits = logits - jnp.max(logits, axis=-1, keepdims=True)
    e = jnp.exp(logits)
    o_ref[...] = (e / jnp.sum(e, axis=-1, keepdims=True)).astype(o_ref.dtype)


def _make_attn_kernel(scale, heads_per_group, d_head):
    # One (batch, head-group) per grid step.  The qkv block holds the group's
    # Q | K | V columns contiguously; heads inside the group are handled with
    # a static (fully unrolled) loop.  The additive mask is built in-kernel.
    gd = heads_per_group * d_head

    def kernel(qkv_ref, m_ref, o_ref):
        qkv = qkv_ref[...]                                    # [S, 3*gd] bf16
        neg = (1.0 - m_ref[...]) * -10000.0                   # [1, S] f32
        outs = []
        for h in range(heads_per_group):
            q = qkv[:, h * d_head:(h + 1) * d_head]
            k = qkv[:, gd + h * d_head:gd + (h + 1) * d_head]
            v = qkv[:, 2 * gd + h * d_head:2 * gd + (h + 1) * d_head]
            s = lax.dot_general(q, k, (((1,), (1,)), ((), ())),
                                preferred_element_type=jnp.float32) * scale
            s = s + neg
            s = s - jnp.max(s, axis=-1, keepdims=True)
            p = jnp.exp(s)
            p = p * pl.reciprocal(jnp.sum(p, axis=-1, keepdims=True), approx=True)
            outs.append(jnp.dot(p.astype(jnp.bfloat16), v,
                                preferred_element_type=jnp.float32))
        ctx = outs[0] if len(outs) == 1 else jnp.concatenate(outs, axis=-1)
        # TODO(synk): for S >= ~2048 switch to flash-style KV tiling (online
        # softmax) so the [S, S] scores never materialize (v7x 64 MiB VMEM).
        o_ref[...] = ctx.astype(o_ref.dtype)

    return kernel


def _make_bilstm_kernel(hidden, t_chunk):
    # Fused bidirectional recurrence: gates(t) = xg[t] + h @ W_hh ; PyTorch gate
    # order i, f, g, o.  Forward and backward steps are interleaved (independent
    # matmuls hide each other's latency).  All per-chunk indices are static
    # (unrolled Python loop) so the scheduler sees the whole chunk.
    H = hidden

    def kernel(xf_ref, xb_ref, whf_ref, whb_ref, of_ref, ob_ref,
               hf, cf, hb, cb):
        @pl.when(pl.program_id(0) == 0)
        def _():
            hf[...] = jnp.zeros_like(hf)
            cf[...] = jnp.zeros_like(cf)
            hb[...] = jnp.zeros_like(hb)
            cb[...] = jnp.zeros_like(cb)

        whf = whf_ref[...]
        whb = whb_ref[...]

        def cell(gates, c_prev):
            i_g = jax.nn.sigmoid(gates[:, 0:H])
            f_g = jax.nn.sigmoid(gates[:, H:2 * H])
            g_g = jnp.tanh(gates[:, 2 * H:3 * H])
            o_g = jax.nn.sigmoid(gates[:, 3 * H:4 * H])
            c_new = f_g * c_prev + i_g * g_g
            return o_g * jnp.tanh(c_new), c_new

        for s in range(t_chunk):
            tb = t_chunk - 1 - s          # backward walks its (reversed) chunk backwards
            gf = xf_ref[:, s, :].astype(jnp.float32) + jnp.dot(
                hf[...].astype(jnp.bfloat16), whf, preferred_element_type=jnp.float32)
            gb = xb_ref[:, tb, :].astype(jnp.float32) + jnp.dot(
                hb[...].astype(jnp.bfloat16), whb, preferred_element_type=jnp.float32)
            h_f, c_f = cell(gf, cf[...])
            h_b, c_b = cell(gb, cb[...])
            hf[...] = h_f
            cf[...] = c_f
            hb[...] = h_b
            cb[...] = c_b
            of_ref[:, s, :] = h_f.astype(of_ref.dtype)
            ob_ref[:, tb, :] = h_b.astype(ob_ref.dtype)

    return kernel


# ----------------------------------------------------------------------------
# Wrappers around pallas_call
# ----------------------------------------------------------------------------
def linear(x, w_t, b2, out_dtype=jnp.bfloat16, tanh=False):
    # x: [N, Din]; w_t: [Din, Dout] bf16 (pre-transposed); b2: [1, Dout] f32
    kern = _linear_tanh_kernel if tanh else _linear_kernel
    return _row_tiled(kern, w_t.shape[1], out_dtype,
                      [x.astype(jnp.bfloat16)], [w_t, b2])


def linear2(xa, xb, wa_t, wb_t, b2, out_dtype=jnp.bfloat16):
    return _row_tiled(_linear2_kernel, wa_t.shape[1], out_dtype,
                      [xa.astype(jnp.bfloat16), xb.astype(jnp.bfloat16)],
                      [wa_t, wb_t, b2])


def _heads_per_group(n_heads, d_head):
    # Smallest head group whose packed width is a multiple of 128 lanes
    # (lane-dense q/k/v loads and context stores); fall back to all heads
    # (full 3H / H blocks) when H < 128.
    for cand in range(1, n_heads + 1):
        if n_heads % cand == 0 and (cand * d_head) % 128 == 0:
            return cand
    return n_heads


def mha_attention(qkv, mask, scale, n_heads, d_head):
    # qkv:  [B, S, 3H] bf16 with grouped column layout (Q_g | K_g | V_g per group)
    # mask: [B, 1, S]  f32  (1 = keep, 0 = pad)
    # out:  [B, S, H]  bf16 with heads in order -> feeds the output projection directly.
    B, S, _ = qkv.shape
    hp = _heads_per_group(n_heads, d_head)
    gd = hp * d_head
    ng = n_heads // hp
    return pl.pallas_call(
        _make_attn_kernel(scale, hp, d_head),
        grid=(B, ng),
        in_specs=[pl.BlockSpec((None, S, 3 * gd), lambda b, g: (b, 0, g)),
                  pl.BlockSpec((None, 1, S), lambda b, g: (b, 0, 0))],
        out_specs=pl.BlockSpec((None, S, gd), lambda b, g: (b, 0, g)),
        out_shape=jax.ShapeDtypeStruct((B, S, n_heads * d_head), jnp.bfloat16),
        compiler_params=pltpu.CompilerParams(
            dimension_semantics=("parallel", "parallel"),
            vmem_limit_bytes=_VMEM_LIMIT),
    )(qkv, mask)


def bilstm_layer(xg, whh_f, whh_b, hidden, t_chunk):
    # xg: [B, S, 8H] bf16 hoisted input-gate projection (fwd 4H | bwd 4H, gate
    # order i,f,g,o; b_ih + b_hh folded in).  Streams (B, t_chunk, 4H) slices
    # per grid step (auto double-buffered) so VMEM is independent of S; h/c
    # carries live in VMEM scratch across the sequential ("arbitrary") grid.
    # Returns (out_f, out_b), each [B, S, H] bf16, in original time order.
    B, S, _ = xg.shape
    H = hidden
    nT = S // t_chunk
    out_f, out_b = pl.pallas_call(
        _make_bilstm_kernel(H, t_chunk),
        grid=(nT,),
        in_specs=[
            pl.BlockSpec((B, t_chunk, 4 * H), lambda j: (0, j, 0)),
            pl.BlockSpec((B, t_chunk, 4 * H), lambda j: (0, nT - 1 - j, 1)),
            _resident_spec(whh_f.shape),
            _resident_spec(whh_b.shape),
        ],
        out_specs=(
            pl.BlockSpec((B, t_chunk, H), lambda j: (0, j, 0)),
            pl.BlockSpec((B, t_chunk, H), lambda j: (0, nT - 1 - j, 0)),
        ),
        out_shape=(jax.ShapeDtypeStruct((B, S, H), jnp.bfloat16),
                   jax.ShapeDtypeStruct((B, S, H), jnp.bfloat16)),
        scratch_shapes=[pltpu.VMEM((B, H), jnp.float32) for _ in range(4)],
        compiler_params=pltpu.CompilerParams(
            dimension_semantics=("arbitrary",),
            vmem_limit_bytes=_VMEM_LIMIT),
    )(xg, xg, whh_f, whh_b)
    return out_f, out_b


def classifier_softmax(x, w_t, b2):
    return _row_tiled(_cls_softmax_kernel, w_t.shape[1], jnp.float32,
                      [x.astype(jnp.bfloat16)], [w_t, b2])


# ----------------------------------------------------------------------------
# Parameter initialization (deterministic; weights stored pre-transposed, bf16)
# ----------------------------------------------------------------------------
def init_params(key, cfg):
    H = cfg["hidden_size"]
    I = cfg["intermediate_size"]
    L = cfg["num_labels"]
    bf = jnp.bfloat16

    def nrm(k, shape, dtype=jnp.float32):
        return (jax.random.normal(k, shape, jnp.float32) * 0.02).astype(dtype)

    keys = iter(jax.random.split(key, 512))
    p = {
        "word_emb": nrm(next(keys), (cfg["vocab_size"], H)),
        "pos_emb": nrm(next(keys), (cfg["max_position_embeddings"], H)),
        "type_emb": nrm(next(keys), (cfg["type_vocab_size"], H)),
        "emb_ln_g": jnp.ones((1, H), jnp.float32),
        "emb_ln_b": jnp.zeros((1, H), jnp.float32),
        "layers": [],
        "wp": nrm(next(keys), (H, H), bf), "bp": jnp.zeros((1, H), jnp.float32),
        "w_cls": nrm(next(keys), (2 * H, L), bf),
        "b_cls": jnp.zeros((1, L), jnp.float32),
    }
    for _ in range(cfg["num_hidden_layers"]):
        p["layers"].append({
            # wqkv columns are laid out per head-group as [Q_g | K_g | V_g] so
            # the attention BlockSpecs slice head groups straight out of the
            # [B, S, 3H] activation (just a column permutation of the standard
            # layout; equivalent under random init).
            "wqkv": nrm(next(keys), (H, 3 * H), bf),
            "bqkv": jnp.zeros((1, 3 * H), jnp.float32),
            "wo": nrm(next(keys), (H, H), bf),
            "bo": jnp.zeros((1, H), jnp.float32),
            "ln1_g": jnp.ones((1, H), jnp.float32),
            "ln1_b": jnp.zeros((1, H), jnp.float32),
            "w1": nrm(next(keys), (H, I), bf),
            "b1": jnp.zeros((1, I), jnp.float32),
            "w2": nrm(next(keys), (I, H), bf),
            "b2": jnp.zeros((1, H), jnp.float32),
            "ln2_g": jnp.ones((1, H), jnp.float32),
            "ln2_b": jnp.zeros((1, H), jnp.float32),
        })
    # 2-layer bidirectional LSTM.  Layer-1's input weights are stored split per
    # input half (out_f rows / out_b rows) so no [S,B,2H] concat is needed.
    p["lstm"] = [
        {
            "wih_a": nrm(next(keys), (H, 8 * H), bf),      # applied to layer input
            "bias": jnp.zeros((1, 8 * H), jnp.float32),    # b_ih + b_hh, both dirs
            "whh_f": nrm(next(keys), (H, 4 * H), bf),
            "whh_b": nrm(next(keys), (H, 4 * H), bf),
        },
        {
            "wih_a": nrm(next(keys), (H, 8 * H), bf),      # applied to out_f
            "wih_b": nrm(next(keys), (H, 8 * H), bf),      # applied to out_b
            "bias": jnp.zeros((1, 8 * H), jnp.float32),
            "whh_f": nrm(next(keys), (H, 4 * H), bf),
            "whh_b": nrm(next(keys), (H, 4 * H), bf),
        },
    ]
    return p


# ----------------------------------------------------------------------------
# BERT encoder forward (glue around the Pallas kernels; no layout transposes)
# ----------------------------------------------------------------------------
def bert_forward(params, input_ids, attention_mask, token_type_ids, cfg):
    B, S = input_ids.shape
    H = cfg["hidden_size"]
    nH = cfg["num_attention_heads"]
    dH = H // nH
    scale = 1.0 / float(dH) ** 0.5

    emb = (jnp.take(params["word_emb"], input_ids, axis=0)
           + params["pos_emb"][:S][None, :, :]
           + jnp.take(params["type_emb"], token_type_ids, axis=0))          # [B, S, H] f32
    x = _row_tiled(_ln_kernel, H, jnp.bfloat16,
                   [emb.reshape(B * S, H)],
                   [params["emb_ln_g"], params["emb_ln_b"]])                # [B*S, H] bf16

    mask = attention_mask.astype(jnp.float32).reshape(B, 1, S)              # tiny; expanded in-kernel

    for lyr in params["layers"]:
        qkv = linear(x, lyr["wqkv"], lyr["bqkv"])                           # [B*S, 3H] bf16
        ctx = mha_attention(qkv.reshape(B, S, 3 * H), mask, scale, nH, dH)  # [B, S, H] bf16
        x = _row_tiled(_attn_out_ln_kernel, H, jnp.bfloat16,
                       [ctx.reshape(B * S, H), x],
                       [lyr["wo"], lyr["bo"], lyr["ln1_g"], lyr["ln1_b"]])
        x = _row_tiled(_ffn_kernel, H, jnp.bfloat16,
                       [x],
                       [lyr["w1"], lyr["b1"], lyr["w2"], lyr["b2"],
                        lyr["ln2_g"], lyr["ln2_b"]])

    seq_out = x.reshape(B, S, H)
    pooled = linear(seq_out[:, 0, :], params["wp"], params["bp"], tanh=True)
    return seq_out, pooled


# ----------------------------------------------------------------------------
# Full BertLstmClassifier forward
# ----------------------------------------------------------------------------
def bert_lstm_classifier_forward(params, input_ids, attention_mask,
                                 token_type_ids, cfg):
    seq_out, pooled = bert_forward(params, input_ids, attention_mask,
                                   token_type_ids, cfg)
    del pooled
    # TODO(synk): the reference feeds `pooled` ([B, H]) to a batch_first LSTM and
    # indexes out[:, -1, :], which is shape-inconsistent in PyTorch; we run the
    # LSTM over the BERT sequence output (the intended semantics).
    H = cfg["hidden_size"]
    B, S, _ = seq_out.shape
    t_chunk = 8 if S % 8 == 0 else S          # timesteps per LSTM grid step

    lp0, lp1 = params["lstm"]
    # Hoisted input projections (one gridded matmul each, bf16 gate tensor);
    # only h @ W_hh + gate nonlinearities remain inside the recurrence kernel.
    xg = linear(seq_out.reshape(B * S, H), lp0["wih_a"], lp0["bias"])        # [B*S, 8H] bf16
    out_f, out_b = bilstm_layer(xg.reshape(B, S, 8 * H),
                                lp0["whh_f"], lp0["whh_b"], H, t_chunk)

    xg = linear2(out_f.reshape(B * S, H), out_b.reshape(B * S, H),
                 lp1["wih_a"], lp1["wih_b"], lp1["bias"])                    # [B*S, 8H] bf16
    out_f, out_b = bilstm_layer(xg.reshape(B, S, 8 * H),
                                lp1["whh_f"], lp1["whh_b"], H, t_chunk)

    last = jnp.concatenate([out_f[:, -1, :], out_b[:, -1, :]], axis=-1)      # == out[:, -1, :]
    probs = classifier_softmax(last, params["w_cls"], params["b_cls"])
    return probs


if __name__ == "__main__":
    cfg = dict(
        vocab_size=100,
        hidden_size=32,
        num_attention_heads=2,
        num_hidden_layers=2,
        intermediate_size=64,
        max_position_embeddings=16,
        type_vocab_size=2,
        num_labels=3,
    )
    B, S = 2, 8

    key = jax.random.PRNGKey(0)
    k_param, k_ids = jax.random.split(key)
    params = init_params(k_param, cfg)

    input_ids = jax.random.randint(k_ids, (B, S), 0, cfg["vocab_size"], jnp.int32)
    attention_mask = jnp.ones((B, S), jnp.int32).at[1, -2:].set(0)   # some padding
    token_type_ids = jnp.zeros((B, S), jnp.int32).at[:, S // 2:].set(1)

    fwd = jax.jit(lambda p, i, a, t: bert_lstm_classifier_forward(p, i, a, t, cfg))
    probs = fwd(params, input_ids, attention_mask, token_type_ids)
    probs = jax.block_until_ready(probs)

    assert probs.shape == (B, cfg["num_labels"])
    assert bool(jnp.all(jnp.isfinite(probs)))
    assert bool(jnp.allclose(jnp.sum(probs, axis=1), 1.0, atol=1e-5))
    print("KERNEL_OK")
</pallas_src>

<mosaic_0001>
module attributes {stable_mosaic.version = 11 : i64} {
  func.func @_linear_kernel(%arg0: i32, %arg1: memref<16x32xbf16, #tpu.memory_space<vmem>>, %arg2: memref<32x96xbf16, #tpu.memory_space<vmem>>, %arg3: memref<1x96xf32, #tpu.memory_space<vmem>>, %arg4: memref<16x96xbf16, #tpu.memory_space<vmem>>) attributes {dimension_semantics = [#tpu.dimension_semantics<parallel>], iteration_bounds = array<i64: 1>, scalar_prefetch = 0 : i64, scratch_operands = 0 : i64, tpu.core_type = #tpu.core_type<tc>, window_params = [{transform_indices = @transform_0, window_bounds = array<i64: 16, 32>}, {pipeline_mode = #tpu.pipeline_mode<synchronous>, transform_indices = @transform_1, window_bounds = array<i64: 32, 96>}, {pipeline_mode = #tpu.pipeline_mode<synchronous>, transform_indices = @transform_2, window_bounds = array<i64: 1, 96>}, {transform_indices = @transform_3, window_bounds = array<i64: 16, 96>}]} {
    %c0 = arith.constant 0 : index
    %c0_0 = arith.constant 0 : index
    %0 = vector.load %arg1[%c0, %c0_0] : memref<16x32xbf16, #tpu.memory_space<vmem>>, vector<16x32xbf16>
    %c0_1 = arith.constant 0 : index
    %c0_2 = arith.constant 0 : index
    %1 = vector.load %arg2[%c0_1, %c0_2] : memref<32x96xbf16, #tpu.memory_space<vmem>>, vector<32x96xbf16>
    %cst = arith.constant dense<0.000000e+00> : vector<16x96xf32>
    %2 = tpu.matmul %0, %1, %cst {dimension_numbers = #tpu.dot_dimension_numbers<[1], [0], [0], [1], [0, 0, 1, 1], [], []>} : vector<16x32xbf16>, vector<32x96xbf16>, vector<16x96xf32> -> vector<16x96xf32>
    %c0_3 = arith.constant 0 : index
    %c0_4 = arith.constant 0 : index
    %3 = vector.load %arg3[%c0_3, %c0_4] : memref<1x96xf32, #tpu.memory_space<vmem>>, vector<1x96xf32>
    %4 = vector.broadcast %3 : vector<1x96xf32> to vector<16x96xf32>
    %5 = arith.addf %2, %4 : vector<16x96xf32>
    %6 = arith.truncf %5 : vector<16x96xf32> to vector<16x96xbf16>
    %c0_5 = arith.constant 0 : index
    %c0_6 = arith.constant 0 : index
    %7 = vector.load %arg4[%c0_5, %c0_6] : memref<16x96xbf16, #tpu.memory_space<vmem>>, vector<16x96xbf16>
    tpu.vector_store %arg4[%c0_5, %c0_6], %6 {strides = array<i32>} : memref<16x96xbf16, #tpu.memory_space<vmem>>, vector<16x96xbf16>,
    return
  }
  func.func @transform_0(%arg0: i32) -> (i32, i32) {
    %c0_i32 = arith.constant 0 : i32
    %c0_i32_0 = arith.constant 0 : i32
    return %arg0, %c0_i32 : i32, i32
  }
  func.func @transform_1(%arg0: i32) -> (i32, i32) {
    %c0_i32 = arith.constant 0 : i32
    %c0_i32_0 = arith.constant 0 : i32
    %c0_i32_1 = arith.constant 0 : i32
    return %c0_i32, %c0_i32_0 : i32, i32
  }
  func.func @transform_2(%arg0: i32) -> (i32, i32) {
    %c0_i32 = arith.constant 0 : i32
    %c0_i32_0 = arith.constant 0 : i32
    %c0_i32_1 = arith.constant 0 : i32
    return %c0_i32, %c0_i32_0 : i32, i32
  }
  func.func @transform_3(%arg0: i32) -> (i32, i32) {
    %c0_i32 = arith.constant 0 : i32
    %c0_i32_0 = arith.constant 0 : i32
    return %arg0, %c0_i32 : i32, i32
  }
}

module attributes {stable_mosaic.version = 11 : i64} {
  func.func @_ln_kernel(%arg0: i32, %arg1: memref<16x32xf32, #tpu.memory_space<vmem>>, %arg2: memref<1x32xf32, #tpu.memory_space<vmem>>, %arg3: memref<1x32xf32, #tpu.memory_space<vmem>>, %arg4: memref<16x32xbf16, #tpu.memory_space<vmem>>) attributes {dimension_semantics = [#tpu.dimension_semantics<parallel>], iteration_bounds = array<i64: 1>, scalar_prefetch = 0 : i64, scratch_operands = 0 : i64, tpu.core_type = #tpu.core_type<tc>, window_params = [{transform_indices = @transform_0, window_bounds = array<i64: 16, 32>}, {pipeline_mode = #tpu.pipeline_mode<synchronous>, transform_indices = @transform_1, window_bounds = array<i64: 1, 32>}, {pipeline_mode = #tpu.pipeline_mode<synchronous>, transform_indices = @transform_2, window_bounds = array<i64: 1, 32>}, {transform_indices = @transform_3, window_bounds = array<i64: 16, 32>}]} {
    %c0 = arith.constant 0 : index
    %c0_0 = arith.constant 0 : index
    %0 = vector.load %arg1[%c0, %c0_0] : memref<16x32xf32, #tpu.memory_space<vmem>>, vector<16x32xf32>
    %c0_1 = arith.constant 0 : index
    %c0_2 = arith.constant 0 : index
    %1 = vector.load %arg2[%c0_1, %c0_2] : memref<1x32xf32, #tpu.memory_space<vmem>>, vector<1x32xf32>
    %c0_3 = arith.constant 0 : index
    %c0_4 = arith.constant 0 : index
    %2 = vector.load %arg3[%c0_3, %c0_4] : memref<1x32xf32, #tpu.memory_space<vmem>>, vector<1x32xf32>
    %cst = arith.constant dense<0.000000e+00> : vector<16xf32>
    %3 = vector.multi_reduction <add>, %0, %cst [1] : vector<16x32xf32> to vector<16xf32>
    %4 = vector.shape_cast %3 : vector<16xf32> to vector<16x1xf32>
    %cst_5 = arith.constant 3.200000e+01 : f32
    %5 = vector.broadcast %cst_5 : f32 to vector<16x1xf32>
    %6 = arith.divf %4, %5 : vector<16x1xf32>
    %7 = vector.broadcast %6 : vector<16x1xf32> to vector<16x32xf32>
    %8 = arith.subf %0, %7 : vector<16x32xf32>
    %9 = arith.mulf %8, %8 : vector<16x32xf32>
    %cst_6 = arith.constant dense<0.000000e+00> : vector<16xf32>
    %10 = vector.multi_reduction <add>, %9, %cst_6 [1] : vector<16x32xf32> to vector<16xf32>
    %11 = vector.shape_cast %10 : vector<16xf32> to vector<16x1xf32>
    %cst_7 = arith.constant 3.200000e+01 : f32
    %12 = vector.broadcast %cst_7 : f32 to vector<16x1xf32>
    %13 = arith.divf %11, %12 : vector<16x1xf32>
    %14 = vector.broadcast %6 : vector<16x1xf32> to vector<16x32xf32>
    %15 = arith.subf %0, %14 : vector<16x32xf32>
    %cst_8 = arith.constant 9.99999996E-13 : f32
    %16 = vector.broadcast %cst_8 : f32 to vector<16x1xf32>
    %17 = arith.addf %13, %16 : vector<16x1xf32>
    %18 = math.rsqrt %17 : vector<16x1xf32>
    %19 = vector.broadcast %18 : vector<16x1xf32> to vector<16x32xf32>
    %20 = arith.mulf %15, %19 : vector<16x32xf32>
    %21 = vector.broadcast %1 : vector<1x32xf32> to vector<16x32xf32>
    %22 = arith.mulf %20, %21 : vector<16x32xf32>
    %23 = vector.broadcast %2 : vector<1x32xf32> to vector<16x32xf32>
    %24 = arith.addf %22, %23 : vector<16x32xf32>
    %25 = arith.truncf %24 : vector<16x32xf32> to vector<16x32xbf16>
    %c0_9 = arith.constant 0 : index
    %c0_10 = arith.constant 0 : index
    %26 = vector.load %arg4[%c0_9, %c0_10] : memref<16x32xbf16, #tpu.memory_space<vmem>>, vector<16x32xbf16>
    tpu.vector_store %arg4[%c0_9, %c0_10], %25 {strides = array<i32>} : memref<16x32xbf16, #tpu.memory_space<vmem>>, vector<16x32xbf16>,
    return
  }
  func.func @transform_0(%arg0: i32) -> (i32, i32) {
    %c0_i32 = arith.constant 0 : i32
    %c0_i32_0 = arith.constant 0 : i32
    return %arg0, %c0_i32 : i32, i32
  }
  func.func @transform_1(%arg0: i32) -> (i32, i32) {
    %c0_i32 = arith.constant 0 : i32
    %c0_i32_0 = arith.constant 0 : i32
    %c0_i32_1 = arith.constant 0 : i32
    return %c0_i32, %c0_i32_0 : i32, i32
  }
  func.func @transform_2(%arg0: i32) -> (i32, i32) {
    %c0_i32 = arith.constant 0 : i32
    %c0_i32_0 = arith.constant 0 : i32
    %c0_i32_1 = arith.constant 0 : i32
    return %c0_i32, %c0_i32_0 : i32, i32
  }
  func.func @transform_3(%arg0: i32) -> (i32, i32) {
    %c0_i32 = arith.constant 0 : i32
    %c0_i32_0 = arith.constant 0 : i32
    return %arg0, %c0_i32 : i32, i32
  }
}

module attributes {stable_mosaic.version = 11 : i64} {
  func.func @kernel(%arg0: i32, %arg1: i32, %arg2: memref<1x8x96xbf16, #tpu.memory_space<vmem>>, %arg3: memref<1x1x8xf32, #tpu.memory_space<vmem>>, %arg4: memref<1x8x32xbf16, #tpu.memory_space<vmem>>) attributes {dimension_semantics = [#tpu.dimension_semantics<parallel>, #tpu.dimension_semantics<parallel>], iteration_bounds = array<i64: 2, 1>, scalar_prefetch = 0 : i64, scratch_operands = 0 : i64, tpu.core_type = #tpu.core_type<tc>, window_params = [{transform_indices = @transform_0, window_bounds = array<i64: 1, 8, 96>}, {transform_indices = @transform_1, window_bounds = array<i64: 1, 1, 8>}, {transform_indices = @transform_2, window_bounds = array<i64: 1, 8, 32>}]} {
    %c0 = arith.constant 0 : index
    %c0_0 = arith.constant 0 : index
    %c0_1 = arith.constant 0 : index
    %0 = vector.load %arg2[%c0, %c0_0, %c0_1] : memref<1x8x96xbf16, #tpu.memory_space<vmem>>, vector<1x8x96xbf16>
    %1 = vector.shape_cast %0 : vector<1x8x96xbf16> to vector<8x96xbf16>
    %c0_2 = arith.constant 0 : index
    %c0_3 = arith.constant 0 : index
    %c0_4 = arith.constant 0 : index
    %2 = vector.load %arg3[%c0_2, %c0_3, %c0_4] : memref<1x1x8xf32, #tpu.memory_space<vmem>>, vector<1x1x8xf32>
    %3 = vector.shape_cast %2 : vector<1x1x8xf32> to vector<1x8xf32>
    %cst = arith.constant 1.000000e+00 : f32
    %4 = vector.broadcast %cst : f32 to vector<1x8xf32>
    %5 = arith.subf %4, %3 : vector<1x8xf32>
    %cst_5 = arith.constant -1.000000e+04 : f32
    %6 = vector.broadcast %cst_5 : f32 to vector<1x8xf32>
    %7 = arith.mulf %5, %6 : vector<1x8xf32>
    %8 = vector.extract_strided_slice %1 {offsets = [0, 0], sizes = [8, 16], strides = [1, 1]} : vector<8x96xbf16> to vector<8x16xbf16>
    %9 = vector.extract_strided_slice %1 {offsets = [0, 32], sizes = [8, 16], strides = [1, 1]} : vector<8x96xbf16> to vector<8x16xbf16>
    %10 = vector.extract_strided_slice %1 {offsets = [0, 64], sizes = [8, 16], strides = [1, 1]} : vector<8x96xbf16> to vector<8x16xbf16>
    %cst_6 = arith.constant dense<0.000000e+00> : vector<8x8xf32>
    %11 = tpu.matmul %8, %9, %cst_6 {dimension_numbers = #tpu.dot_dimension_numbers<[1], [1], [0], [0], [0, 0, 1, 0], [], []>} : vector<8x16xbf16>, vector<8x16xbf16>, vector<8x8xf32> -> vector<8x8xf32>
    %cst_7 = arith.constant 2.500000e-01 : f32
    %12 = vector.broadcast %cst_7 : f32 to vector<8x8xf32>
    %13 = arith.mulf %11, %12 : vector<8x8xf32>
    %14 = vector.broadcast %7 : vector<1x8xf32> to vector<8x8xf32>
    %15 = arith.addf %13, %14 : vector<8x8xf32>
    %cst_8 = arith.constant dense<0xFF800000> : vector<8xf32>
    %16 = vector.multi_reduction <maximumf>, %15, %cst_8 [1] : vector<8x8xf32> to vector<8xf32>
    %17 = vector.shape_cast %16 : vector<8xf32> to vector<8x1xf32>
    %18 = vector.broadcast %17 : vector<8x1xf32> to vector<8x8xf32>
    %19 = arith.subf %15, %18 : vector<8x8xf32>
    %20 = math.exp %19 : vector<8x8xf32>
    %cst_9 = arith.constant dense<0.000000e+00> : vector<8xf32>
    %21 = vector.multi_reduction <add>, %20, %cst_9 [1] : vector<8x8xf32> to vector<8xf32>
    %22 = vector.shape_cast %21 : vector<8xf32> to vector<8x1xf32>
    %23 = tpu.reciprocal %22 {approx = true} : vector<8x1xf32> -> vector<8x1xf32>
    %24 = vector.broadcast %23 : vector<8x1xf32> to vector<8x8xf32>
    %25 = arith.mulf %20, %24 : vector<8x8xf32>
    %26 = arith.truncf %25 : vector<8x8xf32> to vector<8x8xbf16>
    %cst_10 = arith.constant dense<0.000000e+00> : vector<8x16xf32>
    %27 = tpu.matmul %26, %10, %cst_10 {dimension_numbers = #tpu.dot_dimension_numbers<[1], [0], [0], [1], [0, 0, 1, 1], [], []>} : vector<8x8xbf16>, vector<8x16xbf16>, vector<8x16xf32> -> vector<8x16xf32>
    %28 = vector.extract_strided_slice %1 {offsets = [0, 16], sizes = [8, 16], strides = [1, 1]} : vector<8x96xbf16> to vector<8x16xbf16>
    %29 = vector.extract_strided_slice %1 {offsets = [0, 48], sizes = [8, 16], strides = [1, 1]} : vector<8x96xbf16> to vector<8x16xbf16>
    %30 = vector.extract_strided_slice %1 {offsets = [0, 80], sizes = [8, 16], strides = [1, 1]} : vector<8x96xbf16> to vector<8x16xbf16>
    %cst_11 = arith.constant dense<0.000000e+00> : vector<8x8xf32>
    %31 = tpu.matmul %28, %29, %cst_11 {dimension_numbers = #tpu.dot_dimension_numbers<[1], [1], [0], [0], [0, 0, 1, 0], [], []>} : vector<8x16xbf16>, vector<8x16xbf16>, vector<8x8xf32> -> vector<8x8xf32>
    %cst_12 = arith.constant 2.500000e-01 : f32
    %32 = vector.broadcast %cst_12 : f32 to vector<8x8xf32>
    %33 = arith.mulf %31, %32 : vector<8x8xf32>
    %34 = vector.broadcast %7 : vector<1x8xf32> to vector<8x8xf32>
    %35 = arith.addf %33, %34 : vector<8x8xf32>
    %cst_13 = arith.constant dense<0xFF800000> : vector<8xf32>
    %36 = vector.multi_reduction <maximumf>, %35, %cst_13 [1] : vector<8x8xf32> to vector<8xf32>
    %37 = vector.shape_cast %36 : vector<8xf32> to vector<8x1xf32>
    %38 = vector.broadcast %37 : vector<8x1xf32> to vector<8x8xf32>
    %39 = arith.subf %35, %38 : vector<8x8xf32>
    %40 = math.exp %39 : vector<8x8xf32>
    %cst_14 = arith.constant dense<0.000000e+00> : vector<8xf32>
    %41 = vector.multi_reduction <add>, %40, %cst_14 [1] : vector<8x8xf32> to vector<8xf32>
    %42 = vector.shape_cast %41 : vector<8xf32> to vector<8x1xf32>
    %43 = tpu.reciprocal %42 {approx = true} : vector<8x1xf32> -> vector<8x1xf32>
    %44 = vector.broadcast %43 : vector<8x1xf32> to vector<8x8xf32>
    %45 = arith.mulf %40, %44 : vector<8x8xf32>
    %46 = arith.truncf %45 : vector<8x8xf32> to vector<8x8xbf16>
    %cst_15 = arith.constant dense<0.000000e+00> : vector<8x16xf32>
    %47 = tpu.matmul %46, %30, %cst_15 {dimension_numbers = #tpu.dot_dimension_numbers<[1], [0], [0], [1], [0, 0, 1, 1], [], []>} : vector<8x8xbf16>, vector<8x16xbf16>, vector<8x16xf32> -> vector<8x16xf32>
    %48 = tpu.concatenate %27, %47 in 1 : vector<8x16xf32>, vector<8x16xf32> -> vector<8x32xf32>
    %49 = arith.truncf %48 : vector<8x32xf32> to vector<8x32xbf16>
    %c0_16 = arith.constant 0 : index
    %c0_17 = arith.constant 0 : index
    %c0_18 = arith.constant 0 : index
    %50 = vector.load %arg4[%c0_16, %c0_17, %c0_18] : memref<1x8x32xbf16, #tpu.memory_space<vmem>>, vector<1x8x32xbf16>
    %51 = vector.shape_cast %50 : vector<1x8x32xbf16> to vector<8x32xbf16>
    %52 = vector.shape_cast %49 : vector<8x32xbf16> to vector<1x8x32xbf16>
    tpu.vector_store %arg4[%c0_16, %c0_17, %c0_18], %52 {strides = array<i32>} : memref<1x8x32xbf16, #tpu.memory_space<vmem>>, vector<1x8x32xbf16>,
    return
  }
  func.func @transform_0(%arg0: i32, %arg1: i32) -> (i32, i32, i32) {
    %c0_i32 = arith.constant 0 : i32
    %c0_i32_0 = arith.constant 0 : i32
    return %arg0, %c0_i32, %arg1 : i32, i32, i32
  }
  func.func @transform_1(%arg0: i32, %arg1: i32) -> (i32, i32, i32) {
    %c0_i32 = arith.constant 0 : i32
    %c0_i32_0 = arith.constant 0 : i32
    %c0_i32_1 = arith.constant 0 : i32
    return %arg0, %c0_i32, %c0_i32_0 : i32, i32, i32
  }
  func.func @transform_2(%arg0: i32, %arg1: i32) -> (i32, i32, i32) {
    %c0_i32 = arith.constant 0 : i32
    %c0_i32_0 = arith.constant 0 : i32
    return %arg0, %c0_i32, %arg1 : i32, i32, i32
  }
}

module attributes {stable_mosaic.version = 11 : i64} {
  func.func @_attn_out_ln_kernel(%arg0: i32, %arg1: memref<16x32xbf16, #tpu.memory_space<vmem>>, %arg2: memref<16x32xbf16, #tpu.memory_space<vmem>>, %arg3: memref<32x32xbf16, #tpu.memory_space<vmem>>, %arg4: memref<1x32xf32, #tpu.memory_space<vmem>>, %arg5: memref<1x32xf32, #tpu.memory_space<vmem>>, %arg6: memref<1x32xf32, #tpu.memory_space<vmem>>, %arg7: memref<16x32xbf16, #tpu.memory_space<vmem>>) attributes {dimension_semantics = [#tpu.dimension_semantics<parallel>], iteration_bounds = array<i64: 1>, scalar_prefetch = 0 : i64, scratch_operands = 0 : i64, tpu.core_type = #tpu.core_type<tc>, window_params = [{transform_indices = @transform_0, window_bounds = array<i64: 16, 32>}, {transform_indices = @transform_1, window_bounds = array<i64: 16, 32>}, {pipeline_mode = #tpu.pipeline_mode<synchronous>, transform_indices = @transform_2, window_bounds = array<i64: 32, 32>}, {pipeline_mode = #tpu.pipeline_mode<synchronous>, transform_indices = @transform_3, window_bounds = array<i64: 1, 32>}, {pipeline_mode = #tpu.pipeline_mode<synchronous>, transform_indices = @transform_4, window_bounds = array<i64: 1, 32>}, {pipeline_mode = #tpu.pipeline_mode<synchronous>, transform_indices = @transform_5, window_bounds = array<i64: 1, 32>}, {transform_indices = @transform_6, window_bounds = array<i64: 16, 32>}]} {
    %c0 = arith.constant 0 : index
    %c0_0 = arith.constant 0 : index
    %0 = vector.load %arg1[%c0, %c0_0] : memref<16x32xbf16, #tpu.memory_space<vmem>>, vector<16x32xbf16>
    %c0_1 = arith.constant 0 : index
    %c0_2 = arith.constant 0 : index
    %1 = vector.load %arg3[%c0_1, %c0_2] : memref<32x32xbf16, #tpu.memory_space<vmem>>, vector<32x32xbf16>
    %cst = arith.constant dense<0.000000e+00> : vector<16x32xf32>
    %2 = tpu.matmul %0, %1, %cst {dimension_numbers = #tpu.dot_dimension_numbers<[1], [0], [0], [1], [0, 0, 1, 1], [], []>} : vector<16x32xbf16>, vector<32x32xbf16>, vector<16x32xf32> -> vector<16x32xf32>
    %c0_3 = arith.constant 0 : index
    %c0_4 = arith.constant 0 : index
    %3 = vector.load %arg4[%c0_3, %c0_4] : memref<1x32xf32, #tpu.memory_space<vmem>>, vector<1x32xf32>
    %4 = vector.broadcast %3 : vector<1x32xf32> to vector<16x32xf32>
    %5 = arith.addf %2, %4 : vector<16x32xf32>
    %c0_5 = arith.constant 0 : index
    %c0_6 = arith.constant 0 : index
    %6 = vector.load %arg2[%c0_5, %c0_6] : memref<16x32xbf16, #tpu.memory_space<vmem>>, vector<16x32xbf16>
    %7 = arith.extf %6 : vector<16x32xbf16> to vector<16x32xf32>
    %8 = arith.addf %5, %7 : vector<16x32xf32>
    %c0_7 = arith.constant 0 : index
    %c0_8 = arith.constant 0 : index
    %9 = vector.load %arg5[%c0_7, %c0_8] : memref<1x32xf32, #tpu.memory_space<vmem>>, vector<1x32xf32>
    %c0_9 = arith.constant 0 : index
    %c0_10 = arith.constant 0 : index
    %10 = vector.load %arg6[%c0_9, %c0_10] : memref<1x32xf32, #tpu.memory_space<vmem>>, vector<1x32xf32>
    %cst_11 = arith.constant dense<0.000000e+00> : vector<16xf32>
    %11 = vector.multi_reduction <add>, %8, %cst_11 [1] : vector<16x32xf32> to vector<16xf32>
    %12 = vector.shape_cast %11 : vector<16xf32> to vector<16x1xf32>
    %cst_12 = arith.constant 3.200000e+01 : f32
    %13 = vector.broadcast %cst_12 : f32 to vector<16x1xf32>
    %14 = arith.divf %12, %13 : vector<16x1xf32>
    %15 = vector.broadcast %14 : vector<16x1xf32> to vector<16x32xf32>
    %16 = arith.subf %8, %15 : vector<16x32xf32>
    %17 = arith.mulf %16, %16 : vector<16x32xf32>
    %cst_13 = arith.constant dense<0.000000e+00> : vector<16xf32>
    %18 = vector.multi_reduction <add>, %17, %cst_13 [1] : vector<16x32xf32> to vector<16xf32>
    %19 = vector.shape_cast %18 : vector<16xf32> to vector<16x1xf32>
    %cst_14 = arith.constant 3.200000e+01 : f32
    %20 = vector.broadcast %cst_14 : f32 to vector<16x1xf32>
    %21 = arith.divf %19, %20 : vector<16x1xf32>
    %22 = vector.broadcast %14 : vector<16x1xf32> to vector<16x32xf32>
    %23 = arith.subf %8, %22 : vector<16x32xf32>
    %cst_15 = arith.constant 9.99999996E-13 : f32
    %24 = vector.broadcast %cst_15 : f32 to vector<16x1xf32>
    %25 = arith.addf %21, %24 : vector<16x1xf32>
    %26 = math.rsqrt %25 : vector<16x1xf32>
    %27 = vector.broadcast %26 : vector<16x1xf32> to vector<16x32xf32>
    %28 = arith.mulf %23, %27 : vector<16x32xf32>
    %29 = vector.broadcast %9 : vector<1x32xf32> to vector<16x32xf32>
    %30 = arith.mulf %28, %29 : vector<16x32xf32>
    %31 = vector.broadcast %10 : vector<1x32xf32> to vector<16x32xf32>
    %32 = arith.addf %30, %31 : vector<16x32xf32>
    %33 = arith.truncf %32 : vector<16x32xf32> to vector<16x32xbf16>
    %c0_16 = arith.constant 0 : index
    %c0_17 = arith.constant 0 : index
    %34 = vector.load %arg7[%c0_16, %c0_17] : memref<16x32xbf16, #tpu.memory_space<vmem>>, vector<16x32xbf16>
    tpu.vector_store %arg7[%c0_16, %c0_17], %33 {strides = array<i32>} : memref<16x32xbf16, #tpu.memory_space<vmem>>, vector<16x32xbf16>,
    return
  }
  func.func @transform_0(%arg0: i32) -> (i32, i32) {
    %c0_i32 = arith.constant 0 : i32
    %c0_i32_0 = arith.constant 0 : i32
    return %arg0, %c0_i32 : i32, i32
  }
  func.func @transform_1(%arg0: i32) -> (i32, i32) {
    %c0_i32 = arith.constant 0 : i32
    %c0_i32_0 = arith.constant 0 : i32
    return %arg0, %c0_i32 : i32, i32
  }
  func.func @transform_2(%arg0: i32) -> (i32, i32) {
    %c0_i32 = arith.constant 0 : i32
    %c0_i32_0 = arith.constant 0 : i32
    %c0_i32_1 = arith.constant 0 : i32
    return %c0_i32, %c0_i32_0 : i32, i32
  }
  func.func @transform_3(%arg0: i32) -> (i32, i32) {
    %c0_i32 = arith.constant 0 : i32
    %c0_i32_0 = arith.constant 0 : i32
    %c0_i32_1 = arith.constant 0 : i32
    return %c0_i32, %c0_i32_0 : i32, i32
  }
  func.func @transform_4(%arg0: i32) -> (i32, i32) {
    %c0_i32 = arith.constant 0 : i32
    %c0_i32_0 = arith.constant 0 : i32
    %c0_i32_1 = arith.constant 0 : i32
    return %c0_i32, %c0_i32_0 : i32, i32
  }
  func.func @transform_5(%arg0: i32) -> (i32, i32) {
    %c0_i32 = arith.constant 0 : i32
    %c0_i32_0 = arith.constant 0 : i32
    %c0_i32_1 = arith.constant 0 : i32
    return %c0_i32, %c0_i32_0 : i32, i32
  }
  func.func @transform_6(%arg0: i32) -> (i32, i32) {
    %c0_i32 = arith.constant 0 : i32
    %c0_i32_0 = arith.constant 0 : i32
    return %arg0, %c0_i32 : i32, i32
  }
}

module attributes {stable_mosaic.version = 11 : i64} {
  func.func @_linear_kernel(%arg0: i32, %arg1: memref<16x32xbf16, #tpu.memory_space<vmem>>, %arg2: memref<32x256xbf16, #tpu.memory_space<vmem>>, %arg3: memref<1x256xf32, #tpu.memory_space<vmem>>, %arg4: memref<16x256xbf16, #tpu.memory_space<vmem>>) attributes {dimension_semantics = [#tpu.dimension_semantics<parallel>], iteration_bounds = array<i64: 1>, scalar_prefetch = 0 : i64, scratch_operands = 0 : i64, tpu.core_type = #tpu.core_type<tc>, window_params = [{transform_indices = @transform_0, window_bounds = array<i64: 16, 32>}, {pipeline_mode = #tpu.pipeline_mode<synchronous>, transform_indices = @transform_1, window_bounds = array<i64: 32, 256>}, {pipeline_mode = #tpu.pipeline_mode<synchronous>, transform_indices = @transform_2, window_bounds = array<i64: 1, 256>}, {transform_indices = @transform_3, window_bounds = array<i64: 16, 256>}]} {
    %c0 = arith.constant 0 : index
    %c0_0 = arith.constant 0 : index
    %0 = vector.load %arg1[%c0, %c0_0] : memref<16x32xbf16, #tpu.memory_space<vmem>>, vector<16x32xbf16>
    %c0_1 = arith.constant 0 : index
    %c0_2 = arith.constant 0 : index
    %1 = vector.load %arg2[%c0_1, %c0_2] : memref<32x256xbf16, #tpu.memory_space<vmem>>, vector<32x256xbf16>
    %cst = arith.constant dense<0.000000e+00> : vector<16x256xf32>
    %2 = tpu.matmul %0, %1, %cst {dimension_numbers = #tpu.dot_dimension_numbers<[1], [0], [0], [1], [0, 0, 1, 1], [], []>} : vector<16x32xbf16>, vector<32x256xbf16>, vector<16x256xf32> -> vector<16x256xf32>
    %c0_3 = arith.constant 0 : index
    %c0_4 = arith.constant 0 : index
    %3 = vector.load %arg3[%c0_3, %c0_4] : memref<1x256xf32, #tpu.memory_space<vmem>>, vector<1x256xf32>
    %4 = vector.broadcast %3 : vector<1x256xf32> to vector<16x256xf32>
    %5 = arith.addf %2, %4 : vector<16x256xf32>
    %6 = arith.truncf %5 : vector<16x256xf32> to vector<16x256xbf16>
    %c0_5 = arith.constant 0 : index
    %c0_6 = arith.constant 0 : index
    %7 = vector.load %arg4[%c0_5, %c0_6] : memref<16x256xbf16, #tpu.memory_space<vmem>>, vector<16x256xbf16>
    tpu.vector_store %arg4[%c0_5, %c0_6], %6 {strides = array<i32>} : memref<16x256xbf16, #tpu.memory_space<vmem>>, vector<16x256xbf16>,
    return
  }
  func.func @transform_0(%arg0: i32) -> (i32, i32) {
    %c0_i32 = arith.constant 0 : i32
    %c0_i32_0 = arith.constant 0 : i32
    return %arg0, %c0_i32 : i32, i32
  }
  func.func @transform_1(%arg0: i32) -> (i32, i32) {
    %c0_i32 = arith.constant 0 : i32
    %c0_i32_0 = arith.constant 0 : i32
    %c0_i32_1 = arith.constant 0 : i32
    return %c0_i32, %c0_i32_0 : i32, i32
  }
  func.func @transform_2(%arg0: i32) -> (i32, i32) {
    %c0_i32 = arith.constant 0 : i32
    %c0_i32_0 = arith.constant 0 : i32
    %c0_i32_1 = arith.constant 0 : i32
    return %c0_i32, %c0_i32_0 : i32, i32
  }
  func.func @transform_3(%arg0: i32) -> (i32, i32) {
    %c0_i32 = arith.constant 0 : i32
    %c0_i32_0 = arith.constant 0 : i32
    return %arg0, %c0_i32 : i32, i32
  }
}

module attributes {stable_mosaic.version = 11 : i64} {
  func.func @_ffn_kernel(%arg0: i32, %arg1: memref<16x32xbf16, #tpu.memory_space<vmem>>, %arg2: memref<32x64xbf16, #tpu.memory_space<vmem>>, %arg3: memref<1x64xf32, #tpu.memory_space<vmem>>, %arg4: memref<64x32xbf16, #tpu.memory_space<vmem>>, %arg5: memref<1x32xf32, #tpu.memory_space<vmem>>, %arg6: memref<1x32xf32, #tpu.memory_space<vmem>>, %arg7: memref<1x32xf32, #tpu.memory_space<vmem>>, %arg8: memref<16x32xbf16, #tpu.memory_space<vmem>>) attributes {dimension_semantics = [#tpu.dimension_semantics<parallel>], iteration_bounds = array<i64: 1>, scalar_prefetch = 0 : i64, scratch_operands = 0 : i64, tpu.core_type = #tpu.core_type<tc>, window_params = [{transform_indices = @transform_0, window_bounds = array<i64: 16, 32>}, {pipeline_mode = #tpu.pipeline_mode<synchronous>, transform_indices = @transform_1, window_bounds = array<i64: 32, 64>}, {pipeline_mode = #tpu.pipeline_mode<synchronous>, transform_indices = @transform_2, window_bounds = array<i64: 1, 64>}, {pipeline_mode = #tpu.pipeline_mode<synchronous>, transform_indices = @transform_3, window_bounds = array<i64: 64, 32>}, {pipeline_mode = #tpu.pipeline_mode<synchronous>, transform_indices = @transform_4, window_bounds = array<i64: 1, 32>}, {pipeline_mode = #tpu.pipeline_mode<synchronous>, transform_indices = @transform_5, window_bounds = array<i64: 1, 32>}, {pipeline_mode = #tpu.pipeline_mode<synchronous>, transform_indices = @transform_6, window_bounds = array<i64: 1, 32>}, {transform_indices = @transform_7, window_bounds = array<i64: 16, 32>}]} {
    %c0 = arith.constant 0 : index
    %c0_0 = arith.constant 0 : index
    %0 = vector.load %arg1[%c0, %c0_0] : memref<16x32xbf16, #tpu.memory_space<vmem>>, vector<16x32xbf16>
    %c0_1 = arith.constant 0 : index
    %c0_2 = arith.constant 0 : index
    %1 = vector.load %arg2[%c0_1, %c0_2] : memref<32x64xbf16, #tpu.memory_space<vmem>>, vector<32x64xbf16>
    %cst = arith.constant dense<0.000000e+00> : vector<16x64xf32>
    %2 = tpu.matmul %0, %1, %cst {dimension_numbers = #tpu.dot_dimension_numbers<[1], [0], [0], [1], [0, 0, 1, 1], [], []>} : vector<16x32xbf16>, vector<32x64xbf16>, vector<16x64xf32> -> vector<16x64xf32>
    %c0_3 = arith.constant 0 : index
    %c0_4 = arith.constant 0 : index
    %3 = vector.load %arg3[%c0_3, %c0_4] : memref<1x64xf32, #tpu.memory_space<vmem>>, vector<1x64xf32>
    %4 = vector.broadcast %3 : vector<1x64xf32> to vector<16x64xf32>
    %5 = arith.addf %2, %4 : vector<16x64xf32>
    %6 = arith.mulf %5, %5 : vector<16x64xf32>
    %7 = arith.mulf %5, %6 : vector<16x64xf32>
    %cst_5 = arith.constant 4.471500e-02 : f32
    %8 = vector.broadcast %cst_5 : f32 to vector<16x64xf32>
    %9 = arith.mulf %8, %7 : vector<16x64xf32>
    %10 = arith.addf %5, %9 : vector<16x64xf32>
    %cst_6 = arith.constant 0.797884583 : f32
    %11 = vector.broadcast %cst_6 : f32 to vector<16x64xf32>
    %12 = arith.mulf %11, %10 : vector<16x64xf32>
    %13 = math.tanh %12 : vector<16x64xf32>
    %cst_7 = arith.constant 1.000000e+00 : f32
    %14 = vector.broadcast %cst_7 : f32 to vector<16x64xf32>
    %15 = arith.addf %14, %13 : vector<16x64xf32>
    %cst_8 = arith.constant 5.000000e-01 : f32
    %16 = vector.broadcast %cst_8 : f32 to vector<16x64xf32>
    %17 = arith.mulf %16, %15 : vector<16x64xf32>
    %18 = arith.mulf %5, %17 : vector<16x64xf32>
    %19 = arith.truncf %18 : vector<16x64xf32> to vector<16x64xbf16>
    %c0_9 = arith.constant 0 : index
    %c0_10 = arith.constant 0 : index
    %20 = vector.load %arg4[%c0_9, %c0_10] : memref<64x32xbf16, #tpu.memory_space<vmem>>, vector<64x32xbf16>
    %cst_11 = arith.constant dense<0.000000e+00> : vector<16x32xf32>
    %21 = tpu.matmul %19, %20, %cst_11 {dimension_numbers = #tpu.dot_dimension_numbers<[1], [0], [0], [1], [0, 0, 1, 1], [], []>} : vector<16x64xbf16>, vector<64x32xbf16>, vector<16x32xf32> -> vector<16x32xf32>
    %c0_12 = arith.constant 0 : index
    %c0_13 = arith.constant 0 : index
    %22 = vector.load %arg5[%c0_12, %c0_13] : memref<1x32xf32, #tpu.memory_space<vmem>>, vector<1x32xf32>
    %23 = vector.broadcast %22 : vector<1x32xf32> to vector<16x32xf32>
    %24 = arith.addf %21, %23 : vector<16x32xf32>
    %25 = arith.extf %0 : vector<16x32xbf16> to vector<16x32xf32>
    %26 = arith.addf %24, %25 : vector<16x32xf32>
    %c0_14 = arith.constant 0 : index
    %c0_15 = arith.constant 0 : index
    %27 = vector.load %arg6[%c0_14, %c0_15] : memref<1x32xf32, #tpu.memory_space<vmem>>, vector<1x32xf32>
    %c0_16 = arith.constant 0 : index
    %c0_17 = arith.constant 0 : index
    %28 = vector.load %arg7[%c0_16, %c0_17] : memref<1x32xf32, #tpu.memory_space<vmem>>, vector<1x32xf32>
    %cst_18 = arith.constant dense<0.000000e+00> : vector<16xf32>
    %29 = vector.multi_reduction <add>, %26, %cst_18 [1] : vector<16x32xf32> to vector<16xf32>
    %30 = vector.shape_cast %29 : vector<16xf32> to vector<16x1xf32>
    %cst_19 = arith.constant 3.200000e+01 : f32
    %31 = vector.broadcast %cst_19 : f32 to vector<16x1xf32>
    %32 = arith.divf %30, %31 : vector<16x1xf32>
    %33 = vector.broadcast %32 : vector<16x1xf32> to vector<16x32xf32>
    %34 = arith.subf %26, %33 : vector<16x32xf32>
    %35 = arith.mulf %34, %34 : vector<16x32xf32>
    %cst_20 = arith.constant dense<0.000000e+00> : vector<16xf32>
    %36 = vector.multi_reduction <add>, %35, %cst_20 [1] : vector<16x32xf32> to vector<16xf32>
    %37 = vector.shape_cast %36 : vector<16xf32> to vector<16x1xf32>
    %cst_21 = arith.constant 3.200000e+01 : f32
    %38 = vector.broadcast %cst_21 : f32 to vector<16x1xf32>
    %39 = arith.divf %37, %38 : vector<16x1xf32>
    %40 = vector.broadcast %32 : vector<16x1xf32> to vector<16x32xf32>
    %41 = arith.subf %26, %40 : vector<16x32xf32>
    %cst_22 = arith.constant 9.99999996E-13 : f32
    %42 = vector.broadcast %cst_22 : f32 to vector<16x1xf32>
    %43 = arith.addf %39, %42 : vector<16x1xf32>
    %44 = math.rsqrt %43 : vector<16x1xf32>
    %45 = vector.broadcast %44 : vector<16x1xf32> to vector<16x32xf32>
    %46 = arith.mulf %41, %45 : vector<16x32xf32>
    %47 = vector.broadcast %27 : vector<1x32xf32> to vector<16x32xf32>
    %48 = arith.mulf %46, %47 : vector<16x32xf32>
    %49 = vector.broadcast %28 : vector<1x32xf32> to vector<16x32xf32>
    %50 = arith.addf %48, %49 : vector<16x32xf32>
    %51 = arith.truncf %50 : vector<16x32xf32> to vector<16x32xbf16>
    %c0_23 = arith.constant 0 : index
    %c0_24 = arith.constant 0 : index
    %52 = vector.load %arg8[%c0_23, %c0_24] : memref<16x32xbf16, #tpu.memory_space<vmem>>, vector<16x32xbf16>
    tpu.vector_store %arg8[%c0_23, %c0_24], %51 {strides = array<i32>} : memref<16x32xbf16, #tpu.memory_space<vmem>>, vector<16x32xbf16>,
    return
  }
  func.func @transform_0(%arg0: i32) -> (i32, i32) {
    %c0_i32 = arith.constant 0 : i32
    %c0_i32_0 = arith.constant 0 : i32
    return %arg0, %c0_i32 : i32, i32
  }
  func.func @transform_1(%arg0: i32) -> (i32, i32) {
    %c0_i32 = arith.constant 0 : i32
    %c0_i32_0 = arith.constant 0 : i32
    %c0_i32_1 = arith.constant 0 : i32
    return %c0_i32, %c0_i32_0 : i32, i32
  }
  func.func @transform_2(%arg0: i32) -> (i32, i32) {
    %c0_i32 = arith.constant 0 : i32
    %c0_i32_0 = arith.constant 0 : i32
    %c0_i32_1 = arith.constant 0 : i32
    return %c0_i32, %c0_i32_0 : i32, i32
  }
  func.func @transform_3(%arg0: i32) -> (i32, i32) {
    %c0_i32 = arith.constant 0 : i32
    %c0_i32_0 = arith.constant 0 : i32
    %c0_i32_1 = arith.constant 0 : i32
    return %c0_i32, %c0_i32_0 : i32, i32
  }
  func.func @transform_4(%arg0: i32) -> (i32, i32) {
    %c0_i32 = arith.constant 0 : i32
    %c0_i32_0 = arith.constant 0 : i32
    %c0_i32_1 = arith.constant 0 : i32
    return %c0_i32, %c0_i32_0 : i32, i32
  }
  func.func @transform_5(%arg0: i32) -> (i32, i32) {
    %c0_i32 = arith.constant 0 : i32
    %c0_i32_0 = arith.constant 0 : i32
    %c0_i32_1 = arith.constant 0 : i32
    return %c0_i32, %c0_i32_0 : i32, i32
  }
  func.func @transform_6(%arg0: i32) -> (i32, i32) {
    %c0_i32 = arith.constant 0 : i32
    %c0_i32_0 = arith.constant 0 : i32
    %c0_i32_1 = arith.constant 0 : i32
    return %c0_i32, %c0_i32_0 : i32, i32
  }
  func.func @transform_7(%arg0: i32) -> (i32, i32) {
    %c0_i32 = arith.constant 0 : i32
    %c0_i32_0 = arith.constant 0 : i32
    return %arg0, %c0_i32 : i32, i32
  }
}

module attributes {stable_mosaic.version = 11 : i64} {
  func.func @_linear2_kernel(%arg0: i32, %arg1: memref<16x32xbf16, #tpu.memory_space<vmem>>, %arg2: memref<16x32xbf16, #tpu.memory_space<vmem>>, %arg3: memref<32x256xbf16, #tpu.memory_space<vmem>>, %arg4: memref<32x256xbf16, #tpu.memory_space<vmem>>, %arg5: memref<1x256xf32, #tpu.memory_space<vmem>>, %arg6: memref<16x256xbf16, #tpu.memory_space<vmem>>) attributes {dimension_semantics = [#tpu.dimension_semantics<parallel>], iteration_bounds = array<i64: 1>, scalar_prefetch = 0 : i64, scratch_operands = 0 : i64, tpu.core_type = #tpu.core_type<tc>, window_params = [{transform_indices = @transform_0, window_bounds = array<i64: 16, 32>}, {transform_indices = @transform_1, window_bounds = array<i64: 16, 32>}, {pipeline_mode = #tpu.pipeline_mode<synchronous>, transform_indices = @transform_2, window_bounds = array<i64: 32, 256>}, {pipeline_mode = #tpu.pipeline_mode<synchronous>, transform_indices = @transform_3, window_bounds = array<i64: 32, 256>}, {pipeline_mode = #tpu.pipeline_mode<synchronous>, transform_indices = @transform_4, window_bounds = array<i64: 1, 256>}, {transform_indices = @transform_5, window_bounds = array<i64: 16, 256>}]} {
    %c0 = arith.constant 0 : index
    %c0_0 = arith.constant 0 : index
    %0 = vector.load %arg1[%c0, %c0_0] : memref<16x32xbf16, #tpu.memory_space<vmem>>, vector<16x32xbf16>
    %c0_1 = arith.constant 0 : index
    %c0_2 = arith.constant 0 : index
    %1 = vector.load %arg3[%c0_1, %c0_2] : memref<32x256xbf16, #tpu.memory_space<vmem>>, vector<32x256xbf16>
    %cst = arith.constant dense<0.000000e+00> : vector<16x256xf32>
    %2 = tpu.matmul %0, %1, %cst {dimension_numbers = #tpu.dot_dimension_numbers<[1], [0], [0], [1], [0, 0, 1, 1], [], []>} : vector<16x32xbf16>, vector<32x256xbf16>, vector<16x256xf32> -> vector<16x256xf32>
    %c0_3 = arith.constant 0 : index
    %c0_4 = arith.constant 0 : index
    %3 = vector.load %arg2[%c0_3, %c0_4] : memref<16x32xbf16, #tpu.memory_space<vmem>>, vector<16x32xbf16>
    %c0_5 = arith.constant 0 : index
    %c0_6 = arith.constant 0 : index
    %4 = vector.load %arg4[%c0_5, %c0_6] : memref<32x256xbf16, #tpu.memory_space<vmem>>, vector<32x256xbf16>
    %cst_7 = arith.constant dense<0.000000e+00> : vector<16x256xf32>
    %5 = tpu.matmul %3, %4, %cst_7 {dimension_numbers = #tpu.dot_dimension_numbers<[1], [0], [0], [1], [0, 0, 1, 1], [], []>} : vector<16x32xbf16>, vector<32x256xbf16>, vector<16x256xf32> -> vector<16x256xf32>
    %6 = arith.addf %2, %5 : vector<16x256xf32>
    %c0_8 = arith.constant 0 : index
    %c0_9 = arith.constant 0 : index
    %7 = vector.load %arg5[%c0_8, %c0_9] : memref<1x256xf32, #tpu.memory_space<vmem>>, vector<1x256xf32>
    %8 = vector.broadcast %7 : vector<1x256xf32> to vector<16x256xf32>
    %9 = arith.addf %6, %8 : vector<16x256xf32>
    %10 = arith.truncf %9 : vector<16x256xf32> to vector<16x256xbf16>
    %c0_10 = arith.constant 0 : index
    %c0_11 = arith.constant 0 : index
    %11 = vector.load %arg6[%c0_10, %c0_11] : memref<16x256xbf16, #tpu.memory_space<vmem>>, vector<16x256xbf16>
    tpu.vector_store %arg6[%c0_10, %c0_11], %10 {strides = array<i32>} : memref<16x256xbf16, #tpu.memory_space<vmem>>, vector<16x256xbf16>,
    return
  }
  func.func @transform_0(%arg0: i32) -> (i32, i32) {
    %c0_i32 = arith.constant 0 : i32
    %c0_i32_0 = arith.constant 0 : i32
    return %arg0, %c0_i32 : i32, i32
  }
  func.func @transform_1(%arg0: i32) -> (i32, i32) {
    %c0_i32 = arith.constant 0 : i32
    %c0_i32_0 = arith.constant 0 : i32
    return %arg0, %c0_i32 : i32, i32
  }
  func.func @transform_2(%arg0: i32) -> (i32, i32) {
    %c0_i32 = arith.constant 0 : i32
    %c0_i32_0 = arith.constant 0 : i32
    %c0_i32_1 = arith.constant 0 : i32
    return %c0_i32, %c0_i32_0 : i32, i32
  }
  func.func @transform_3(%arg0: i32) -> (i32, i32) {
    %c0_i32 = arith.constant 0 : i32
    %c0_i32_0 = arith.constant 0 : i32
    %c0_i32_1 = arith.constant 0 : i32
    return %c0_i32, %c0_i32_0 : i32, i32
  }
  func.func @transform_4(%arg0: i32) -> (i32, i32) {
    %c0_i32 = arith.constant 0 : i32
    %c0_i32_0 = arith.constant 0 : i32
    %c0_i32_1 = arith.constant 0 : i32
    return %c0_i32, %c0_i32_0 : i32, i32
  }
  func.func @transform_5(%arg0: i32) -> (i32, i32) {
    %c0_i32 = arith.constant 0 : i32
    %c0_i32_0 = arith.constant 0 : i32
    return %arg0, %c0_i32 : i32, i32
  }
}

module attributes {stable_mosaic.version = 11 : i64} {
  func.func @kernel(%arg0: i32, %arg1: memref<2x8x128xbf16, #tpu.memory_space<vmem>>, %arg2: memref<2x8x128xbf16, #tpu.memory_space<vmem>>, %arg3: memref<32x128xbf16, #tpu.memory_space<vmem>>, %arg4: memref<32x128xbf16, #tpu.memory_space<vmem>>, %arg5: memref<2x8x32xbf16, #tpu.memory_space<vmem>>, %arg6: memref<2x8x32xbf16, #tpu.memory_space<vmem>>, %arg7: memref<2x32xf32, #tpu.memory_space<vmem>>, %arg8: memref<2x32xf32, #tpu.memory_space<vmem>>, %arg9: memref<2x32xf32, #tpu.memory_space<vmem>>, %arg10: memref<2x32xf32, #tpu.memory_space<vmem>>) attributes {dimension_semantics = [#tpu.dimension_semantics<arbitrary>], iteration_bounds = array<i64: 1>, scalar_prefetch = 0 : i64, scratch_operands = 4 : i64, tpu.core_type = #tpu.core_type<tc>, window_params = [{transform_indices = @transform_0, window_bounds = array<i64: 2, 8, 128>}, {transform_indices = @transform_1, window_bounds = array<i64: 2, 8, 128>}, {pipeline_mode = #tpu.pipeline_mode<synchronous>, transform_indices = @transform_2, window_bounds = array<i64: 32, 128>}, {pipeline_mode = #tpu.pipeline_mode<synchronous>, transform_indices = @transform_3, window_bounds = array<i64: 32, 128>}, {transform_indices = @transform_4, window_bounds = array<i64: 2, 8, 32>}, {transform_indices = @transform_5, window_bounds = array<i64: 2, 8, 32>}]} {
    %c0_i32 = arith.constant 0 : i32
    %0 = arith.cmpi eq, %arg0, %c0_i32 : i32
    %1 = arith.extui %0 : i1 to i32
    %c0_i32_0 = arith.constant 0 : i32
    %2 = arith.cmpi ne, %1, %c0_i32_0 : i32
    scf.if %2 {
      %cst_284 = arith.constant 0.000000e+00 : f32
      %629 = vector.broadcast %cst_284 : f32 to vector<2x32xf32>
      %c0_285 = arith.constant 0 : index
      %c0_286 = arith.constant 0 : index
      %630 = vector.load %arg7[%c0_285, %c0_286] : memref<2x32xf32, #tpu.memory_space<vmem>>, vector<2x32xf32>
      tpu.vector_store %arg7[%c0_285, %c0_286], %629 {strides = array<i32>} : memref<2x32xf32, #tpu.memory_space<vmem>>, vector<2x32xf32>,
      %cst_287 = arith.constant 0.000000e+00 : f32
      %631 = vector.broadcast %cst_287 : f32 to vector<2x32xf32>
      %c0_288 = arith.constant 0 : index
      %c0_289 = arith.constant 0 : index
      %632 = vector.load %arg8[%c0_288, %c0_289] : memref<2x32xf32, #tpu.memory_space<vmem>>, vector<2x32xf32>
      tpu.vector_store %arg8[%c0_288, %c0_289], %631 {strides = array<i32>} : memref<2x32xf32, #tpu.memory_space<vmem>>, vector<2x32xf32>,
      %cst_290 = arith.constant 0.000000e+00 : f32
      %633 = vector.broadcast %cst_290 : f32 to vector<2x32xf32>
      %c0_291 = arith.constant 0 : index
      %c0_292 = arith.constant 0 : index
      %634 = vector.load %arg9[%c0_291, %c0_292] : memref<2x32xf32, #tpu.memory_space<vmem>>, vector<2x32xf32>
      tpu.vector_store %arg9[%c0_291, %c0_292], %633 {strides = array<i32>} : memref<2x32xf32, #tpu.memory_space<vmem>>, vector<2x32xf32>,
      %cst_293 = arith.constant 0.000000e+00 : f32
      %635 = vector.broadcast %cst_293 : f32 to vector<2x32xf32>
      %c0_294 = arith.constant 0 : index
      %c0_295 = arith.constant 0 : index
      %636 = vector.load %arg10[%c0_294, %c0_295] : memref<2x32xf32, #tpu.memory_space<vmem>>, vector<2x32xf32>
      tpu.vector_store %arg10[%c0_294, %c0_295], %635 {strides = array<i32>} : memref<2x32xf32, #tpu.memory_space<vmem>>, vector<2x32xf32>,
    } else {
    }
    %c0 = arith.constant 0 : index
    %c0_1 = arith.constant 0 : index
    %3 = vector.load %arg3[%c0, %c0_1] : memref<32x128xbf16, #tpu.memory_space<vmem>>, vector<32x128xbf16>
    %c0_2 = arith.constant 0 : index
    %c0_3 = arith.constant 0 : index
    %4 = vector.load %arg4[%c0_2, %c0_3] : memref<32x128xbf16, #tpu.memory_space<vmem>>, vector<32x128xbf16>
    %c0_4 = arith.constant 0 : index
    %c0_5 = arith.constant 0 : index
    %c0_6 = arith.constant 0 : index
    %5 = vector.load %arg1[%c0_4, %c0_5, %c0_6] : memref<2x8x128xbf16, #tpu.memory_space<vmem>>, vector<2x1x128xbf16>
    %6 = vector.shape_cast %5 : vector<2x1x128xbf16> to vector<2x128xbf16>
    %7 = arith.extf %6 : vector<2x128xbf16> to vector<2x128xf32>
    %c0_7 = arith.constant 0 : index
    %c0_8 = arith.constant 0 : index
    %8 = vector.load %arg7[%c0_7, %c0_8] : memref<2x32xf32, #tpu.memory_space<vmem>>, vector<2x32xf32>
    %9 = arith.truncf %8 : vector<2x32xf32> to vector<2x32xbf16>
    %cst = arith.constant dense<0.000000e+00> : vector<2x128xf32>
    %10 = tpu.matmul %9, %3, %cst {dimension_numbers = #tpu.dot_dimension_numbers<[1], [0], [0], [1], [0, 0, 1, 1], [], []>} : vector<2x32xbf16>, vector<32x128xbf16>, vector<2x128xf32> -> vector<2x128xf32>
    %11 = arith.addf %7, %10 : vector<2x128xf32>
    %c0_9 = arith.constant 0 : index
    %c7 = arith.constant 7 : index
    %c0_10 = arith.constant 0 : index
    %12 = vector.load %arg2[%c0_9, %c7, %c0_10] : memref<2x8x128xbf16, #tpu.memory_space<vmem>>, vector<2x1x128xbf16>
    %13 = vector.shape_cast %12 : vector<2x1x128xbf16> to vector<2x128xbf16>
    %14 = arith.extf %13 : vector<2x128xbf16> to vector<2x128xf32>
    %c0_11 = arith.constant 0 : index
    %c0_12 = arith.constant 0 : index
    %15 = vector.load %arg9[%c0_11, %c0_12] : memref<2x32xf32, #tpu.memory_space<vmem>>, vector<2x32xf32>
    %16 = arith.truncf %15 : vector<2x32xf32> to vector<2x32xbf16>
    %cst_13 = arith.constant dense<0.000000e+00> : vector<2x128xf32>
    %17 = tpu.matmul %16, %4, %cst_13 {dimension_numbers = #tpu.dot_dimension_numbers<[1], [0], [0], [1], [0, 0, 1, 1], [], []>} : vector<2x32xbf16>, vector<32x128xbf16>, vector<2x128xf32> -> vector<2x128xf32>
    %18 = arith.addf %14, %17 : vector<2x128xf32>
    %c0_14 = arith.constant 0 : index
    %c0_15 = arith.constant 0 : index
    %19 = vector.load %arg8[%c0_14, %c0_15] : memref<2x32xf32, #tpu.memory_space<vmem>>, vector<2x32xf32>
    %20 = vector.extract_strided_slice %11 {offsets = [0, 0], sizes = [2, 32], strides = [1, 1]} : vector<2x128xf32> to vector<2x32xf32>
    %21 = arith.negf %20 : vector<2x32xf32>
    %22 = math.exp %21 : vector<2x32xf32>
    %cst_16 = arith.constant 1.000000e+00 : f32
    %23 = vector.broadcast %cst_16 : f32 to vector<2x32xf32>
    %24 = arith.addf %23, %22 : vector<2x32xf32>
    %25 = arith.divf %23, %24 : vector<2x32xf32>
    %26 = vector.extract_strided_slice %11 {offsets = [0, 32], sizes = [2, 32], strides = [1, 1]} : vector<2x128xf32> to vector<2x32xf32>
    %27 = arith.negf %26 : vector<2x32xf32>
    %28 = math.exp %27 : vector<2x32xf32>
    %cst_17 = arith.constant 1.000000e+00 : f32
    %29 = vector.broadcast %cst_17 : f32 to vector<2x32xf32>
    %30 = arith.addf %29, %28 : vector<2x32xf32>
    %31 = arith.divf %29, %30 : vector<2x32xf32>
    %32 = vector.extract_strided_slice %11 {offsets = [0, 64], sizes = [2, 32], strides = [1, 1]} : vector<2x128xf32> to vector<2x32xf32>
    %33 = math.tanh %32 : vector<2x32xf32>
    %34 = vector.extract_strided_slice %11 {offsets = [0, 96], sizes = [2, 32], strides = [1, 1]} : vector<2x128xf32> to vector<2x32xf32>
    %35 = arith.negf %34 : vector<2x32xf32>
    %36 = math.exp %35 : vector<2x32xf32>
    %cst_18 = arith.constant 1.000000e+00 : f32
    %37 = vector.broadcast %cst_18 : f32 to vector<2x32xf32>
    %38 = arith.addf %37, %36 : vector<2x32xf32>
    %39 = arith.divf %37, %38 : vector<2x32xf32>
    %40 = arith.mulf %31, %19 : vector<2x32xf32>
    %41 = arith.mulf %25, %33 : vector<2x32xf32>
    %42 = arith.addf %40, %41 : vector<2x32xf32>
    %43 = math.tanh %42 : vector<2x32xf32>
    %44 = arith.mulf %39, %43 : vector<2x32xf32>
    %c0_19 = arith.constant 0 : index
    %c0_20 = arith.constant 0 : index
    %45 = vector.load %arg10[%c0_19, %c0_20] : memref<2x32xf32, #tpu.memory_space<vmem>>, vector<2x32xf32>
    %46 = vector.extract_strided_slice %18 {offsets = [0, 0], sizes = [2, 32], strides = [1, 1]} : vector<2x128xf32> to vector<2x32xf32>
    %47 = arith.negf %46 : vector<2x32xf32>
    %48 = math.exp %47 : vector<2x32xf32>
    %cst_21 = arith.constant 1.000000e+00 : f32
    %49 = vector.broadcast %cst_21 : f32 to vector<2x32xf32>
    %50 = arith.addf %49, %48 : vector<2x32xf32>
    %51 = arith.divf %49, %50 : vector<2x32xf32>
    %52 = vector.extract_strided_slice %18 {offsets = [0, 32], sizes = [2, 32], strides = [1, 1]} : vector<2x128xf32> to vector<2x32xf32>
    %53 = arith.negf %52 : vector<2x32xf32>
    %54 = math.exp %53 : vector<2x32xf32>
    %cst_22 = arith.constant 1.000000e+00 : f32
    %55 = vector.broadcast %cst_22 : f32 to vector<2x32xf32>
    %56 = arith.addf %55, %54 : vector<2x32xf32>
    %57 = arith.divf %55, %56 : vector<2x32xf32>
    %58 = vector.extract_strided_slice %18 {offsets = [0, 64], sizes = [2, 32], strides = [1, 1]} : vector<2x128xf32> to vector<2x32xf32>
    %59 = math.tanh %58 : vector<2x32xf32>
    %60 = vector.extract_strided_slice %18 {offsets = [0, 96], sizes = [2, 32], strides = [1, 1]} : vector<2x128xf32> to vector<2x32xf32>
    %61 = arith.negf %60 : vector<2x32xf32>
    %62 = math.exp %61 : vector<2x32xf32>
    %cst_23 = arith.constant 1.000000e+00 : f32
    %63 = vector.broadcast %cst_23 : f32 to vector<2x32xf32>
    %64 = arith.addf %63, %62 : vector<2x32xf32>
    %65 = arith.divf %63, %64 : vector<2x32xf32>
    %66 = arith.mulf %57, %45 : vector<2x32xf32>
    %67 = arith.mulf %51, %59 : vector<2x32xf32>
    %68 = arith.addf %66, %67 : vector<2x32xf32>
    %69 = math.tanh %68 : vector<2x32xf32>
    %70 = arith.mulf %65, %69 : vector<2x32xf32>
    %c0_24 = arith.constant 0 : index
    %c0_25 = arith.constant 0 : index
    %71 = vector.load %arg7[%c0_24, %c0_25] : memref<2x32xf32, #tpu.memory_space<vmem>>, vector<2x32xf32>
    tpu.vector_store %arg7[%c0_24, %c0_25], %44 {strides = array<i32>} : memref<2x32xf32, #tpu.memory_space<vmem>>, vector<2x32xf32>,
    %c0_26 = arith.constant 0 : index
    %c0_27 = arith.constant 0 : index
    %72 = vector.load %arg8[%c0_26, %c0_27] : memref<2x32xf32, #tpu.memory_space<vmem>>, vector<2x32xf32>
    tpu.vector_store %arg8[%c0_26, %c0_27], %42 {strides = array<i32>} : memref<2x32xf32, #tpu.memory_space<vmem>>, vector<2x32xf32>,
    %c0_28 = arith.constant 0 : index
    %c0_29 = arith.constant 0 : index
    %73 = vector.load %arg9[%c0_28, %c0_29] : memref<2x32xf32, #tpu.memory_space<vmem>>, vector<2x32xf32>
    tpu.vector_store %arg9[%c0_28, %c0_29], %70 {strides = array<i32>} : memref<2x32xf32, #tpu.memory_space<vmem>>, vector<2x32xf32>,
    %c0_30 = arith.constant 0 : index
    %c0_31 = arith.constant 0 : index
    %74 = vector.load %arg10[%c0_30, %c0_31] : memref<2x32xf32, #tpu.memory_space<vmem>>, vector<2x32xf32>
    tpu.vector_store %arg10[%c0_30, %c0_31], %68 {strides = array<i32>} : memref<2x32xf32, #tpu.memory_space<vmem>>, vector<2x32xf32>,
    %75 = arith.truncf %44 : vector<2x32xf32> to vector<2x32xbf16>
    %c0_32 = arith.constant 0 : index
    %c0_33 = arith.constant 0 : index
    %c0_34 = arith.constant 0 : index
    %76 = vector.load %arg5[%c0_32, %c0_33, %c0_34] : memref<2x8x32xbf16, #tpu.memory_space<vmem>>, vector<2x1x32xbf16>
    %77 = vector.shape_cast %76 : vector<2x1x32xbf16> to vector<2x32xbf16>
    %78 = vector.shape_cast %75 : vector<2x32xbf16> to vector<2x1x32xbf16>
    tpu.vector_store %arg5[%c0_32, %c0_33, %c0_34], %78 {strides = array<i32>} : memref<2x8x32xbf16, #tpu.memory_space<vmem>>, vector<2x1x32xbf16>,
    %79 = arith.truncf %70 : vector<2x32xf32> to vector<2x32xbf16>
    %c0_35 = arith.constant 0 : index
    %c7_36 = arith.constant 7 : index
    %c0_37 = arith.constant 0 : index
    %80 = vector.load %arg6[%c0_35, %c7_36, %c0_37] : memref<2x8x32xbf16, #tpu.memory_space<vmem>>, vector<2x1x32xbf16>
    %81 = vector.shape_cast %80 : vector<2x1x32xbf16> to vector<2x32xbf16>
    %82 = vector.shape_cast %79 : vector<2x32xbf16> to vector<2x1x32xbf16>
    tpu.vector_store %arg6[%c0_35, %c7_36, %c0_37], %82 {strides = array<i32>} : memref<2x8x32xbf16, #tpu.memory_space<vmem>>, vector<2x1x32xbf16>,
    %c0_38 = arith.constant 0 : index
    %c1 = arith.constant 1 : index
    %c0_39 = arith.constant 0 : index
    %83 = vector.load %arg1[%c0_38, %c1, %c0_39] : memref<2x8x128xbf16, #tpu.memory_space<vmem>>, vector<2x1x128xbf16>
    %84 = vector.shape_cast %83 : vector<2x1x128xbf16> to vector<2x128xbf16>
    %85 = arith.extf %84 : vector<2x128xbf16> to vector<2x128xf32>
    %c0_40 = arith.constant 0 : index
    %c0_41 = arith.constant 0 : index
    %86 = vector.load %arg7[%c0_40, %c0_41] : memref<2x32xf32, #tpu.memory_space<vmem>>, vector<2x32xf32>
    %87 = arith.truncf %86 : vector<2x32xf32> to vector<2x32xbf16>
    %cst_42 = arith.constant dense<0.000000e+00> : vector<2x128xf32>
    %88 = tpu.matmul %87, %3, %cst_42 {dimension_numbers = #tpu.dot_dimension_numbers<[1], [0], [0], [1], [0, 0, 1, 1], [], []>} : vector<2x32xbf16>, vector<32x128xbf16>, vector<2x128xf32> -> vector<2x128xf32>
    %89 = arith.addf %85, %88 : vector<2x128xf32>
    %c0_43 = arith.constant 0 : index
    %c6 = arith.constant 6 : index
    %c0_44 = arith.constant 0 : index
    %90 = vector.load %arg2[%c0_43, %c6, %c0_44] : memref<2x8x128xbf16, #tpu.memory_space<vmem>>, vector<2x1x128xbf16>
    %91 = vector.shape_cast %90 : vector<2x1x128xbf16> to vector<2x128xbf16>
    %92 = arith.extf %91 : vector<2x128xbf16> to vector<2x128xf32>
    %c0_45 = arith.constant 0 : index
    %c0_46 = arith.constant 0 : index
    %93 = vector.load %arg9[%c0_45, %c0_46] : memref<2x32xf32, #tpu.memory_space<vmem>>, vector<2x32xf32>
    %94 = arith.truncf %93 : vector<2x32xf32> to vector<2x32xbf16>
    %cst_47 = arith.constant dense<0.000000e+00> : vector<2x128xf32>
    %95 = tpu.matmul %94, %4, %cst_47 {dimension_numbers = #tpu.dot_dimension_numbers<[1], [0], [0], [1], [0, 0, 1, 1], [], []>} : vector<2x32xbf16>, vector<32x128xbf16>, vector<2x128xf32> -> vector<2x128xf32>
    %96 = arith.addf %92, %95 : vector<2x128xf32>
    %c0_48 = arith.constant 0 : index
    %c0_49 = arith.constant 0 : index
    %97 = vector.load %arg8[%c0_48, %c0_49] : memref<2x32xf32, #tpu.memory_space<vmem>>, vector<2x32xf32>
    %98 = vector.extract_strided_slice %89 {offsets = [0, 0], sizes = [2, 32], strides = [1, 1]} : vector<2x128xf32> to vector<2x32xf32>
    %99 = arith.negf %98 : vector<2x32xf32>
    %100 = math.exp %99 : vector<2x32xf32>
    %cst_50 = arith.constant 1.000000e+00 : f32
    %101 = vector.broadcast %cst_50 : f32 to vector<2x32xf32>
    %102 = arith.addf %101, %100 : vector<2x32xf32>
    %103 = arith.divf %101, %102 : vector<2x32xf32>
    %104 = vector.extract_strided_slice %89 {offsets = [0, 32], sizes = [2, 32], strides = [1, 1]} : vector<2x128xf32> to vector<2x32xf32>
    %105 = arith.negf %104 : vector<2x32xf32>
    %106 = math.exp %105 : vector<2x32xf32>
    %cst_51 = arith.constant 1.000000e+00 : f32
    %107 = vector.broadcast %cst_51 : f32 to vector<2x32xf32>
    %108 = arith.addf %107, %106 : vector<2x32xf32>
    %109 = arith.divf %107, %108 : vector<2x32xf32>
    %110 = vector.extract_strided_slice %89 {offsets = [0, 64], sizes = [2, 32], strides = [1, 1]} : vector<2x128xf32> to vector<2x32xf32>
    %111 = math.tanh %110 : vector<2x32xf32>
    %112 = vector.extract_strided_slice %89 {offsets = [0, 96], sizes = [2, 32], strides = [1, 1]} : vector<2x128xf32> to vector<2x32xf32>
    %113 = arith.negf %112 : vector<2x32xf32>
    %114 = math.exp %113 : vector<2x32xf32>
    %cst_52 = arith.constant 1.000000e+00 : f32
    %115 = vector.broadcast %cst_52 : f32 to vector<2x32xf32>
    %116 = arith.addf %115, %114 : vector<2x32xf32>
    %117 = arith.divf %115, %116 : vector<2x32xf32>
    %118 = arith.mulf %109, %97 : vector<2x32xf32>
    %119 = arith.mulf %103, %111 : vector<2x32xf32>
    %120 = arith.addf %118, %119 : vector<2x32xf32>
    %121 = math.tanh %120 : vector<2x32xf32>
    %122 = arith.mulf %117, %121 : vector<2x32xf32>
    %c0_53 = arith.constant 0 : index
    %c0_54 = arith.constant 0 : index
    %123 = vector.load %arg10[%c0_53, %c0_54] : memref<2x32xf32, #tpu.memory_space<vmem>>, vector<2x32xf32>
    %124 = vector.extract_strided_slice %96 {offsets = [0, 0], sizes = [2, 32], strides = [1, 1]} : vector<2x128xf32> to vector<2x32xf32>
    %125 = arith.negf %124 : vector<2x32xf32>
    %126 = math.exp %125 : vector<2x32xf32>
    %cst_55 = arith.constant 1.000000e+00 : f32
    %127 = vector.broadcast %cst_55 : f32 to vector<2x32xf32>
    %128 = arith.addf %127, %126 : vector<2x32xf32>
    %129 = arith.divf %127, %128 : vector<2x32xf32>
    %130 = vector.extract_strided_slice %96 {offsets = [0, 32], sizes = [2, 32], strides = [1, 1]} : vector<2x128xf32> to vector<2x32xf32>
    %131 = arith.negf %130 : vector<2x32xf32>
    %132 = math.exp %131 : vector<2x32xf32>
    %cst_56 = arith.constant 1.000000e+00 : f32
    %133 = vector.broadcast %cst_56 : f32 to vector<2x32xf32>
    %134 = arith.addf %133, %132 : vector<2x32xf32>
    %135 = arith.divf %133, %134 : vector<2x32xf32>
    %136 = vector.extract_strided_slice %96 {offsets = [0, 64], sizes = [2, 32], strides = [1, 1]} : vector<2x128xf32> to vector<2x32xf32>
    %137 = math.tanh %136 : vector<2x32xf32>
    %138 = vector.extract_strided_slice %96 {offsets = [0, 96], sizes = [2, 32], strides = [1, 1]} : vector<2x128xf32> to vector<2x32xf32>
    %139 = arith.negf %138 : vector<2x32xf32>
    %140 = math.exp %139 : vector<2x32xf32>
    %cst_57 = arith.constant 1.000000e+00 : f32
    %141 = vector.broadcast %cst_57 : f32 to vector<2x32xf32>
    %142 = arith.addf %141, %140 : vector<2x32xf32>
    %143 = arith.divf %141, %142 : vector<2x32xf32>
    %144 = arith.mulf %135, %123 : vector<2x32xf32>
    %145 = arith.mulf %129, %137 : vector<2x32xf32>
    %146 = arith.addf %144, %145 : vector<2x32xf32>
    %147 = math.tanh %146 : vector<2x32xf32>
    %148 = arith.mulf %143, %147 : vector<2x32xf32>
    %c0_58 = arith.constant 0 : index
    %c0_59 = arith.constant 0 : index
    %149 = vector.load %arg7[%c0_58, %c0_59] : memref<2x32xf32, #tpu.memory_space<vmem>>, vector<2x32xf32>
    tpu.vector_store %arg7[%c0_58, %c0_59], %122 {strides = array<i32>} : memref<2x32xf32, #tpu.memory_space<vmem>>, vector<2x32xf32>,
    %c0_60 = arith.constant 0 : index
    %c0_61 = arith.constant 0 : index
    %150 = vector.load %arg8[%c0_60, %c0_61] : memref<2x32xf32, #tpu.memory_space<vmem>>, vector<2x32xf32>
    tpu.vector_store %arg8[%c0_60, %c0_61], %120 {strides = array<i32>} : memref<2x32xf32, #tpu.memory_space<vmem>>, vector<2x32xf32>,
    %c0_62 = arith.constant 0 : index
    %c0_63 = arith.constant 0 : index
    %151 = vector.load %arg9[%c0_62, %c0_63] : memref<2x32xf32, #tpu.memory_space<vmem>>, vector<2x32xf32>
    tpu.vector_store %arg9[%c0_62, %c0_63], %148 {strides = array<i32>} : memref<2x32xf32, #tpu.memory_space<vmem>>, vector<2x32xf32>,
    %c0_64 = arith.constant 0 : index
    %c0_65 = arith.constant 0 : index
    %152 = vector.load %arg10[%c0_64, %c0_65] : memref<2x32xf32, #tpu.memory_space<vmem>>, vector<2x32xf32>
    tpu.vector_store %arg10[%c0_64, %c0_65], %146 {strides = array<i32>} : memref<2x32xf32, #tpu.memory_space<vmem>>, vector<2x32xf32>,
    %153 = arith.truncf %122 : vector<2x32xf32> to vector<2x32xbf16>
    %c0_66 = arith.constant 0 : index
    %c1_67 = arith.constant 1 : index
    %c0_68 = arith.constant 0 : index
    %154 = vector.load %arg5[%c0_66, %c1_67, %c0_68] : memref<2x8x32xbf16, #tpu.memory_space<vmem>>, vector<2x1x32xbf16>
    %155 = vector.shape_cast %154 : vector<2x1x32xbf16> to vector<2x32xbf16>
    %156 = vector.shape_cast %153 : vector<2x32xbf16> to vector<2x1x32xbf16>
    tpu.vector_store %arg5[%c0_66, %c1_67, %c0_68], %156 {strides = array<i32>} : memref<2x8x32xbf16, #tpu.memory_space<vmem>>, vector<2x1x32xbf16>,
    %157 = arith.truncf %148 : vector<2x32xf32> to vector<2x32xbf16>
    %c0_69 = arith.constant 0 : index
    %c6_70 = arith.constant 6 : index
    %c0_71 = arith.constant 0 : index
    %158 = vector.load %arg6[%c0_69, %c6_70, %c0_71] : memref<2x8x32xbf16, #tpu.memory_space<vmem>>, vector<2x1x32xbf16>
    %159 = vector.shape_cast %158 : vector<2x1x32xbf16> to vector<2x32xbf16>
    %160 = vector.shape_cast %157 : vector<2x32xbf16> to vector<2x1x32xbf16>
    tpu.vector_store %arg6[%c0_69, %c6_70, %c0_71], %160 {strides = array<i32>} : memref<2x8x32xbf16, #tpu.memory_space<vmem>>, vector<2x1x32xbf16>,
    %c0_72 = arith.constant 0 : index
    %c2 = arith.constant 2 : index
    %c0_73 = arith.constant 0 : index
    %161 = vector.load %arg1[%c0_72, %c2, %c0_73] : memref<2x8x128xbf16, #tpu.memory_space<vmem>>, vector<2x1x128xbf16>
    %162 = vector.shape_cast %161 : vector<2x1x128xbf16> to vector<2x128xbf16>
    %163 = arith.extf %162 : vector<2x128xbf16> to vector<2x128xf32>
    %c0_74 = arith.constant 0 : index
    %c0_75 = arith.constant 0 : index
    %164 = vector.load %arg7[%c0_74, %c0_75] : memref<2x32xf32, #tpu.memory_space<vmem>>, vector<2x32xf32>
    %165 = arith.truncf %164 : vector<2x32xf32> to vector<2x32xbf16>
    %cst_76 = arith.constant dense<0.000000e+00> : vector<2x128xf32>
    %166 = tpu.matmul %165, %3, %cst_76 {dimension_numbers = #tpu.dot_dimension_numbers<[1], [0], [0], [1], [0, 0, 1, 1], [], []>} : vector<2x32xbf16>, vector<32x128xbf16>, vector<2x128xf32> -> vector<2x128xf32>
    %167 = arith.addf %163, %166 : vector<2x128xf32>
    %c0_77 = arith.constant 0 : index
    %c5 = arith.constant 5 : index
    %c0_78 = arith.constant 0 : index
    %168 = vector.load %arg2[%c0_77, %c5, %c0_78] : memref<2x8x128xbf16, #tpu.memory_space<vmem>>, vector<2x1x128xbf16>
    %169 = vector.shape_cast %168 : vector<2x1x128xbf16> to vector<2x128xbf16>
    %170 = arith.extf %169 : vector<2x128xbf16> to vector<2x128xf32>
    %c0_79 = arith.constant 0 : index
    %c0_80 = arith.constant 0 : index
    %171 = vector.load %arg9[%c0_79, %c0_80] : memref<2x32xf32, #tpu.memory_space<vmem>>, vector<2x32xf32>
    %172 = arith.truncf %171 : vector<2x32xf32> to vector<2x32xbf16>
    %cst_81 = arith.constant dense<0.000000e+00> : vector<2x128xf32>
    %173 = tpu.matmul %172, %4, %cst_81 {dimension_numbers = #tpu.dot_dimension_numbers<[1], [0], [0], [1], [0, 0, 1, 1], [], []>} : vector<2x32xbf16>, vector<32x128xbf16>, vector<2x128xf32> -> vector<2x128xf32>
    %174 = arith.addf %170, %173 : vector<2x128xf32>
    %c0_82 = arith.constant 0 : index
    %c0_83 = arith.constant 0 : index
    %175 = vector.load %arg8[%c0_82, %c0_83] : memref<2x32xf32, #tpu.memory_space<vmem>>, vector<2x32xf32>
    %176 = vector.extract_strided_slice %167 {offsets = [0, 0], sizes = [2, 32], strides = [1, 1]} : vector<2x128xf32> to vector<2x32xf32>
    %177 = arith.negf %176 : vector<2x32xf32>
    %178 = math.exp %177 : vector<2x32xf32>
    %cst_84 = arith.constant 1.000000e+00 : f32
    %179 = vector.broadcast %cst_84 : f32 to vector<2x32xf32>
    %180 = arith.addf %179, %178 : vector<2x32xf32>
    %181 = arith.divf %179, %180 : vector<2x32xf32>
    %182 = vector.extract_strided_slice %167 {offsets = [0, 32], sizes = [2, 32], strides = [1, 1]} : vector<2x128xf32> to vector<2x32xf32>
    %183 = arith.negf %182 : vector<2x32xf32>
    %184 = math.exp %183 : vector<2x32xf32>
    %cst_85 = arith.constant 1.000000e+00 : f32
    %185 = vector.broadcast %cst_85 : f32 to vector<2x32xf32>
    %186 = arith.addf %185, %184 : vector<2x32xf32>
    %187 = arith.divf %185, %186 : vector<2x32xf32>
    %188 = vector.extract_strided_slice %167 {offsets = [0, 64], sizes = [2, 32], strides = [1, 1]} : vector<2x128xf32> to vector<2x32xf32>
    %189 = math.tanh %188 : vector<2x32xf32>
    %190 = vector.extract_strided_slice %167 {offsets = [0, 96], sizes = [2, 32], strides = [1, 1]} : vector<2x128xf32> to vector<2x32xf32>
    %191 = arith.negf %190 : vector<2x32xf32>
    %192 = math.exp %191 : vector<2x32xf32>
    %cst_86 = arith.constant 1.000000e+00 : f32
    %193 = vector.broadcast %cst_86 : f32 to vector<2x32xf32>
    %194 = arith.addf %193, %192 : vector<2x32xf32>
    %195 = arith.divf %193, %194 : vector<2x32xf32>
    %196 = arith.mulf %187, %175 : vector<2x32xf32>
    %197 = arith.mulf %181, %189 : vector<2x32xf32>
    %198 = arith.addf %196, %197 : vector<2x32xf32>
    %199 = math.tanh %198 : vector<2x32xf32>
    %200 = arith.mulf %195, %199 : vector<2x32xf32>
    %c0_87 = arith.constant 0 : index
    %c0_88 = arith.constant 0 : index
    %201 = vector.load %arg10[%c0_87, %c0_88] : memref<2x32xf32, #tpu.memory_space<vmem>>, vector<2x32xf32>
    %202 = vector.extract_strided_slice %174 {offsets = [0, 0], sizes = [2, 32], strides = [1, 1]} : vector<2x128xf32> to vector<2x32xf32>
    %203 = arith.negf %202 : vector<2x32xf32>
    %204 = math.exp %203 : vector<2x32xf32>
    %cst_89 = arith.constant 1.000000e+00 : f32
    %205 = vector.broadcast %cst_89 : f32 to vector<2x32xf32>
    %206 = arith.addf %205, %204 : vector<2x32xf32>
    %207 = arith.divf %205, %206 : vector<2x32xf32>
    %208 = vector.extract_strided_slice %174 {offsets = [0, 32], sizes = [2, 32], strides = [1, 1]} : vector<2x128xf32> to vector<2x32xf32>
    %209 = arith.negf %208 : vector<2x32xf32>
    %210 = math.exp %209 : vector<2x32xf32>
    %cst_90 = arith.constant 1.000000e+00 : f32
    %211 = vector.broadcast %cst_90 : f32 to vector<2x32xf32>
    %212 = arith.addf %211, %210 : vector<2x32xf32>
    %213 = arith.divf %211, %212 : vector<2x32xf32>
    %214 = vector.extract_strided_slice %174 {offsets = [0, 64], sizes = [2, 32], strides = [1, 1]} : vector<2x128xf32> to vector<2x32xf32>
    %215 = math.tanh %214 : vector<2x32xf32>
    %216 = vector.extract_strided_slice %174 {offsets = [0, 96], sizes = [2, 32], strides = [1, 1]} : vector<2x128xf32> to vector<2x32xf32>
    %217 = arith.negf %216 : vector<2x32xf32>
    %218 = math.exp %217 : vector<2x32xf32>
    %cst_91 = arith.constant 1.000000e+00 : f32
    %219 = vector.broadcast %cst_91 : f32 to vector<2x32xf32>
    %220 = arith.addf %219, %218 : vector<2x32xf32>
    %221 = arith.divf %219, %220 : vector<2x32xf32>
    %222 = arith.mulf %213, %201 : vector<2x32xf32>
    %223 = arith.mulf %207, %215 : vector<2x32xf32>
    %224 = arith.addf %222, %223 : vector<2x32xf32>
    %225 = math.tanh %224 : vector<2x32xf32>
    %226 = arith.mulf %221, %225 : vector<2x32xf32>
    %c0_92 = arith.constant 0 : index
    %c0_93 = arith.constant 0 : index
    %227 = vector.load %arg7[%c0_92, %c0_93] : memref<2x32xf32, #tpu.memory_space<vmem>>, vector<2x32xf32>
    tpu.vector_store %arg7[%c0_92, %c0_93], %200 {strides = array<i32>} : memref<2x32xf32, #tpu.memory_space<vmem>>, vector<2x32xf32>,
    %c0_94 = arith.constant 0 : index
    %c0_95 = arith.constant 0 : index
    %228 = vector.load %arg8[%c0_94, %c0_95] : memref<2x32xf32, #tpu.memory_space<vmem>>, vector<2x32xf32>
    tpu.vector_store %arg8[%c0_94, %c0_95], %198 {strides = array<i32>} : memref<2x32xf32, #tpu.memory_space<vmem>>, vector<2x32xf32>,
    %c0_96 = arith.constant 0 : index
    %c0_97 = arith.constant 0 : index
    %229 = vector.load %arg9[%c0_96, %c0_97] : memref<2x32xf32, #tpu.memory_space<vmem>>, vector<2x32xf32>
    tpu.vector_store %arg9[%c0_96, %c0_97], %226 {strides = array<i32>} : memref<2x32xf32, #tpu.memory_space<vmem>>, vector<2x32xf32>,
    %c0_98 = arith.constant 0 : index
    %c0_99 = arith.constant 0 : index
    %230 = vector.load %arg10[%c0_98, %c0_99] : memref<2x32xf32, #tpu.memory_space<vmem>>, vector<2x32xf32>
    tpu.vector_store %arg10[%c0_98, %c0_99], %224 {strides = array<i32>} : memref<2x32xf32, #tpu.memory_space<vmem>>, vector<2x32xf32>,
    %231 = arith.truncf %200 : vector<2x32xf32> to vector<2x32xbf16>
    %c0_100 = arith.constant 0 : index
    %c2_101 = arith.constant 2 : index
    %c0_102 = arith.constant 0 : index
    %232 = vector.load %arg5[%c0_100, %c2_101, %c0_102] : memref<2x8x32xbf16, #tpu.memory_space<vmem>>, vector<2x1x32xbf16>
    %233 = vector.shape_cast %232 : vector<2x1x32xbf16> to vector<2x32xbf16>
    %234 = vector.shape_cast %231 : vector<2x32xbf16> to vector<2x1x32xbf16>
    tpu.vector_store %arg5[%c0_100, %c2_101, %c0_102], %234 {strides = array<i32>} : memref<2x8x32xbf16, #tpu.memory_space<vmem>>, vector<2x1x32xbf16>,
    %235 = arith.truncf %226 : vector<2x32xf32> to vector<2x32xbf16>
    %c0_103 = arith.constant 0 : index
    %c5_104 = arith.constant 5 : index
    %c0_105 = arith.constant 0 : index
    %236 = vector.load %arg6[%c0_103, %c5_104, %c0_105] : memref<2x8x32xbf16, #tpu.memory_space<vmem>>, vector<2x1x32xbf16>
    %237 = vector.shape_cast %236 : vector<2x1x32xbf16> to vector<2x32xbf16>
    %238 = vector.shape_cast %235 : vector<2x32xbf16> to vector<2x1x32xbf16>
    tpu.vector_store %arg6[%c0_103, %c5_104, %c0_105], %238 {strides = array<i32>} : memref<2x8x32xbf16, #tpu.memory_space<vmem>>, vector<2x1x32xbf16>,
    %c0_106 = arith.constant 0 : index
    %c3 = arith.constant 3 : index
    %c0_107 = arith.constant 0 : index
    %239 = vector.load %arg1[%c0_106, %c3, %c0_107] : memref<2x8x128xbf16, #tpu.memory_space<vmem>>, vector<2x1x128xbf16>
    %240 = vector.shape_cast %239 : vector<2x1x128xbf16> to vector<2x128xbf16>
    %241 = arith.extf %240 : vector<2x128xbf16> to vector<2x128xf32>
    %c0_108 = arith.constant 0 : index
    %c0_109 = arith.constant 0 : index
    %242 = vector.load %arg7[%c0_108, %c0_109] : memref<2x32xf32, #tpu.memory_space<vmem>>, vector<2x32xf32>
    %243 = arith.truncf %242 : vector<2x32xf32> to vector<2x32xbf16>
    %cst_110 = arith.constant dense<0.000000e+00> : vector<2x128xf32>
    %244 = tpu.matmul %243, %3, %cst_110 {dimension_numbers = #tpu.dot_dimension_numbers<[1], [0], [0], [1], [0, 0, 1, 1], [], []>} : vector<2x32xbf16>, vector<32x128xbf16>, vector<2x128xf32> -> vector<2x128xf32>
    %245 = arith.addf %241, %244 : vector<2x128xf32>
    %c0_111 = arith.constant 0 : index
    %c4 = arith.constant 4 : index
    %c0_112 = arith.constant 0 : index
    %246 = vector.load %arg2[%c0_111, %c4, %c0_112] : memref<2x8x128xbf16, #tpu.memory_space<vmem>>, vector<2x1x128xbf16>
    %247 = vector.shape_cast %246 : vector<2x1x128xbf16> to vector<2x128xbf16>
    %248 = arith.extf %247 : vector<2x128xbf16> to vector<2x128xf32>
    %c0_113 = arith.constant 0 : index
    %c0_114 = arith.constant 0 : index
    %249 = vector.load %arg9[%c0_113, %c0_114] : memref<2x32xf32, #tpu.memory_space<vmem>>, vector<2x32xf32>
    %250 = arith.truncf %249 : vector<2x32xf32> to vector<2x32xbf16>
    %cst_115 = arith.constant dense<0.000000e+00> : vector<2x128xf32>
    %251 = tpu.matmul %250, %4, %cst_115 {dimension_numbers = #tpu.dot_dimension_numbers<[1], [0], [0], [1], [0, 0, 1, 1], [], []>} : vector<2x32xbf16>, vector<32x128xbf16>, vector<2x128xf32> -> vector<2x128xf32>
    %252 = arith.addf %248, %251 : vector<2x128xf32>
    %c0_116 = arith.constant 0 : index
    %c0_117 = arith.constant 0 : index
    %253 = vector.load %arg8[%c0_116, %c0_117] : memref<2x32xf32, #tpu.memory_space<vmem>>, vector<2x32xf32>
    %254 = vector.extract_strided_slice %245 {offsets = [0, 0], sizes = [2, 32], strides = [1, 1]} : vector<2x128xf32> to vector<2x32xf32>
    %255 = arith.negf %254 : vector<2x32xf32>
    %256 = math.exp %255 : vector<2x32xf32>
    %cst_118 = arith.constant 1.000000e+00 : f32
    %257 = vector.broadcast %cst_118 : f32 to vector<2x32xf32>
    %258 = arith.addf %257, %256 : vector<2x32xf32>
    %259 = arith.divf %257, %258 : vector<2x32xf32>
    %260 = vector.extract_strided_slice %245 {offsets = [0, 32], sizes = [2, 32], strides = [1, 1]} : vector<2x128xf32> to vector<2x32xf32>
    %261 = arith.negf %260 : vector<2x32xf32>
    %262 = math.exp %261 : vector<2x32xf32>
    %cst_119 = arith.constant 1.000000e+00 : f32
    %263 = vector.broadcast %cst_119 : f32 to vector<2x32xf32>
    %264 = arith.addf %263, %262 : vector<2x32xf32>
    %265 = arith.divf %263, %264 : vector<2x32xf32>
    %266 = vector.extract_strided_slice %245 {offsets = [0, 64], sizes = [2, 32], strides = [1, 1]} : vector<2x128xf32> to vector<2x32xf32>
    %267 = math.tanh %266 : vector<2x32xf32>
    %268 = vector.extract_strided_slice %245 {offsets = [0, 96], sizes = [2, 32], strides = [1, 1]} : vector<2x128xf32> to vector<2x32xf32>
    %269 = arith.negf %268 : vector<2x32xf32>
    %270 = math.exp %269 : vector<2x32xf32>
    %cst_120 = arith.constant 1.000000e+00 : f32
    %271 = vector.broadcast %cst_120 : f32 to vector<2x32xf32>
    %272 = arith.addf %271, %270 : vector<2x32xf32>
    %273 = arith.divf %271, %272 : vector<2x32xf32>
    %274 = arith.mulf %265, %253 : vector<2x32xf32>
    %275 = arith.mulf %259, %267 : vector<2x32xf32>
    %276 = arith.addf %274, %275 : vector<2x32xf32>
    %277 = math.tanh %276 : vector<2x32xf32>
    %278 = arith.mulf %273, %277 : vector<2x32xf32>
    %c0_121 = arith.constant 0 : index
    %c0_122 = arith.constant 0 : index
    %279 = vector.load %arg10[%c0_121, %c0_122] : memref<2x32xf32, #tpu.memory_space<vmem>>, vector<2x32xf32>
    %280 = vector.extract_strided_slice %252 {offsets = [0, 0], sizes = [2, 32], strides = [1, 1]} : vector<2x128xf32> to vector<2x32xf32>
    %281 = arith.negf %280 : vector<2x32xf32>
    %282 = math.exp %281 : vector<2x32xf32>
    %cst_123 = arith.constant 1.000000e+00 : f32
    %283 = vector.broadcast %cst_123 : f32 to vector<2x32xf32>
    %284 = arith.addf %283, %282 : vector<2x32xf32>
    %285 = arith.divf %283, %284 : vector<2x32xf32>
    %286 = vector.extract_strided_slice %252 {offsets = [0, 32], sizes = [2, 32], strides = [1, 1]} : vector<2x128xf32> to vector<2x32xf32>
    %287 = arith.negf %286 : vector<2x32xf32>
    %288 = math.exp %287 : vector<2x32xf32>
    %cst_124 = arith.constant 1.000000e+00 : f32
    %289 = vector.broadcast %cst_124 : f32 to vector<2x32xf32>
    %290 = arith.addf %289, %288 : vector<2x32xf32>
    %291 = arith.divf %289, %290 : vector<2x32xf32>
    %292 = vector.extract_strided_slice %252 {offsets = [0, 64], sizes = [2, 32], strides = [1, 1]} : vector<2x128xf32> to vector<2x32xf32>
    %293 = math.tanh %292 : vector<2x32xf32>
    %294 = vector.extract_strided_slice %252 {offsets = [0, 96], sizes = [2, 32], strides = [1, 1]} : vector<2x128xf32> to vector<2x32xf32>
    %295 = arith.negf %294 : vector<2x32xf32>
    %296 = math.exp %295 : vector<2x32xf32>
    %cst_125 = arith.constant 1.000000e+00 : f32
    %297 = vector.broadcast %cst_125 : f32 to vector<2x32xf32>
    %298 = arith.addf %297, %296 : vector<2x32xf32>
    %299 = arith.divf %297, %298 : vector<2x32xf32>
    %300 = arith.mulf %291, %279 : vector<2x32xf32>
    %301 = arith.mulf %285, %293 : vector<2x32xf32>
    %302 = arith.addf %300, %301 : vector<2x32xf32>
    %303 = math.tanh %302 : vector<2x32xf32>
    %304 = arith.mulf %299, %303 : vector<2x32xf32>
    %c0_126 = arith.constant 0 : index
    %c0_127 = arith.constant 0 : index
    %305 = vector.load %arg7[%c0_126, %c0_127] : memref<2x32xf32, #tpu.memory_space<vmem>>, vector<2x32xf32>
    tpu.vector_store %arg7[%c0_126, %c0_127], %278 {strides = array<i32>} : memref<2x32xf32, #tpu.memory_space<vmem>>, vector<2x32xf32>,
    %c0_128 = arith.constant 0 : index
    %c0_129 = arith.constant 0 : index
    %306 = vector.load %arg8[%c0_128, %c0_129] : memref<2x32xf32, #tpu.memory_space<vmem>>, vector<2x32xf32>
    tpu.vector_store %arg8[%c0_128, %c0_129], %276 {strides = array<i32>} : memref<2x32xf32, #tpu.memory_space<vmem>>, vector<2x32xf32>,
    %c0_130 = arith.constant 0 : index
    %c0_131 = arith.constant 0 : index
    %307 = vector.load %arg9[%c0_130, %c0_131] : memref<2x32xf32, #tpu.memory_space<vmem>>, vector<2x32xf32>
    tpu.vector_store %arg9[%c0_130, %c0_131], %304 {strides = array<i32>} : memref<2x32xf32, #tpu.memory_space<vmem>>, vector<2x32xf32>,
    %c0_132 = arith.constant 0 : index
    %c0_133 = arith.constant 0 : index
    %308 = vector.load %arg10[%c0_132, %c0_133] : memref<2x32xf32, #tpu.memory_space<vmem>>, vector<2x32xf32>
    tpu.vector_store %arg10[%c0_132, %c0_133], %302 {strides = array<i32>} : memref<2x32xf32, #tpu.memory_space<vmem>>, vector<2x32xf32>,
    %309 = arith.truncf %278 : vector<2x32xf32> to vector<2x32xbf16>
    %c0_134 = arith.constant 0 : index
    %c3_135 = arith.constant 3 : index
    %c0_136 = arith.constant 0 : index
    %310 = vector.load %arg5[%c0_134, %c3_135, %c0_136] : memref<2x8x32xbf16, #tpu.memory_space<vmem>>, vector<2x1x32xbf16>
    %311 = vector.shape_cast %310 : vector<2x1x32xbf16> to vector<2x32xbf16>
    %312 = vector.shape_cast %309 : vector<2x32xbf16> to vector<2x1x32xbf16>
    tpu.vector_store %arg5[%c0_134, %c3_135, %c0_136], %312 {strides = array<i32>} : memref<2x8x32xbf16, #tpu.memory_space<vmem>>, vector<2x1x32xbf16>,
    %313 = arith.truncf %304 : vector<2x32xf32> to vector<2x32xbf16>
    %c0_137 = arith.constant 0 : index
    %c4_138 = arith.constant 4 : index
    %c0_139 = arith.constant 0 : index
    %314 = vector.load %arg6[%c0_137, %c4_138, %c0_139] : memref<2x8x32xbf16, #tpu.memory_space<vmem>>, vector<2x1x32xbf16>
    %315 = vector.shape_cast %314 : vector<2x1x32xbf16> to vector<2x32xbf16>
    %316 = vector.shape_cast %313 : vector<2x32xbf16> to vector<2x1x32xbf16>
    tpu.vector_store %arg6[%c0_137, %c4_138, %c0_139], %316 {strides = array<i32>} : memref<2x8x32xbf16, #tpu.memory_space<vmem>>, vector<2x1x32xbf16>,
    %c0_140 = arith.constant 0 : index
    %c4_141 = arith.constant 4 : index
    %c0_142 = arith.constant 0 : index
    %317 = vector.load %arg1[%c0_140, %c4_141, %c0_142] : memref<2x8x128xbf16, #tpu.memory_space<vmem>>, vector<2x1x128xbf16>
    %318 = vector.shape_cast %317 : vector<2x1x128xbf16> to vector<2x128xbf16>
    %319 = arith.extf %318 : vector<2x128xbf16> to vector<2x128xf32>
    %c0_143 = arith.constant 0 : index
    %c0_144 = arith.constant 0 : index
    %320 = vector.load %arg7[%c0_143, %c0_144] : memref<2x32xf32, #tpu.memory_space<vmem>>, vector<2x32xf32>
    %321 = arith.truncf %320 : vector<2x32xf32> to vector<2x32xbf16>
    %cst_145 = arith.constant dense<0.000000e+00> : vector<2x128xf32>
    %322 = tpu.matmul %321, %3, %cst_145 {dimension_numbers = #tpu.dot_dimension_numbers<[1], [0], [0], [1], [0, 0, 1, 1], [], []>} : vector<2x32xbf16>, vector<32x128xbf16>, vector<2x128xf32> -> vector<2x128xf32>
    %323 = arith.addf %319, %322 : vector<2x128xf32>
    %c0_146 = arith.constant 0 : index
    %c3_147 = arith.constant 3 : index
    %c0_148 = arith.constant 0 : index
    %324 = vector.load %arg2[%c0_146, %c3_147, %c0_148] : memref<2x8x128xbf16, #tpu.memory_space<vmem>>, vector<2x1x128xbf16>
    %325 = vector.shape_cast %324 : vector<2x1x128xbf16> to vector<2x128xbf16>
    %326 = arith.extf %325 : vector<2x128xbf16> to vector<2x128xf32>
    %c0_149 = arith.constant 0 : index
    %c0_150 = arith.constant 0 : index
    %327 = vector.load %arg9[%c0_149, %c0_150] : memref<2x32xf32, #tpu.memory_space<vmem>>, vector<2x32xf32>
    %328 = arith.truncf %327 : vector<2x32xf32> to vector<2x32xbf16>
    %cst_151 = arith.constant dense<0.000000e+00> : vector<2x128xf32>
    %329 = tpu.matmul %328, %4, %cst_151 {dimension_numbers = #tpu.dot_dimension_numbers<[1], [0], [0], [1], [0, 0, 1, 1], [], []>} : vector<2x32xbf16>, vector<32x128xbf16>, vector<2x128xf32> -> vector<2x128xf32>
    %330 = arith.addf %326, %329 : vector<2x128xf32>
    %c0_152 = arith.constant 0 : index
    %c0_153 = arith.constant 0 : index
    %331 = vector.load %arg8[%c0_152, %c0_153] : memref<2x32xf32, #tpu.memory_space<vmem>>, vector<2x32xf32>
    %332 = vector.extract_strided_slice %323 {offsets = [0, 0], sizes = [2, 32], strides = [1, 1]} : vector<2x128xf32> to vector<2x32xf32>
    %333 = arith.negf %332 : vector<2x32xf32>
    %334 = math.exp %333 : vector<2x32xf32>
    %cst_154 = arith.constant 1.000000e+00 : f32
    %335 = vector.broadcast %cst_154 : f32 to vector<2x32xf32>
    %336 = arith.addf %335, %334 : vector<2x32xf32>
    %337 = arith.divf %335, %336 : vector<2x32xf32>
    %338 = vector.extract_strided_slice %323 {offsets = [0, 32], sizes = [2, 32], strides = [1, 1]} : vector<2x128xf32> to vector<2x32xf32>
    %339 = arith.negf %338 : vector<2x32xf32>
    %340 = math.exp %339 : vector<2x32xf32>
    %cst_155 = arith.constant 1.000000e+00 : f32
    %341 = vector.broadcast %cst_155 : f32 to vector<2x32xf32>
    %342 = arith.addf %341, %340 : vector<2x32xf32>
    %343 = arith.divf %341, %342 : vector<2x32xf32>
    %344 = vector.extract_strided_slice %323 {offsets = [0, 64], sizes = [2, 32], strides = [1, 1]} : vector<2x128xf32> to vector<2x32xf32>
    %345 = math.tanh %344 : vector<2x32xf32>
    %346 = vector.extract_strided_slice %323 {offsets = [0, 96], sizes = [2, 32], strides = [1, 1]} : vector<2x128xf32> to vector<2x32xf32>
    %347 = arith.negf %346 : vector<2x32xf32>
    %348 = math.exp %347 : vector<2x32xf32>
    %cst_156 = arith.constant 1.000000e+00 : f32
    %349 = vector.broadcast %cst_156 : f32 to vector<2x32xf32>
    %350 = arith.addf %349, %348 : vector<2x32xf32>
    %351 = arith.divf %349, %350 : vector<2x32xf32>
    %352 = arith.mulf %343, %331 : vector<2x32xf32>
    %353 = arith.mulf %337, %345 : vector<2x32xf32>
    %354 = arith.addf %352, %353 : vector<2x32xf32>
    %355 = math.tanh %354 : vector<2x32xf32>
    %356 = arith.mulf %351, %355 : vector<2x32xf32>
    %c0_157 = arith.constant 0 : index
    %c0_158 = arith.constant 0 : index
    %357 = vector.load %arg10[%c0_157, %c0_158] : memref<2x32xf32, #tpu.memory_space<vmem>>, vector<2x32xf32>
    %358 = vector.extract_strided_slice %330 {offsets = [0, 0], sizes = [2, 32], strides = [1, 1]} : vector<2x128xf32> to vector<2x32xf32>
    %359 = arith.negf %358 : vector<2x32xf32>
    %360 = math.exp %359 : vector<2x32xf32>
    %cst_159 = arith.constant 1.000000e+00 : f32
    %361 = vector.broadcast %cst_159 : f32 to vector<2x32xf32>
    %362 = arith.addf %361, %360 : vector<2x32xf32>
    %363 = arith.divf %361, %362 : vector<2x32xf32>
    %364 = vector.extract_strided_slice %330 {offsets = [0, 32], sizes = [2, 32], strides = [1, 1]} : vector<2x128xf32> to vector<2x32xf32>
    %365 = arith.negf %364 : vector<2x32xf32>
    %366 = math.exp %365 : vector<2x32xf32>
    %cst_160 = arith.constant 1.000000e+00 : f32
    %367 = vector.broadcast %cst_160 : f32 to vector<2x32xf32>
    %368 = arith.addf %367, %366 : vector<2x32xf32>
    %369 = arith.divf %367, %368 : vector<2x32xf32>
    %370 = vector.extract_strided_slice %330 {offsets = [0, 64], sizes = [2, 32], strides = [1, 1]} : vector<2x128xf32> to vector<2x32xf32>
    %371 = math.tanh %370 : vector<2x32xf32>
    %372 = vector.extract_strided_slice %330 {offsets = [0, 96], sizes = [2, 32], strides = [1, 1]} : vector<2x128xf32> to vector<2x32xf32>
    %373 = arith.negf %372 : vector<2x32xf32>
    %374 = math.exp %373 : vector<2x32xf32>
    %cst_161 = arith.constant 1.000000e+00 : f32
    %375 = vector.broadcast %cst_161 : f32 to vector<2x32xf32>
    %376 = arith.addf %375, %374 : vector<2x32xf32>
    %377 = arith.divf %375, %376 : vector<2x32xf32>
    %378 = arith.mulf %369, %357 : vector<2x32xf32>
    %379 = arith.mulf %363, %371 : vector<2x32xf32>
    %380 = arith.addf %378, %379 : vector<2x32xf32>
    %381 = math.tanh %380 : vector<2x32xf32>
    %382 = arith.mulf %377, %381 : vector<2x32xf32>
    %c0_162 = arith.constant 0 : index
    %c0_163 = arith.constant 0 : index
    %383 = vector.load %arg7[%c0_162, %c0_163] : memref<2x32xf32, #tpu.memory_space<vmem>>, vector<2x32xf32>
    tpu.vector_store %arg7[%c0_162, %c0_163], %356 {strides = array<i32>} : memref<2x32xf32, #tpu.memory_space<vmem>>, vector<2x32xf32>,
    %c0_164 = arith.constant 0 : index
    %c0_165 = arith.constant 0 : index
    %384 = vector.load %arg8[%c0_164, %c0_165] : memref<2x32xf32, #tpu.memory_space<vmem>>, vector<2x32xf32>
    tpu.vector_store %arg8[%c0_164, %c0_165], %354 {strides = array<i32>} : memref<2x32xf32, #tpu.memory_space<vmem>>, vector<2x32xf32>,
    %c0_166 = arith.constant 0 : index
    %c0_167 = arith.constant 0 : index
    %385 = vector.load %arg9[%c0_166, %c0_167] : memref<2x32xf32, #tpu.memory_space<vmem>>, vector<2x32xf32>
    tpu.vector_store %arg9[%c0_166, %c0_167], %382 {strides = array<i32>} : memref<2x32xf32, #tpu.memory_space<vmem>>, vector<2x32xf32>,
    %c0_168 = arith.constant 0 : index
    %c0_169 = arith.constant 0 : index
    %386 = vector.load %arg10[%c0_168, %c0_169] : memref<2x32xf32, #tpu.memory_space<vmem>>, vector<2x32xf32>
    tpu.vector_store %arg10[%c0_168, %c0_169], %380 {strides = array<i32>} : memref<2x32xf32, #tpu.memory_space<vmem>>, vector<2x32xf32>,
    %387 = arith.truncf %356 : vector<2x32xf32> to vector<2x32xbf16>
    %c0_170 = arith.constant 0 : index
    %c4_171 = arith.constant 4 : index
    %c0_172 = arith.constant 0 : index
    %388 = vector.load %arg5[%c0_170, %c4_171, %c0_172] : memref<2x8x32xbf16, #tpu.memory_space<vmem>>, vector<2x1x32xbf16>
    %389 = vector.shape_cast %388 : vector<2x1x32xbf16> to vector<2x32xbf16>
    %390 = vector.shape_cast %387 : vector<2x32xbf16> to vector<2x1x32xbf16>
    tpu.vector_store %arg5[%c0_170, %c4_171, %c0_172], %390 {strides = array<i32>} : memref<2x8x32xbf16, #tpu.memory_space<vmem>>, vector<2x1x32xbf16>,
    %391 = arith.truncf %382 : vector<2x32xf32> to vector<2x32xbf16>
    %c0_173 = arith.constant 0 : index
    %c3_174 = arith.constant 3 : index
    %c0_175 = arith.constant 0 : index
    %392 = vector.load %arg6[%c0_173, %c3_174, %c0_175] : memref<2x8x32xbf16, #tpu.memory_space<vmem>>, vector<2x1x32xbf16>
    %393 = vector.shape_cast %392 : vector<2x1x32xbf16> to vector<2x32xbf16>
    %394 = vector.shape_cast %391 : vector<2x32xbf16> to vector<2x1x32xbf16>
    tpu.vector_store %arg6[%c0_173, %c3_174, %c0_175], %394 {strides = array<i32>} : memref<2x8x32xbf16, #tpu.memory_space<vmem>>, vector<2x1x32xbf16>,
    %c0_176 = arith.constant 0 : index
    %c5_177 = arith.constant 5 : index
    %c0_178 = arith.constant 0 : index
    %395 = vector.load %arg1[%c0_176, %c5_177, %c0_178] : memref<2x8x128xbf16, #tpu.memory_space<vmem>>, vector<2x1x128xbf16>
    %396 = vector.shape_cast %395 : vector<2x1x128xbf16> to vector<2x128xbf16>
    %397 = arith.extf %396 : vector<2x128xbf16> to vector<2x128xf32>
    %c0_179 = arith.constant 0 : index
    %c0_180 = arith.constant 0 : index
    %398 = vector.load %arg7[%c0_179, %c0_180] : memref<2x32xf32, #tpu.memory_space<vmem>>, vector<2x32xf32>
    %399 = arith.truncf %398 : vector<2x32xf32> to vector<2x32xbf16>
    %cst_181 = arith.constant dense<0.000000e+00> : vector<2x128xf32>
    %400 = tpu.matmul %399, %3, %cst_181 {dimension_numbers = #tpu.dot_dimension_numbers<[1], [0], [0], [1], [0, 0, 1, 1], [], []>} : vector<2x32xbf16>, vector<32x128xbf16>, vector<2x128xf32> -> vector<2x128xf32>
    %401 = arith.addf %397, %400 : vector<2x128xf32>
    %c0_182 = arith.constant 0 : index
    %c2_183 = arith.constant 2 : index
    %c0_184 = arith.constant 0 : index
    %402 = vector.load %arg2[%c0_182, %c2_183, %c0_184] : memref<2x8x128xbf16, #tpu.memory_space<vmem>>, vector<2x1x128xbf16>
    %403 = vector.shape_cast %402 : vector<2x1x128xbf16> to vector<2x128xbf16>
    %404 = arith.extf %403 : vector<2x128xbf16> to vector<2x128xf32>
    %c0_185 = arith.constant 0 : index
    %c0_186 = arith.constant 0 : index
    %405 = vector.load %arg9[%c0_185, %c0_186] : memref<2x32xf32, #tpu.memory_space<vmem>>, vector<2x32xf32>
    %406 = arith.truncf %405 : vector<2x32xf32> to vector<2x32xbf16>
    %cst_187 = arith.constant dense<0.000000e+00> : vector<2x128xf32>
    %407 = tpu.matmul %406, %4, %cst_187 {dimension_numbers = #tpu.dot_dimension_numbers<[1], [0], [0], [1], [0, 0, 1, 1], [], []>} : vector<2x32xbf16>, vector<32x128xbf16>, vector<2x128xf32> -> vector<2x128xf32>
    %408 = arith.addf %404, %407 : vector<2x128xf32>
    %c0_188 = arith.constant 0 : index
    %c0_189 = arith.constant 0 : index
    %409 = vector.load %arg8[%c0_188, %c0_189] : memref<2x32xf32, #tpu.memory_space<vmem>>, vector<2x32xf32>
    %410 = vector.extract_strided_slice %401 {offsets = [0, 0], sizes = [2, 32], strides = [1, 1]} : vector<2x128xf32> to vector<2x32xf32>
    %411 = arith.negf %410 : vector<2x32xf32>
    %412 = math.exp %411 : vector<2x32xf32>
    %cst_190 = arith.constant 1.000000e+00 : f32
    %413 = vector.broadcast %cst_190 : f32 to vector<2x32xf32>
    %414 = arith.addf %413, %412 : vector<2x32xf32>
    %415 = arith.divf %413, %414 : vector<2x32xf32>
    %416 = vector.extract_strided_slice %401 {offsets = [0, 32], sizes = [2, 32], strides = [1, 1]} : vector<2x128xf32> to vector<2x32xf32>
    %417 = arith.negf %416 : vector<2x32xf32>
    %418 = math.exp %417 : vector<2x32xf32>
    %cst_191 = arith.constant 1.000000e+00 : f32
    %419 = vector.broadcast %cst_191 : f32 to vector<2x32xf32>
    %420 = arith.addf %419, %418 : vector<2x32xf32>
    %421 = arith.divf %419, %420 : vector<2x32xf32>
    %422 = vector.extract_strided_slice %401 {offsets = [0, 64], sizes = [2, 32], strides = [1, 1]} : vector<2x128xf32> to vector<2x32xf32>
    %423 = math.tanh %422 : vector<2x32xf32>
    %424 = vector.extract_strided_slice %401 {offsets = [0, 96], sizes = [2, 32], strides = [1, 1]} : vector<2x128xf32> to vector<2x32xf32>
    %425 = arith.negf %424 : vector<2x32xf32>
    %426 = math.exp %425 : vector<2x32xf32>
    %cst_192 = arith.constant 1.000000e+00 : f32
    %427 = vector.broadcast %cst_192 : f32 to vector<2x32xf32>
    %428 = arith.addf %427, %426 : vector<2x32xf32>
    %429 = arith.divf %427, %428 : vector<2x32xf32>
    %430 = arith.mulf %421, %409 : vector<2x32xf32>
    %431 = arith.mulf %415, %423 : vector<2x32xf32>
    %432 = arith.addf %430, %431 : vector<2x32xf32>
    %433 = math.tanh %432 : vector<2x32xf32>
    %434 = arith.mulf %429, %433 : vector<2x32xf32>
    %c0_193 = arith.constant 0 : index
    %c0_194 = arith.constant 0 : index
    %435 = vector.load %arg10[%c0_193, %c0_194] : memref<2x32xf32, #tpu.memory_space<vmem>>, vector<2x32xf32>
    %436 = vector.extract_strided_slice %408 {offsets = [0, 0], sizes = [2, 32], strides = [1, 1]} : vector<2x128xf32> to vector<2x32xf32>
    %437 = arith.negf %436 : vector<2x32xf32>
    %438 = math.exp %437 : vector<2x32xf32>
    %cst_195 = arith.constant 1.000000e+00 : f32
    %439 = vector.broadcast %cst_195 : f32 to vector<2x32xf32>
    %440 = arith.addf %439, %438 : vector<2x32xf32>
    %441 = arith.divf %439, %440 : vector<2x32xf32>
    %442 = vector.extract_strided_slice %408 {offsets = [0, 32], sizes = [2, 32], strides = [1, 1]} : vector<2x128xf32> to vector<2x32xf32>
    %443 = arith.negf %442 : vector<2x32xf32>
    %444 = math.exp %443 : vector<2x32xf32>
    %cst_196 = arith.constant 1.000000e+00 : f32
    %445 = vector.broadcast %cst_196 : f32 to vector<2x32xf32>
    %446 = arith.addf %445, %444 : vector<2x32xf32>
    %447 = arith.divf %445, %446 : vector<2x32xf32>
    %448 = vector.extract_strided_slice %408 {offsets = [0, 64], sizes = [2, 32], strides = [1, 1]} : vector<2x128xf32> to vector<2x32xf32>
    %449 = math.tanh %448 : vector<2x32xf32>
    %450 = vector.extract_strided_slice %408 {offsets = [0, 96], sizes = [2, 32], strides = [1, 1]} : vector<2x128xf32> to vector<2x32xf32>
    %451 = arith.negf %450 : vector<2x32xf32>
    %452 = math.exp %451 : vector<2x32xf32>
    %cst_197 = arith.constant 1.000000e+00 : f32
    %453 = vector.broadcast %cst_197 : f32 to vector<2x32xf32>
    %454 = arith.addf %453, %452 : vector<2x32xf32>
    %455 = arith.divf %453, %454 : vector<2x32xf32>
    %456 = arith.mulf %447, %435 : vector<2x32xf32>
    %457 = arith.mulf %441, %449 : vector<2x32xf32>
    %458 = arith.addf %456, %457 : vector<2x32xf32>
    %459 = math.tanh %458 : vector<2x32xf32>
    %460 = arith.mulf %455, %459 : vector<2x32xf32>
    %c0_198 = arith.constant 0 : index
    %c0_199 = arith.constant 0 : index
    %461 = vector.load %arg7[%c0_198, %c0_199] : memref<2x32xf32, #tpu.memory_space<vmem>>, vector<2x32xf32>
    tpu.vector_store %arg7[%c0_198, %c0_199], %434 {strides = array<i32>} : memref<2x32xf32, #tpu.memory_space<vmem>>, vector<2x32xf32>,
    %c0_200 = arith.constant 0 : index
    %c0_201 = arith.constant 0 : index
    %462 = vector.load %arg8[%c0_200, %c0_201] : memref<2x32xf32, #tpu.memory_space<vmem>>, vector<2x32xf32>
    tpu.vector_store %arg8[%c0_200, %c0_201], %432 {strides = array<i32>} : memref<2x32xf32, #tpu.memory_space<vmem>>, vector<2x32xf32>,
    %c0_202 = arith.constant 0 : index
    %c0_203 = arith.constant 0 : index
    %463 = vector.load %arg9[%c0_202, %c0_203] : memref<2x32xf32, #tpu.memory_space<vmem>>, vector<2x32xf32>
    tpu.vector_store %arg9[%c0_202, %c0_203], %460 {strides = array<i32>} : memref<2x32xf32, #tpu.memory_space<vmem>>, vector<2x32xf32>,
    %c0_204 = arith.constant 0 : index
    %c0_205 = arith.constant 0 : index
    %464 = vector.load %arg10[%c0_204, %c0_205] : memref<2x32xf32, #tpu.memory_space<vmem>>, vector<2x32xf32>
    tpu.vector_store %arg10[%c0_204, %c0_205], %458 {strides = array<i32>} : memref<2x32xf32, #tpu.memory_space<vmem>>, vector<2x32xf32>,
    %465 = arith.truncf %434 : vector<2x32xf32> to vector<2x32xbf16>
    %c0_206 = arith.constant 0 : index
    %c5_207 = arith.constant 5 : index
    %c0_208 = arith.constant 0 : index
    %466 = vector.load %arg5[%c0_206, %c5_207, %c0_208] : memref<2x8x32xbf16, #tpu.memory_space<vmem>>, vector<2x1x32xbf16>
    %467 = vector.shape_cast %466 : vector<2x1x32xbf16> to vector<2x32xbf16>
    %468 = vector.shape_cast %465 : vector<2x32xbf16> to vector<2x1x32xbf16>
    tpu.vector_store %arg5[%c0_206, %c5_207, %c0_208], %468 {strides = array<i32>} : memref<2x8x32xbf16, #tpu.memory_space<vmem>>, vector<2x1x32xbf16>,
    %469 = arith.truncf %460 : vector<2x32xf32> to vector<2x32xbf16>
    %c0_209 = arith.constant 0 : index
    %c2_210 = arith.constant 2 : index
    %c0_211 = arith.constant 0 : index
    %470 = vector.load %arg6[%c0_209, %c2_210, %c0_211] : memref<2x8x32xbf16, #tpu.memory_space<vmem>>, vector<2x1x32xbf16>
    %471 = vector.shape_cast %470 : vector<2x1x32xbf16> to vector<2x32xbf16>
    %472 = vector.shape_cast %469 : vector<2x32xbf16> to vector<2x1x32xbf16>
    tpu.vector_store %arg6[%c0_209, %c2_210, %c0_211], %472 {strides = array<i32>} : memref<2x8x32xbf16, #tpu.memory_space<vmem>>, vector<2x1x32xbf16>,
    %c0_212 = arith.constant 0 : index
    %c6_213 = arith.constant 6 : index
    %c0_214 = arith.constant 0 : index
    %473 = vector.load %arg1[%c0_212, %c6_213, %c0_214] : memref<2x8x128xbf16, #tpu.memory_space<vmem>>, vector<2x1x128xbf16>
    %474 = vector.shape_cast %473 : vector<2x1x128xbf16> to vector<2x128xbf16>
    %475 = arith.extf %474 : vector<2x128xbf16> to vector<2x128xf32>
    %c0_215 = arith.constant 0 : index
    %c0_216 = arith.constant 0 : index
    %476 = vector.load %arg7[%c0_215, %c0_216] : memref<2x32xf32, #tpu.memory_space<vmem>>, vector<2x32xf32>
    %477 = arith.truncf %476 : vector<2x32xf32> to vector<2x32xbf16>
    %cst_217 = arith.constant dense<0.000000e+00> : vector<2x128xf32>
    %478 = tpu.matmul %477, %3, %cst_217 {dimension_numbers = #tpu.dot_dimension_numbers<[1], [0], [0], [1], [0, 0, 1, 1], [], []>} : vector<2x32xbf16>, vector<32x128xbf16>, vector<2x128xf32> -> vector<2x128xf32>
    %479 = arith.addf %475, %478 : vector<2x128xf32>
    %c0_218 = arith.constant 0 : index
    %c1_219 = arith.constant 1 : index
    %c0_220 = arith.constant 0 : index
    %480 = vector.load %arg2[%c0_218, %c1_219, %c0_220] : memref<2x8x128xbf16, #tpu.memory_space<vmem>>, vector<2x1x128xbf16>
    %481 = vector.shape_cast %480 : vector<2x1x128xbf16> to vector<2x128xbf16>
    %482 = arith.extf %481 : vector<2x128xbf16> to vector<2x128xf32>
    %c0_221 = arith.constant 0 : index
    %c0_222 = arith.constant 0 : index
    %483 = vector.load %arg9[%c0_221, %c0_222] : memref<2x32xf32, #tpu.memory_space<vmem>>, vector<2x32xf32>
    %484 = arith.truncf %483 : vector<2x32xf32> to vector<2x32xbf16>
    %cst_223 = arith.constant dense<0.000000e+00> : vector<2x128xf32>
    %485 = tpu.matmul %484, %4, %cst_223 {dimension_numbers = #tpu.dot_dimension_numbers<[1], [0], [0], [1], [0, 0, 1, 1], [], []>} : vector<2x32xbf16>, vector<32x128xbf16>, vector<2x128xf32> -> vector<2x128xf32>
    %486 = arith.addf %482, %485 : vector<2x128xf32>
    %c0_224 = arith.constant 0 : index
    %c0_225 = arith.constant 0 : index
    %487 = vector.load %arg8[%c0_224, %c0_225] : memref<2x32xf32, #tpu.memory_space<vmem>>, vector<2x32xf32>
    %488 = vector.extract_strided_slice %479 {offsets = [0, 0], sizes = [2, 32], strides = [1, 1]} : vector<2x128xf32> to vector<2x32xf32>
    %489 = arith.negf %488 : vector<2x32xf32>
    %490 = math.exp %489 : vector<2x32xf32>
    %cst_226 = arith.constant 1.000000e+00 : f32
    %491 = vector.broadcast %cst_226 : f32 to vector<2x32xf32>
    %492 = arith.addf %491, %490 : vector<2x32xf32>
    %493 = arith.divf %491, %492 : vector<2x32xf32>
    %494 = vector.extract_strided_slice %479 {offsets = [0, 32], sizes = [2, 32], strides = [1, 1]} : vector<2x128xf32> to vector<2x32xf32>
    %495 = arith.negf %494 : vector<2x32xf32>
    %496 = math.exp %495 : vector<2x32xf32>
    %cst_227 = arith.constant 1.000000e+00 : f32
    %497 = vector.broadcast %cst_227 : f32 to vector<2x32xf32>
    %498 = arith.addf %497, %496 : vector<2x32xf32>
    %499 = arith.divf %497, %498 : vector<2x32xf32>
    %500 = vector.extract_strided_slice %479 {offsets = [0, 64], sizes = [2, 32], strides = [1, 1]} : vector<2x128xf32> to vector<2x32xf32>
    %501 = math.tanh %500 : vector<2x32xf32>
    %502 = vector.extract_strided_slice %479 {offsets = [0, 96], sizes = [2, 32], strides = [1, 1]} : vector<2x128xf32> to vector<2x32xf32>
    %503 = arith.negf %502 : vector<2x32xf32>
    %504 = math.exp %503 : vector<2x32xf32>
    %cst_228 = arith.constant 1.000000e+00 : f32
    %505 = vector.broadcast %cst_228 : f32 to vector<2x32xf32>
    %506 = arith.addf %505, %504 : vector<2x32xf32>
    %507 = arith.divf %505, %506 : vector<2x32xf32>
    %508 = arith.mulf %499, %487 : vector<2x32xf32>
    %509 = arith.mulf %493, %501 : vector<2x32xf32>
    %510 = arith.addf %508, %509 : vector<2x32xf32>
    %511 = math.tanh %510 : vector<2x32xf32>
    %512 = arith.mulf %507, %511 : vector<2x32xf32>
    %c0_229 = arith.constant 0 : index
    %c0_230 = arith.constant 0 : index
    %513 = vector.load %arg10[%c0_229, %c0_230] : memref<2x32xf32, #tpu.memory_space<vmem>>, vector<2x32xf32>
    %514 = vector.extract_strided_slice %486 {offsets = [0, 0], sizes = [2, 32], strides = [1, 1]} : vector<2x128xf32> to vector<2x32xf32>
    %515 = arith.negf %514 : vector<2x32xf32>
    %516 = math.exp %515 : vector<2x32xf32>
    %cst_231 = arith.constant 1.000000e+00 : f32
    %517 = vector.broadcast %cst_231 : f32 to vector<2x32xf32>
    %518 = arith.addf %517, %516 : vector<2x32xf32>
    %519 = arith.divf %517, %518 : vector<2x32xf32>
    %520 = vector.extract_strided_slice %486 {offsets = [0, 32], sizes = [2, 32], strides = [1, 1]} : vector<2x128xf32> to vector<2x32xf32>
    %521 = arith.negf %520 : vector<2x32xf32>
    %522 = math.exp %521 : vector<2x32xf32>
    %cst_232 = arith.constant 1.000000e+00 : f32
    %523 = vector.broadcast %cst_232 : f32 to vector<2x32xf32>
    %524 = arith.addf %523, %522 : vector<2x32xf32>
    %525 = arith.divf %523, %524 : vector<2x32xf32>
    %526 = vector.extract_strided_slice %486 {offsets = [0, 64], sizes = [2, 32], strides = [1, 1]} : vector<2x128xf32> to vector<2x32xf32>
    %527 = math.tanh %526 : vector<2x32xf32>
    %528 = vector.extract_strided_slice %486 {offsets = [0, 96], sizes = [2, 32], strides = [1, 1]} : vector<2x128xf32> to vector<2x32xf32>
    %529 = arith.negf %528 : vector<2x32xf32>
    %530 = math.exp %529 : vector<2x32xf32>
    %cst_233 = arith.constant 1.000000e+00 : f32
    %531 = vector.broadcast %cst_233 : f32 to vector<2x32xf32>
    %532 = arith.addf %531, %530 : vector<2x32xf32>
    %533 = arith.divf %531, %532 : vector<2x32xf32>
    %534 = arith.mulf %525, %513 : vector<2x32xf32>
    %535 = arith.mulf %519, %527 : vector<2x32xf32>
    %536 = arith.addf %534, %535 : vector<2x32xf32>
    %537 = math.tanh %536 : vector<2x32xf32>
    %538 = arith.mulf %533, %537 : vector<2x32xf32>
    %c0_234 = arith.constant 0 : index
    %c0_235 = arith.constant 0 : index
    %539 = vector.load %arg7[%c0_234, %c0_235] : memref<2x32xf32, #tpu.memory_space<vmem>>, vector<2x32xf32>
    tpu.vector_store %arg7[%c0_234, %c0_235], %512 {strides = array<i32>} : memref<2x32xf32, #tpu.memory_space<vmem>>, vector<2x32xf32>,
    %c0_236 = arith.constant 0 : index
    %c0_237 = arith.constant 0 : index
    %540 = vector.load %arg8[%c0_236, %c0_237] : memref<2x32xf32, #tpu.memory_space<vmem>>, vector<2x32xf32>
    tpu.vector_store %arg8[%c0_236, %c0_237], %510 {strides = array<i32>} : memref<2x32xf32, #tpu.memory_space<vmem>>, vector<2x32xf32>,
    %c0_238 = arith.constant 0 : index
    %c0_239 = arith.constant 0 : index
    %541 = vector.load %arg9[%c0_238, %c0_239] : memref<2x32xf32, #tpu.memory_space<vmem>>, vector<2x32xf32>
    tpu.vector_store %arg9[%c0_238, %c0_239], %538 {strides = array<i32>} : memref<2x32xf32, #tpu.memory_space<vmem>>, vector<2x32xf32>,
    %c0_240 = arith.constant 0 : index
    %c0_241 = arith.constant 0 : index
    %542 = vector.load %arg10[%c0_240, %c0_241] : memref<2x32xf32, #tpu.memory_space<vmem>>, vector<2x32xf32>
    tpu.vector_store %arg10[%c0_240, %c0_241], %536 {strides = array<i32>} : memref<2x32xf32, #tpu.memory_space<vmem>>, vector<2x32xf32>,
    %543 = arith.truncf %512 : vector<2x32xf32> to vector<2x32xbf16>
    %c0_242 = arith.constant 0 : index
    %c6_243 = arith.constant 6 : index
    %c0_244 = arith.constant 0 : index
    %544 = vector.load %arg5[%c0_242, %c6_243, %c0_244] : memref<2x8x32xbf16, #tpu.memory_space<vmem>>, vector<2x1x32xbf16>
    %545 = vector.shape_cast %544 : vector<2x1x32xbf16> to vector<2x32xbf16>
    %546 = vector.shape_cast %543 : vector<2x32xbf16> to vector<2x1x32xbf16>
    tpu.vector_store %arg5[%c0_242, %c6_243, %c0_244], %546 {strides = array<i32>} : memref<2x8x32xbf16, #tpu.memory_space<vmem>>, vector<2x1x32xbf16>,
    %547 = arith.truncf %538 : vector<2x32xf32> to vector<2x32xbf16>
    %c0_245 = arith.constant 0 : index
    %c1_246 = arith.constant 1 : index
    %c0_247 = arith.constant 0 : index
    %548 = vector.load %arg6[%c0_245, %c1_246, %c0_247] : memref<2x8x32xbf16, #tpu.memory_space<vmem>>, vector<2x1x32xbf16>
    %549 = vector.shape_cast %548 : vector<2x1x32xbf16> to vector<2x32xbf16>
    %550 = vector.shape_cast %547 : vector<2x32xbf16> to vector<2x1x32xbf16>
    tpu.vector_store %arg6[%c0_245, %c1_246, %c0_247], %550 {strides = array<i32>} : memref<2x8x32xbf16, #tpu.memory_space<vmem>>, vector<2x1x32xbf16>,
    %c0_248 = arith.constant 0 : index
    %c7_249 = arith.constant 7 : index
    %c0_250 = arith.constant 0 : index
    %551 = vector.load %arg1[%c0_248, %c7_249, %c0_250] : memref<2x8x128xbf16, #tpu.memory_space<vmem>>, vector<2x1x128xbf16>
    %552 = vector.shape_cast %551 : vector<2x1x128xbf16> to vector<2x128xbf16>
    %553 = arith.extf %552 : vector<2x128xbf16> to vector<2x128xf32>
    %c0_251 = arith.constant 0 : index
    %c0_252 = arith.constant 0 : index
    %554 = vector.load %arg7[%c0_251, %c0_252] : memref<2x32xf32, #tpu.memory_space<vmem>>, vector<2x32xf32>
    %555 = arith.truncf %554 : vector<2x32xf32> to vector<2x32xbf16>
    %cst_253 = arith.constant dense<0.000000e+00> : vector<2x128xf32>
    %556 = tpu.matmul %555, %3, %cst_253 {dimension_numbers = #tpu.dot_dimension_numbers<[1], [0], [0], [1], [0, 0, 1, 1], [], []>} : vector<2x32xbf16>, vector<32x128xbf16>, vector<2x128xf32> -> vector<2x128xf32>
    %557 = arith.addf %553, %556 : vector<2x128xf32>
    %c0_254 = arith.constant 0 : index
    %c0_255 = arith.constant 0 : index
    %c0_256 = arith.constant 0 : index
    %558 = vector.load %arg2[%c0_254, %c0_255, %c0_256] : memref<2x8x128xbf16, #tpu.memory_space<vmem>>, vector<2x1x128xbf16>
    %559 = vector.shape_cast %558 : vector<2x1x128xbf16> to vector<2x128xbf16>
    %560 = arith.extf %559 : vector<2x128xbf16> to vector<2x128xf32>
    %c0_257 = arith.constant 0 : index
    %c0_258 = arith.constant 0 : index
    %561 = vector.load %arg9[%c0_257, %c0_258] : memref<2x32xf32, #tpu.memory_space<vmem>>, vector<2x32xf32>
    %562 = arith.truncf %561 : vector<2x32xf32> to vector<2x32xbf16>
    %cst_259 = arith.constant dense<0.000000e+00> : vector<2x128xf32>
    %563 = tpu.matmul %562, %4, %cst_259 {dimension_numbers = #tpu.dot_dimension_numbers<[1], [0], [0], [1], [0, 0, 1, 1], [], []>} : vector<2x32xbf16>, vector<32x128xbf16>, vector<2x128xf32> -> vector<2x128xf32>
    %564 = arith.addf %560, %563 : vector<2x128xf32>
    %c0_260 = arith.constant 0 : index
    %c0_261 = arith.constant 0 : index
    %565 = vector.load %arg8[%c0_260, %c0_261] : memref<2x32xf32, #tpu.memory_space<vmem>>, vector<2x32xf32>
    %566 = vector.extract_strided_slice %557 {offsets = [0, 0], sizes = [2, 32], strides = [1, 1]} : vector<2x128xf32> to vector<2x32xf32>
    %567 = arith.negf %566 : vector<2x32xf32>
    %568 = math.exp %567 : vector<2x32xf32>
    %cst_262 = arith.constant 1.000000e+00 : f32
    %569 = vector.broadcast %cst_262 : f32 to vector<2x32xf32>
    %570 = arith.addf %569, %568 : vector<2x32xf32>
    %571 = arith.divf %569, %570 : vector<2x32xf32>
    %572 = vector.extract_strided_slice %557 {offsets = [0, 32], sizes = [2, 32], strides = [1, 1]} : vector<2x128xf32> to vector<2x32xf32>
    %573 = arith.negf %572 : vector<2x32xf32>
    %574 = math.exp %573 : vector<2x32xf32>
    %cst_263 = arith.constant 1.000000e+00 : f32
    %575 = vector.broadcast %cst_263 : f32 to vector<2x32xf32>
    %576 = arith.addf %575, %574 : vector<2x32xf32>
    %577 = arith.divf %575, %576 : vector<2x32xf32>
    %578 = vector.extract_strided_slice %557 {offsets = [0, 64], sizes = [2, 32], strides = [1, 1]} : vector<2x128xf32> to vector<2x32xf32>
    %579 = math.tanh %578 : vector<2x32xf32>
    %580 = vector.extract_strided_slice %557 {offsets = [0, 96], sizes = [2, 32], strides = [1, 1]} : vector<2x128xf32> to vector<2x32xf32>
    %581 = arith.negf %580 : vector<2x32xf32>
    %582 = math.exp %581 : vector<2x32xf32>
    %cst_264 = arith.constant 1.000000e+00 : f32
    %583 = vector.broadcast %cst_264 : f32 to vector<2x32xf32>
    %584 = arith.addf %583, %582 : vector<2x32xf32>
    %585 = arith.divf %583, %584 : vector<2x32xf32>
    %586 = arith.mulf %577, %565 : vector<2x32xf32>
    %587 = arith.mulf %571, %579 : vector<2x32xf32>
    %588 = arith.addf %586, %587 : vector<2x32xf32>
    %589 = math.tanh %588 : vector<2x32xf32>
    %590 = arith.mulf %585, %589 : vector<2x32xf32>
    %c0_265 = arith.constant 0 : index
    %c0_266 = arith.constant 0 : index
    %591 = vector.load %arg10[%c0_265, %c0_266] : memref<2x32xf32, #tpu.memory_space<vmem>>, vector<2x32xf32>
    %592 = vector.extract_strided_slice %564 {offsets = [0, 0], sizes = [2, 32], strides = [1, 1]} : vector<2x128xf32> to vector<2x32xf32>
    %593 = arith.negf %592 : vector<2x32xf32>
    %594 = math.exp %593 : vector<2x32xf32>
    %cst_267 = arith.constant 1.000000e+00 : f32
    %595 = vector.broadcast %cst_267 : f32 to vector<2x32xf32>
    %596 = arith.addf %595, %594 : vector<2x32xf32>
    %597 = arith.divf %595, %596 : vector<2x32xf32>
    %598 = vector.extract_strided_slice %564 {offsets = [0, 32], sizes = [2, 32], strides = [1, 1]} : vector<2x128xf32> to vector<2x32xf32>
    %599 = arith.negf %598 : vector<2x32xf32>
    %600 = math.exp %599 : vector<2x32xf32>
    %cst_268 = arith.constant 1.000000e+00 : f32
    %601 = vector.broadcast %cst_268 : f32 to vector<2x32xf32>
    %602 = arith.addf %601, %600 : vector<2x32xf32>
    %603 = arith.divf %601, %602 : vector<2x32xf32>
    %604 = vector.extract_strided_slice %564 {offsets = [0, 64], sizes = [2, 32], strides = [1, 1]} : vector<2x128xf32> to vector<2x32xf32>
    %605 = math.tanh %604 : vector<2x32xf32>
    %606 = vector.extract_strided_slice %564 {offsets = [0, 96], sizes = [2, 32], strides = [1, 1]} : vector<2x128xf32> to vector<2x32xf32>
    %607 = arith.negf %606 : vector<2x32xf32>
    %608 = math.exp %607 : vector<2x32xf32>
    %cst_269 = arith.constant 1.000000e+00 : f32
    %609 = vector.broadcast %cst_269 : f32 to vector<2x32xf32>
    %610 = arith.addf %609, %608 : vector<2x32xf32>
    %611 = arith.divf %609, %610 : vector<2x32xf32>
    %612 = arith.mulf %603, %591 : vector<2x32xf32>
    %613 = arith.mulf %597, %605 : vector<2x32xf32>
    %614 = arith.addf %612, %613 : vector<2x32xf32>
    %615 = math.tanh %614 : vector<2x32xf32>
    %616 = arith.mulf %611, %615 : vector<2x32xf32>
    %c0_270 = arith.constant 0 : index
    %c0_271 = arith.constant 0 : index
    %617 = vector.load %arg7[%c0_270, %c0_271] : memref<2x32xf32, #tpu.memory_space<vmem>>, vector<2x32xf32>
    tpu.vector_store %arg7[%c0_270, %c0_271], %590 {strides = array<i32>} : memref<2x32xf32, #tpu.memory_space<vmem>>, vector<2x32xf32>,
    %c0_272 = arith.constant 0 : index
    %c0_273 = arith.constant 0 : index
    %618 = vector.load %arg8[%c0_272, %c0_273] : memref<2x32xf32, #tpu.memory_space<vmem>>, vector<2x32xf32>
    tpu.vector_store %arg8[%c0_272, %c0_273], %588 {strides = array<i32>} : memref<2x32xf32, #tpu.memory_space<vmem>>, vector<2x32xf32>,
    %c0_274 = arith.constant 0 : index
    %c0_275 = arith.constant 0 : index
    %619 = vector.load %arg9[%c0_274, %c0_275] : memref<2x32xf32, #tpu.memory_space<vmem>>, vector<2x32xf32>
    tpu.vector_store %arg9[%c0_274, %c0_275], %616 {strides = array<i32>} : memref<2x32xf32, #tpu.memory_space<vmem>>, vector<2x32xf32>,
    %c0_276 = arith.constant 0 : index
    %c0_277 = arith.constant 0 : index
    %620 = vector.load %arg10[%c0_276, %c0_277] : memref<2x32xf32, #tpu.memory_space<vmem>>, vector<2x32xf32>
    tpu.vector_store %arg10[%c0_276, %c0_277], %614 {strides = array<i32>} : memref<2x32xf32, #tpu.memory_space<vmem>>, vector<2x32xf32>,
    %621 = arith.truncf %590 : vector<2x32xf32> to vector<2x32xbf16>
    %c0_278 = arith.constant 0 : index
    %c7_279 = arith.constant 7 : index
    %c0_280 = arith.constant 0 : index
    %622 = vector.load %arg5[%c0_278, %c7_279, %c0_280] : memref<2x8x32xbf16, #tpu.memory_space<vmem>>, vector<2x1x32xbf16>
    %623 = vector.shape_cast %622 : vector<2x1x32xbf16> to vector<2x32xbf16>
    %624 = vector.shape_cast %621 : vector<2x32xbf16> to vector<2x1x32xbf16>
    tpu.vector_store %arg5[%c0_278, %c7_279, %c0_280], %624 {strides = array<i32>} : memref<2x8x32xbf16, #tpu.memory_space<vmem>>, vector<2x1x32xbf16>,
    %625 = arith.truncf %616 : vector<2x32xf32> to vector<2x32xbf16>
    %c0_281 = arith.constant 0 : index
    %c0_282 = arith.constant 0 : index
    %c0_283 = arith.constant 0 : index
    %626 = vector.load %arg6[%c0_281, %c0_282, %c0_283] : memref<2x8x32xbf16, #tpu.memory_space<vmem>>, vector<2x1x32xbf16>
    %627 = vector.shape_cast %626 : vector<2x1x32xbf16> to vector<2x32xbf16>
    %628 = vector.shape_cast %625 : vector<2x32xbf16> to vector<2x1x32xbf16>
    tpu.vector_store %arg6[%c0_281, %c0_282, %c0_283], %628 {strides = array<i32>} : memref<2x8x32xbf16, #tpu.memory_space<vmem>>, vector<2x1x32xbf16>,
    return
  }
  func.func @transform_0(%arg0: i32) -> (i32, i32, i32) {
    %c0_i32 = arith.constant 0 : i32
    %c0_i32_0 = arith.constant 0 : i32
    %c0_i32_1 = arith.constant 0 : i32
    return %c0_i32, %arg0, %c0_i32_0 : i32, i32, i32
  }
  func.func @transform_1(%arg0: i32) -> (i32, i32, i32) {
    %c0_i32 = arith.constant 0 : i32
    %0 = arith.subi %c0_i32, %arg0 : i32
    %c0_i32_0 = arith.constant 0 : i32
    %c1_i32 = arith.constant 1 : i32
    %c0_i32_1 = arith.constant 0 : i32
    return %c0_i32_0, %0, %c1_i32 : i32, i32, i32
  }
  func.func @transform_2(%arg0: i32) -> (i32, i32) {
    %c0_i32 = arith.constant 0 : i32
    %c0_i32_0 = arith.constant 0 : i32
    %c0_i32_1 = arith.constant 0 : i32
    return %c0_i32, %c0_i32_0 : i32, i32
  }
  func.func @transform_3(%arg0: i32) -> (i32, i32) {
    %c0_i32 = arith.constant 0 : i32
    %c0_i32_0 = arith.constant 0 : i32
    %c0_i32_1 = arith.constant 0 : i32
    return %c0_i32, %c0_i32_0 : i32, i32
  }
  func.func @transform_4(%arg0: i32) -> (i32, i32, i32) {
    %c0_i32 = arith.constant 0 : i32
    %c0_i32_0 = arith.constant 0 : i32
    %c0_i32_1 = arith.constant 0 : i32
    return %c0_i32, %arg0, %c0_i32_0 : i32, i32, i32
  }
  func.func @transform_5(%arg0: i32) -> (i32, i32, i32) {
    %c0_i32 = arith.constant 0 : i32
    %0 = arith.subi %c0_i32, %arg0 : i32
    %c0_i32_0 = arith.constant 0 : i32
    %c0_i32_1 = arith.constant 0 : i32
    %c0_i32_2 = arith.constant 0 : i32
    return %c0_i32_0, %0, %c0_i32_1 : i32, i32, i32
  }
}

module attributes {stable_mosaic.version = 11 : i64} {
  func.func @_cls_softmax_kernel(%arg0: i32, %arg1: memref<8x64xbf16, #tpu.memory_space<vmem>>, %arg2: memref<64x3xbf16, #tpu.memory_space<vmem>>, %arg3: memref<1x3xf32, #tpu.memory_space<vmem>>, %arg4: memref<8x3xf32, #tpu.memory_space<vmem>>) attributes {dimension_semantics = [#tpu.dimension_semantics<parallel>], iteration_bounds = array<i64: 1>, scalar_prefetch = 0 : i64, scratch_operands = 0 : i64, tpu.core_type = #tpu.core_type<tc>, window_params = [{transform_indices = @transform_0, window_bounds = array<i64: 8, 64>}, {pipeline_mode = #tpu.pipeline_mode<synchronous>, transform_indices = @transform_1, window_bounds = array<i64: 64, 3>}, {pipeline_mode = #tpu.pipeline_mode<synchronous>, transform_indices = @transform_2, window_bounds = array<i64: 1, 3>}, {transform_indices = @transform_3, window_bounds = array<i64: 8, 3>}]} {
    %c0 = arith.constant 0 : index
    %c0_0 = arith.constant 0 : index
    %0 = vector.load %arg1[%c0, %c0_0] : memref<8x64xbf16, #tpu.memory_space<vmem>>, vector<8x64xbf16>
    %c0_1 = arith.constant 0 : index
    %c0_2 = arith.constant 0 : index
    %1 = vector.load %arg2[%c0_1, %c0_2] : memref<64x3xbf16, #tpu.memory_space<vmem>>, vector<64x3xbf16>
    %cst = arith.constant dense<0.000000e+00> : vector<8x3xf32>
    %2 = tpu.matmul %0, %1, %cst {dimension_numbers = #tpu.dot_dimension_numbers<[1], [0], [0], [1], [0, 0, 1, 1], [], []>} : vector<8x64xbf16>, vector<64x3xbf16>, vector<8x3xf32> -> vector<8x3xf32>
    %c0_3 = arith.constant 0 : index
    %c0_4 = arith.constant 0 : index
    %3 = vector.load %arg3[%c0_3, %c0_4] : memref<1x3xf32, #tpu.memory_space<vmem>>, vector<1x3xf32>
    %4 = vector.broadcast %3 : vector<1x3xf32> to vector<8x3xf32>
    %5 = arith.addf %2, %4 : vector<8x3xf32>
    %cst_5 = arith.constant dense<0xFF800000> : vector<8xf32>
    %6 = vector.multi_reduction <maximumf>, %5, %cst_5 [1] : vector<8x3xf32> to vector<8xf32>
    %7 = vector.shape_cast %6 : vector<8xf32> to vector<8x1xf32>
    %8 = vector.broadcast %7 : vector<8x1xf32> to vector<8x3xf32>
    %9 = arith.subf %5, %8 : vector<8x3xf32>
    %10 = math.exp %9 : vector<8x3xf32>
    %cst_6 = arith.constant dense<0.000000e+00> : vector<8xf32>
    %11 = vector.multi_reduction <add>, %10, %cst_6 [1] : vector<8x3xf32> to vector<8xf32>
    %12 = vector.shape_cast %11 : vector<8xf32> to vector<8x1xf32>
    %13 = vector.broadcast %12 : vector<8x1xf32> to vector<8x3xf32>
    %14 = arith.divf %10, %13 : vector<8x3xf32>
    %c0_7 = arith.constant 0 : index
    %c0_8 = arith.constant 0 : index
    %15 = vector.load %arg4[%c0_7, %c0_8] : memref<8x3xf32, #tpu.memory_space<vmem>>, vector<8x3xf32>
    tpu.vector_store %arg4[%c0_7, %c0_8], %14 {strides = array<i32>} : memref<8x3xf32, #tpu.memory_space<vmem>>, vector<8x3xf32>,
    return
  }
  func.func @transform_0(%arg0: i32) -> (i32, i32) {
    %c0_i32 = arith.constant 0 : i32
    %c0_i32_0 = arith.constant 0 : i32
    return %arg0, %c0_i32 : i32, i32
  }
  func.func @transform_1(%arg0: i32) -> (i32, i32) {
    %c0_i32 = arith.constant 0 : i32
    %c0_i32_0 = arith.constant 0 : i32
    %c0_i32_1 = arith.constant 0 : i32
    return %c0_i32, %c0_i32_0 : i32, i32
  }
  func.func @transform_2(%arg0: i32) -> (i32, i32) {
    %c0_i32 = arith.constant 0 : i32
    %c0_i32_0 = arith.constant 0 : i32
    %c0_i32_1 = arith.constant 0 : i32
    return %c0_i32, %c0_i32_0 : i32, i32
  }
  func.func @transform_3(%arg0: i32) -> (i32, i32) {
    %c0_i32 = arith.constant 0 : i32
    %c0_i32_0 = arith.constant 0 : i32
    return %arg0, %c0_i32 : i32, i32
  }
}

</mosaic_0001>

<bundles_post_ra>
// kernel: _lambda_.17
= control target key start
LH: loop header
LB: loop body
LE: loop exit
PB: predicated region body
PF: predicated region fallthrough
CT: control target
= control target key end

     0   :  { %v200_v0 = vmov 0.0   ;;  %vm201_vm0 = vmmov 0   ;;  %vm54_vm1 = vcmask 261120   ;;  %vm158_vm2 = vcmask 257024   ;;  %s269_s2 = inlined_call_operand.vmem [shape: bf16[32,32], index: 2, kind: input, shape index: {}]   ;;  %s270_s0 = inlined_call_operand.vmem [shape: bf16[16,32], index: 0, kind: input, shape index: {}]   ;;  %s271_s1 = inlined_call_operand.vmem [shape: bf16[16,32], index: 1, kind: input, shape index: {}]   ;;  %s272_s3 = inlined_call_operand.vmem [shape: f32[1,32], index: 3, kind: input, shape index: {}]   ;;  %s273_s4 = inlined_call_operand.vmem [shape: f32[1,32], index: 4, kind: input, shape index: {}]   ;;  %s274_s5 = inlined_call_operand.vmem [shape: f32[1,32], index: 5, kind: input, shape index: {}]   ;;  %s275_s6 = inlined_call_operand.vmem [shape: bf16[16,32], index: 6, kind: output, shape index: {}]  }
   0x1   :  { %183 = vmatprep.subr.bf16.mxu0 %v200_v0  ;;  %v193_v1 = vld [vmem:[%s269_s2 + $0x8] sm:$0xff]   ;;  %187 = vmatprep.mubr.msk.bf16.mxu0 %vm201_vm0, %v200_v0  ;;  %v194_v2 = vld [vmem:[%s269_s2] sm:$0xff]  }
   0x2   :  { %184 = vmatpush3.bf16.msra.mxu0 %v193_v1  ;;  %v195_v3 = vld [vmem:[%s270_s0] sm:$0xff]  }
   0x3   :  { %185 = vmatprep.subr.bf16.mxu0 %v200_v0  ;;  %v177_v4 = vld [vmem:[%s271_s1] sm:$0xff]  }
   0x4   :  { %v165_v5 = vld [vmem:[%s272_s3] ss:$0 sm:$0xff]  ;;  %v178_v6 = vunpack.c.l.bf16 %v177_v4  ;;  %v179_v11 = vunpack.c.h.bf16 %v177_v4 }
   0x5   :  { %v170_v35 = vld [vmem:[%s273_s4] ss:$0 sm:$0xff] }
   0x6   :  { %186 = vmatpush3.bf16.msra.mxu0 %v194_v2  ;;  %v171_v37 = vld [vmem:[%s274_s5] ss:$0 sm:$0xff] }
   0x9   :  { %188 = vmatmul.mubr.msk.bf16.vlgmr.msra.gmra.mxu0 %vm54_vm1, %v195_v3 }
  0xc9   :  { %v92_v7 = vpop.f32.mrf.mxu0 }
  0xca   :  { %v93_v8 = vadd.f32 %v165_v5, %v92_v7 }
  0xcb   :  { %v189_v9 = vpop.f32.mrf.mxu0 }
  0xcc   :  { %v103_v10 = vadd.f32 %v178_v6, %v93_v8 }
  0xcd   :  { %v95_v12 = vpop.f32.mrf.mxu0 }
  0xce   :  { %v96_v13 = vadd.f32 %v165_v5, %v95_v12  ;;  %v107_v14 = vsel %vm54_vm1, %v103_v10, 0.0 }
  0xcf   :  { %108 = vadd.xlane.f32.xlu0 %v107_v14  ;;  %v190_v15 = vpop.f32.mrf.mxu0 }
  0xd0   :  { %v104_v16 = vadd.f32 %v179_v11, %v96_v13 }
  0xd2   :  { %v110_v17 = vsel %vm54_vm1, %v104_v16, 0.0 }
  0xd3   :  { %111 = vadd.xlane.f32.xlu0 %v110_v17 }
 0x158   :  { %v109_v18 = vpop.xlane.xlu0 %108 }
 0x159   :  { %v114_v19 = vmul.f32 0.03125, %v109_v18 }
 0x15b   :  { %v116_v20 = vsub.f32 %v103_v10, %v114_v19 }
 0x15c   :  { %v112_v21 = vpop.xlane.xlu0 %111 }
 0x15d   :  { %v115_v22 = vmul.f32 0.03125, %v112_v21  ;;  %v118_v23 = vmul.f32 %v116_v20, %v116_v20 }
 0x15f   :  { %v117_v24 = vsub.f32 %v104_v16, %v115_v22  ;;  %v120_v25 = vsel %vm54_vm1, %v118_v23, 0.0 }
 0x160   :  { %121 = vadd.xlane.f32.xlu1 %v120_v25 }
 0x161   :  { %v119_v26 = vmul.f32 %v117_v24, %v117_v24 }
 0x163   :  { %v123_v27 = vsel %vm54_vm1, %v119_v26, 0.0 }
 0x164   :  { %124 = vadd.xlane.f32.xlu1 %v123_v27 }
 0x1e9   :  { %v122_v28 = vpop.xlane.xlu1 %121 }
 0x1ea   :  { %v126_v29 = vmul.f32 0.03125, %v122_v28 }
 0x1ec   :  { %v128_v30 = vadd.f32 1e-12, %v126_v29 }
 0x1ed   :  { %v125_v31 = vpop.xlane.xlu1 %124 }
 0x1ee   :  { %196 = vrsqrt.f32 %v128_v30  ;;  %v127_v32 = vmul.f32 0.03125, %v125_v31 }
 0x1f0   :  { %v129_v33 = vadd.f32 1e-12, %v127_v32 }
 0x1f2   :  { %198 = vrsqrt.f32 %v129_v33 }
 0x1fb   :  { %v197_v34 = vpop.eup %196 }
 0x1fc   :  { %v132_v36 = vmul.f32 %v197_v34, %v116_v20 }
 0x1fe   :  { %v140_v38 = vmul.f32 %v170_v35, %v132_v36 }
 0x1ff   :  { %v199_v39 = vpop.eup %198 }
 0x200   :  { %v148_v40 = vadd.f32 %v171_v37, %v140_v38  ;;  %v133_v41 = vmul.f32 %v199_v39, %v117_v24 }
 0x202   :  { %v174_v42 = vpack.c.bf16 %v148_v40, %v148_v40  ;;  %v141_v43 = vmul.f32 %v170_v35, %v133_v41 }
 0x204   :  { %159 = vst.msk [vmem:[%s275_s6] sm:$0xf] %vm158_vm2, %v174_v42  ;;  %v149_v44 = vadd.f32 %v171_v37, %v141_v43 }
 0x206   :  { %v175_v45 = vpack.c.bf16 %v149_v44, %v149_v44 }
 0x208   :  { %160 = vst.msk [vmem:[%s275_s6 + $0x4] sm:$0xf] %vm158_vm2, %v175_v45 }

// kernel: _lambda_.14
= control target key start
LH: loop header
LB: loop body
LE: loop exit
PB: predicated region body
PF: predicated region fallthrough
CT: control target
= control target key end

     0   :  { %vm18_vm0 = vcmask 261120   ;;  %vm70_vm1 = vcmask 257024   ;;  %s129_s0 = inlined_call_operand.vmem [shape: f32[16,32], index: 0, kind: input, shape index: {}]   ;;  %s130_s1 = inlined_call_operand.vmem [shape: f32[1,32], index: 1, kind: input, shape index: {}]   ;;  %s131_s2 = inlined_call_operand.vmem [shape: f32[1,32], index: 2, kind: input, shape index: {}]   ;;  %s132_s3 = inlined_call_operand.vmem [shape: bf16[16,32], index: 3, kind: output, shape index: {}]  }
   0x1   :  { %v14_v0 = vld [vmem:[%s129_s0] sm:$0xff]  ;;  %v15_v1 = vld [vmem:[%s129_s0 + $0x8] sm:$0xff] }
   0x2   :  { %v19_v2 = vsel %vm18_vm0, %v14_v0, 0.0  ;;  %v22_v3 = vsel %vm18_vm0, %v15_v1, 0.0  ;;  %v77_v21 = vld [vmem:[%s130_s1] ss:$0 sm:$0xff] }
   0x3   :  { %20 = vadd.xlane.f32.xlu0 %v19_v2  ;;  %v78_v23 = vld [vmem:[%s131_s2] ss:$0 sm:$0xff] }
   0x7   :  { %23 = vadd.xlane.f32.xlu0 %v22_v3 }
  0x8c   :  { %v21_v4 = vpop.xlane.xlu0 %20 }
  0x8d   :  { %v26_v5 = vmul.f32 0.03125, %v21_v4 }
  0x8f   :  { %v28_v6 = vsub.f32 %v14_v0, %v26_v5 }
  0x90   :  { %v24_v7 = vpop.xlane.xlu0 %23 }
  0x91   :  { %v27_v8 = vmul.f32 0.03125, %v24_v7  ;;  %v30_v9 = vmul.f32 %v28_v6, %v28_v6 }
  0x93   :  { %v29_v10 = vsub.f32 %v15_v1, %v27_v8  ;;  %v32_v11 = vsel %vm18_vm0, %v30_v9, 0.0 }
  0x94   :  { %33 = vadd.xlane.f32.xlu1 %v32_v11 }
  0x95   :  { %v31_v12 = vmul.f32 %v29_v10, %v29_v10 }
  0x97   :  { %v35_v13 = vsel %vm18_vm0, %v31_v12, 0.0 }
  0x98   :  { %36 = vadd.xlane.f32.xlu1 %v35_v13 }
 0x11d   :  { %v34_v14 = vpop.xlane.xlu1 %33 }
 0x11e   :  { %v38_v15 = vmul.f32 0.03125, %v34_v14 }
 0x120   :  { %v40_v16 = vadd.f32 1e-12, %v38_v15 }
 0x121   :  { %v37_v17 = vpop.xlane.xlu1 %36 }
 0x122   :  { %83 = vrsqrt.f32 %v40_v16  ;;  %v39_v18 = vmul.f32 0.03125, %v37_v17 }
 0x124   :  { %v41_v19 = vadd.f32 1e-12, %v39_v18 }
 0x126   :  { %85 = vrsqrt.f32 %v41_v19 }
 0x12f   :  { %v84_v20 = vpop.eup %83 }
 0x130   :  { %v44_v22 = vmul.f32 %v84_v20, %v28_v6 }
 0x132   :  { %v52_v24 = vmul.f32 %v77_v21, %v44_v22 }
 0x133   :  { %v86_v25 = vpop.eup %85 }
 0x134   :  { %v60_v26 = vadd.f32 %v78_v23, %v52_v24  ;;  %v45_v27 = vmul.f32 %v86_v25, %v29_v10 }
 0x136   :  { %v81_v28 = vpack.c.bf16 %v60_v26, %v60_v26  ;;  %v53_v29 = vmul.f32 %v77_v21, %v45_v27 }
 0x138   :  { %71 = vst.msk [vmem:[%s132_s3] sm:$0xf] %vm70_vm1, %v81_v28  ;;  %v61_v30 = vadd.f32 %v78_v23, %v53_v29 }
 0x13a   :  { %v82_v31 = vpack.c.bf16 %v61_v30, %v61_v30 }
 0x13c   :  { %72 = vst.msk [vmem:[%s132_s3 + $0x4] sm:$0xf] %vm70_vm1, %v82_v31 }

// kernel: _lambda_.15
= control target key start
LH: loop header
LB: loop body
LE: loop exit
PB: predicated region body
PF: predicated region fallthrough
CT: control target
= control target key end

     0   :  { %v130_v0 = vmov 0.0   ;;  %vm131_vm0 = vmmov 0   ;;  %vm45_vm1 = vcmask 261120   ;;  %vm98_vm2 = vcmask 781312   ;;  %s170_s1 = inlined_call_operand.vmem [shape: bf16[32,96], index: 1, kind: input, shape index: {}]   ;;  %s171_s0 = inlined_call_operand.vmem [shape: bf16[16,32], index: 0, kind: input, shape index: {}]   ;;  %s172_s2 = inlined_call_operand.vmem [shape: f32[1,96], index: 2, kind: input, shape index: {}]   ;;  %s173_s3 = inlined_call_operand.vmem [shape: bf16[16,96], index: 3, kind: output, shape index: {}]  }
   0x1   :  { %117 = vmatprep.subr.bf16.mxu0 %v130_v0  ;;  %v127_v1 = vld [vmem:[%s170_s1 + $0x8] sm:$0xff]   ;;  %121 = vmatprep.mubr.msk.bf16.mxu0 %vm131_vm0, %v130_v0  ;;  %v128_v2 = vld [vmem:[%s170_s1] sm:$0xff]  }
   0x2   :  { %118 = vmatpush3.bf16.msra.mxu0 %v127_v1  ;;  %v129_v3 = vld [vmem:[%s171_s0] sm:$0xff]  }
   0x3   :  { %119 = vmatprep.subr.bf16.mxu0 %v130_v0  ;;  %v105_v4 = vld [vmem:[%s172_s2] ss:$0 sm:$0xff] }
   0x6   :  { %120 = vmatpush3.bf16.msra.mxu0 %v128_v2 }
   0x9   :  { %122 = vmatmul.mubr.msk.bf16.vlgmr.msra.gmra.mxu0 %vm45_vm1, %v129_v3 }
  0xc9   :  { %v83_v5 = vpop.f32.mrf.mxu0 }
  0xca   :  { %v84_v6 = vadd.f32 %v105_v4, %v83_v5 }
  0xcb   :  { %v123_v7 = vpop.f32.mrf.mxu0 }
  0xcc   :  { %v112_v8 = vpack.c.bf16 %v84_v6, %v84_v6 }
  0xcd   :  { %v86_v9 = vpop.f32.mrf.mxu0 }
  0xce   :  { %99 = vst.msk [vmem:[%s173_s3] sm:$0xf] %vm98_vm2, %v112_v8  ;;  %v87_v10 = vadd.f32 %v105_v4, %v86_v9 }
  0xcf   :  { %v124_v11 = vpop.f32.mrf.mxu0 }
  0xd0   :  { %v113_v12 = vpack.c.bf16 %v87_v10, %v87_v10 }
  0xd2   :  { %100 = vst.msk [vmem:[%s173_s3 + $0x4] sm:$0xf] %vm98_vm2, %v113_v12 }

// kernel: _lambda_.16
= control target key start
LH: loop header
LB: loop body
LE: loop exit
PB: predicated region body
PF: predicated region fallthrough
CT: control target
= control target key end

     0   :  { %s648_s9 = smov 0   ;;  %s650_s10 = smov 0   ;;  %s724_s0 = inlined_call_operand.vmem [shape: bf16[2,8,96], index: 0, kind: input, shape index: {}]   ;;  %s725_s1 = inlined_call_operand.vmem [shape: f32[2,1,8], index: 1, kind: input, shape index: {}]   ;;  %s726_s2 = inlined_call_operand.vmem [shape: bf16[2,8,32], index: 2, kind: output, shape index: {}]  }
   0x1   :  { %s652_s11 = smov 0  }
   0x2 LB: > { %s24_s12 = sadd.s32 1, %s619_s10  ;;  %p518_p0 = scmp.ge.s32.totalorder %s623_s11, 1  ;;  %s623_s11 = sphi %s652_s11, %s12_s11   ;;  %s619_s10 = sphi %s650_s10, %s728_s10   ;;  %s615_s9 = sphi %s648_s9, %s727_s9  }
   0x3   : > { %p26_p1 = scmp.ge.s32.totalorder %s24_s12, 2  ;;  %p138_p2 = scmp.lt.s32.totalorder %s623_s11, 3 }
   0x5   : > { %s730_s12 = smov (%p26_p1, %s24_s12), 0  ;;  %p139_p3 = pnand %p518_p0, %p138_p2 }
   0x6   : > { %p167_p4 = scmp.lt.s32.totalorder (!%p139_p3), %s615_s9, 1  ;;  %s627_s17 = smov (!%p139_p3), 96  }
   0x7   : > { %142 = sbr.rel (%p139_p3) target bundleno = 1483 (0x5cb), region = 28  ;;  %s628_s18 = smov (!%p139_p3), 64  }
   0x8   : > { %s629_s22 = smov (!%p139_p3), 80   ;;  %s630_s23 = smov (!%p139_p3), 112  }
   0x9   : > { %s631_s24 = smov (!%p139_p3), 48   ;;  %s632_s25 = smov (!%p139_p3), 16  }
   0xc   : > { %v625_v0 = vmov 0.0   ;;  %vm626_vm0 = vmmov 0   ;;  %s732_s9 = smov (!%p167_p4, %s615_s9), 1  ;;  %vm194_vm1 = vcmask 130048   ;;  %v243_v5 = vlaneseq }
   0xd   : > { %536 = vmatprep.subr.bf16.mxu0 %v625_v0  ;;  %538 = vmatprep.mubr.msk.bf16.mxu0 %vm626_vm0, %v625_v0  ;;  %s519_s13 = sshll.u32 %s732_s9, 2  ;;  %s176_s21 = scalar_lea.vmem %s725_s1, %s732_s9  ;;  %vm249_vm2 = vcmask 64512   ;;  %vm267_vm3 = vcmask 1043456   ;;  %vm429_vm4 = vcmask 257024  }
   0xe   : > { %542 = vmatprep.subr.bf16.mxu1 %v625_v0  ;;  %544 = vmatprep.mubr.msk.bf16.mxu1 %vm626_vm0, %v625_v0  ;;  %s173_s16 = scalar_lea.vmem %s724_s0, %s519_s13  ;;  %v186_v6 = vld [vmem:[%s176_s21] sm:$0x1]  ;;  %v244_v8 = vshrl.u32 %v243_v5, 7  ;;  %s183_s28 = scalar_lea.vmem %s726_s2, %s519_s13 }
   0xf   : > { %v185_v1 = vld [vmem:[%s173_s16] sm:$0xf]  ;;  %v187_v7 = vsub.f32 1.0, %v186_v6 }
  0x10   : > { %v680_v2 = vcombine.low %v185_v1, %v185_v1  ;;  %v245_v10 = vsub.s32 0, %v244_v8 }
  0x11   : > { %v188_v9 = vmul.f32 -10000.0, %v187_v7 }
  0x12   : > { %192 = vrot.lane.b32.xlu0 %v680_v2, %s627_s17  ;;  %262 = vrot.lane.b32.xlu1 %v680_v2, %s628_s18 }
  0x13   : > { %v246_v11 = vrot.slane %v188_v9, %v245_v10 }
  0x84   : > { %v193_v3 = vpop.permute.xlu0 %192  ;;  %v263_v19 = vpop.permute.xlu1 %262 }
  0x85   : > { %v199_v4 = vsel %vm194_vm1, %v193_v3, 0  ;;  %v269_v20 = vsel %vm267_vm3, %v263_v19, 0 }
  0x86   : > { %537 = vmatpush3.bf16.xpose.msra.mxu0 %v199_v4  ;;  %543 = vmatpush3.bf16.msra.mxu1 %v269_v20 }
  0x87   : > { %554 = vmatprep.subr.bf16.mxu0 %v625_v0  ;;  %548 = vmatprep.subr.bf16.mxu1 %v625_v0 }
  0x8d   : > { %539 = vmatmul.mubr.msk.bf16.vlgmr.msra.gmra.mxu0 %vm194_vm1, %v185_v1 }
  0x8e   : > { %556 = vmatprep.mubr.msk.bf16.mxu0 %vm626_vm0, %v625_v0 }
 0x14d   : > { %v235_v12 = vpop.f32.mrf.mxu0 }
 0x14e   : > { %v241_v13 = vmul.f32 0.25, %v235_v12 }
 0x14f   : > { %v540_v14 = vpop.f32.mrf.mxu0 }
 0x150   : > { %v248_v15 = vadd.f32 %v246_v11, %v241_v13 }
 0x151   : > { %v238_v16 = vpop.f32.mrf.mxu0 }
 0x152   : > { %v250_v17 = vsel %vm249_vm2, %v248_v15, -inf }
 0x153   : > { %251 = vmax.xlane.f32.xlu0 %v250_v17  ;;  %v541_v18 = vpop.f32.mrf.mxu0 }
 0x1dc   : > { %v252_v21 = vpop.xlane.xlu0 %251 }
 0x1dd   : > { %v253_v22 = vsub.f32 %v248_v15, %v252_v21 }
 0x1df   : > { %v254_v23 = vmul.f32 1.442695, %v253_v22 }
 0x1e1   : > { %593 = vpow2.f32 %v254_v23 }
 0x1ee   : > { %v594_v24 = vpop.eup %593 }
 0x1ef   : > { %v256_v25 = vsel %vm249_vm2, %v594_v24, 0.0 }
 0x1f0   : > { %257 = vadd.xlane.f32.xlu1 %v256_v25 }
 0x201   : > { %313 = vrot.lane.b32.xlu1 %v680_v2, %s629_s22 }
 0x205   : > { %311 = vrot.lane.b32.xlu1 %v680_v2, %s630_s23 }
 0x279   : > { %v258_v26 = vpop.xlane.xlu1 %257 }
 0x27a   : > { %595 = vrcp.f32 %v258_v26 }
 0x27d   : > { %v314_v28 = vpop.permute.xlu1 %313 }
 0x27e   : > { %v319_v30 = vsel %vm194_vm1, %v314_v28, 0 }
 0x281   : > { %v312_v32 = vpop.permute.xlu1 %311 }
 0x287   : > { %v596_v27 = vpop.eup %595 }
 0x288   : > { %v260_v29 = vmul.f32 %v596_v27, %v594_v24 }
 0x28a   : > { %v261_v31 = vpack.c.bf16 %v260_v29, %v260_v29 }
 0x28c   : > { %545 = vmatmul.mubr.msk.bf16.vlgmr.msra.gmra.mxu1 %vm249_vm2, %v261_v31 }
 0x28d   : > { %549 = vmatpush3.bf16.xpose.msra.mxu1 %v319_v30  ;;  %550 = vmatprep.mubr.msk.bf16.mxu1 %vm626_vm0, %v625_v0 }
 0x294   : > { %551 = vmatmul.mubr.msk.bf16.vlgmr.msra.gmra.mxu1 %vm194_vm1, %v312_v32 }
 0x34c   : > { %v305_v33 = vpop.f32.mrf.mxu1 }
 0x34e   : > { %v546_v34 = vpop.f32.mrf.mxu1 }
 0x350   : > { %v308_v35 = vpop.f32.mrf.mxu1 }
 0x352   : > { %v547_v36 = vpop.f32.mrf.mxu1 }
 0x354   : > { %v355_v37 = vpop.f32.mrf.mxu1 }
 0x355   : > { %v361_v38 = vmul.f32 0.25, %v355_v37 }
 0x356   : > { %v552_v39 = vpop.f32.mrf.mxu1 }
 0x357   : > { %v362_v40 = vadd.f32 %v361_v38, %v246_v11 }
 0x358   : > { %v358_v41 = vpop.f32.mrf.mxu1 }
 0x359   : > { %v363_v42 = vsel %vm249_vm2, %v362_v40, -inf }
 0x35a   : > { %364 = vmax.xlane.f32.xlu1 %v363_v42  ;;  %v553_v43 = vpop.f32.mrf.mxu1 }
 0x3e3   : > { %v365_v44 = vpop.xlane.xlu1 %364 }
 0x3e4   : > { %v366_v45 = vsub.f32 %v362_v40, %v365_v44 }
 0x3e6   : > { %v367_v46 = vmul.f32 1.442695, %v366_v45 }
 0x3e8   : > { %597 = vpow2.f32 %v367_v46 }
 0x3f5   : > { %v598_v47 = vpop.eup %597 }
 0x3f6   : > { %v369_v48 = vsel %vm249_vm2, %v598_v47, 0.0 }
 0x3f7   : > { %370 = vadd.xlane.f32.xlu0 %v369_v48 }
 0x40d   : > { %375 = vrot.lane.b32.xlu0 %v680_v2, %s631_s24 }
 0x480   : > { %v371_v49 = vpop.xlane.xlu0 %370 }
 0x481   : > { %599 = vrcp.f32 %v371_v49 }
 0x484   : > { %v376_v50 = vpop.permute.xlu0 %375 }
 0x485   : > { %v381_v51 = vsel %vm267_vm3, %v376_v50, 0 }
 0x486   : > { %555 = vmatpush3.bf16.msra.mxu0 %v381_v51 }
 0x48e   : > { %v600_v52 = vpop.eup %599 }
 0x48f   : > { %v373_v53 = vmul.f32 %v600_v52, %v598_v47 }
 0x491   : > { %v374_v54 = vpack.c.bf16 %v373_v53, %v373_v53 }
 0x493   : > { %557 = vmatmul.mubr.msk.bf16.vlgmr.msra.gmra.mxu0 %vm249_vm2, %v374_v54 }
 0x553   : > { %v417_v55 = vpop.f32.mrf.mxu0 }
 0x554   : > { %424 = vrot.lane.b32.xlu0 %v417_v55, %s632_s25 }
 0x555   : > { %v558_v56 = vpop.f32.mrf.mxu0 }
 0x557   : > { %v420_v57 = vpop.f32.mrf.mxu0 }
 0x559   : > { %v559_v58 = vpop.f32.mrf.mxu0 }
 0x5c6   : > { %v425_v59 = vpop.permute.xlu0 %424 }
 0x5c7   : > { %v427_v60 = vsel %vm194_vm1, %v305_v33, %v425_v59 }
 0x5c8   : > { %v428_v61 = vpack.c.bf16 %v427_v60, %v427_v60 }
 0x5ca   : > { %430 = vst.msk [vmem:[%s183_s28] sm:$0xf] %vm429_vm4, %v428_v61 }
 0x5cb PF: > { %s12_s11 = sadd.s32 1, %s623_s11   ;;  %s727_s9 = smov %s619_s10 }
 0x5cc   : > { %p9_p5 = scmp.ge.s32.totalorder %s12_s11, 4   ;;  %s728_s10 = smov %s730_s12 }
 0x5ce   :  { %11 = sbr.rel (!%p9_p5) target bundleno = 2 (0x2), region = 61 }

// kernel: _lambda_.23
= control target key start
LH: loop header
LB: loop body
LE: loop exit
PB: predicated region body
PF: predicated region fallthrough
CT: control target
= control target key end

     0   :  { %v141_v1 = vmov 0   ;;  %vm58_vm0 = vcmask 261120   ;;  %v23_v6 = vlaneseq  ;;  %s186_s1 = inlined_call_operand.vmem [shape: bf16[32,256], index: 1, kind: input, shape index: {}]   ;;  %s187_s0 = inlined_call_operand.vmem [shape: bf16[16,32], index: 0, kind: input, shape index: {}]   ;;  %s188_s2 = inlined_call_operand.vmem [shape: f32[1,256], index: 2, kind: input, shape index: {}]   ;;  %s189_s3 = inlined_call_operand.vmem [shape: bf16[16,256], index: 3, kind: output, shape index: {}]  }
   0x1   :  { %v134_v0 = vld [vmem:[%s186_s1 + $0x14] ss:$8 sps:$4 sm:$0xff]   ;;  %94 = vmatprep.mubr.bf16.mxu0 %v141_v1  ;;  %v136_v2 = vld [vmem:[%s186_s1 + $0x10] ss:$8 sps:$4 sm:$0xff]   ;;  %v137_v3 = vld [vmem:[%s186_s1 + $0x4] ss:$8 sps:$4 sm:$0xff]  }
   0x2   :  { %74 = vmatprep.subr.bf16.mxu0 %v134_v0  ;;  %v139_v4 = vld [vmem:[%s186_s1] ss:$8 sps:$4 sm:$0xff]   ;;  %v24_v7 = vshrl.u32 %v23_v6, 7 }
   0x3   :  { %75 = vmatpush1.bf16.msra.mxu0 %v136_v2  ;;  %v140_v5 = vld [vmem:[%s187_s0] sm:$0xff]  }
   0x4   :  { %76 = vmatprep.subr.bf16.mxu0 %v137_v3  ;;  %v25_v8 = vsub.s32 0, %v24_v7  ;;  %v29_v9 = vsub.s32 1, %v24_v7  ;;  %v21_v10 = vld [vmem:[%s188_s2] sm:$0x3] }
   0x6   :  { %v26_v11 = vrot.slane %v21_v10, %v25_v8  ;;  %v30_v12 = vrot.slane %v21_v10, %v29_v9 }
   0x7   :  { %77 = vmatpush1.bf16.msra.mxu0 %v139_v4 }
   0xa   :  { %128 = vmatmul.mubr.msk.bf16.vlgmr.msra.gmra.mxu0 %vm58_vm0, %v140_v5 }
  0xca   :  { %v96_v13 = vpop.f32.mrf.mxu0 }
  0xcb   :  { %v97_v15 = vadd.f32 %v96_v13, %v26_v11 }
  0xcc   :  { %v98_v14 = vpop.f32.mrf.mxu0 }
  0xcd   :  { %v99_v16 = vadd.f32 %v98_v14, %v30_v12 }
  0xce   :  { %v100_v17 = vpop.f32.mrf.mxu0 }
  0xcf   :  { %v131_v18 = vpack.c.bf16 %v99_v16, %v97_v15  ;;  %v101_v20 = vadd.f32 %v100_v17, %v26_v11 }
  0xd0   :  { %v102_v19 = vpop.f32.mrf.mxu0 }
  0xd1   :  { %117 = vst [vmem:[%s189_s3] sm:$0xff] %v131_v18  ;;  %v103_v21 = vadd.f32 %v102_v19, %v30_v12 }
  0xd3   :  { %v132_v22 = vpack.c.bf16 %v103_v21, %v101_v20 }
  0xd5   :  { %118 = vst [vmem:[%s189_s3 + $0x8] sm:$0xff] %v132_v22 }

// kernel: _lambda_.18
= control target key start
LH: loop header
LB: loop body
LE: loop exit
PB: predicated region body
PF: predicated region fallthrough
CT: control target
= control target key end

     0   :  { %v332_v0 = vmov 0.0   ;;  %vm333_vm0 = vmmov 0   ;;  %vm57_vm1 = vcmask 261120   ;;  %vm160_vm2 = vcmask 523264   ;;  %s418_s1 = inlined_call_operand.vmem [shape: bf16[32,64], index: 1, kind: input, shape index: {}]   ;;  %s419_s0 = inlined_call_operand.vmem [shape: bf16[16,32], index: 0, kind: input, shape index: {}]   ;;  %s420_s3 = inlined_call_operand.vmem [shape: bf16[64,32], index: 3, kind: input, shape index: {}]   ;;  %s421_s2 = inlined_call_operand.vmem [shape: f32[1,64], index: 2, kind: input, shape index: {}]   ;;  %s422_s4 = inlined_call_operand.vmem [shape: f32[1,32], index: 4, kind: input, shape index: {}]   ;;  %s423_s5 = inlined_call_operand.vmem [shape: f32[1,32], index: 5, kind: input, shape index: {}]   ;;  %s424_s6 = inlined_call_operand.vmem [shape: f32[1,32], index: 6, kind: input, shape index: {}]   ;;  %s425_s7 = inlined_call_operand.vmem [shape: bf16[16,32], index: 7, kind: output, shape index: {}]  }
   0x1   :  { %294 = vmatprep.subr.bf16.mxu0 %v332_v0  ;;  %v316_v1 = vld [vmem:[%s418_s1 + $0x8] sm:$0xff]   ;;  %298 = vmatprep.mubr.msk.bf16.mxu0 %vm333_vm0, %v332_v0  ;;  %v317_v2 = vld [vmem:[%s418_s1] sm:$0xff]   ;;  %v319_v4 = vld [vmem:[%s420_s3 + $0x18] sm:$0xff]   ;;  %vm262_vm3 = vcmask 257024  }
   0x2   :  { %302 = vmatprep.subr.bf16.mxu1 %v332_v0  ;;  %310 = vmatprep.mubr.msk.bf16.mxu1 %vm333_vm0, %v332_v0  ;;  %v27_v3 = vld [vmem:[%s419_s0] sm:$0xff]   ;;  %v320_v5 = vld [vmem:[%s420_s3 + $0x10] sm:$0xff]   ;;  %v321_v6 = vld [vmem:[%s420_s3 + $0x8] sm:$0xff]  }
   0x3   :  { %295 = vmatpush3.bf16.msra.mxu0 %v316_v1  ;;  %303 = vmatpush3.bf16.msra.mxu1 %v319_v4  ;;  %v322_v7 = vld [vmem:[%s420_s3] sm:$0xff]   ;;  %v205_v35 = vunpack.c.l.bf16 %v27_v3  ;;  %v206_v40 = vunpack.c.h.bf16 %v27_v3 }
   0x4   :  { %296 = vmatprep.subr.bf16.mxu0 %v332_v0  ;;  %304 = vmatprep.subr.bf16.mxu1 %v332_v0  ;;  %v269_v8 = vld [vmem:[%s421_s2] ss:$0 sm:$0xff] }
   0x5   :  { %v274_v34 = vld [vmem:[%s422_s4] ss:$0 sm:$0xff] }
   0x7   :  { %297 = vmatpush3.bf16.msra.mxu0 %v317_v2  ;;  %305 = vmatpush3.bf16.msra.mxu1 %v320_v5  ;;  %v281_v2 = vld [vmem:[%s424_s6] ss:$0 sm:$0xff] }
   0x8   :  { %306 = vmatprep.subr.bf16.mxu1 %v332_v0 }
   0xa   :  { %299 = vmatmul.mubr.msk.bf16.vlgmr.msra.gmra.mxu0 %vm57_vm1, %v27_v3 }
   0xb   :  { %307 = vmatpush3.bf16.msra.mxu1 %v321_v6 }
   0xc   :  { %308 = vmatprep.subr.bf16.mxu1 %v332_v0  ;;  %v280_v0 = vld [vmem:[%s423_s5] ss:$0 sm:$0xff] }
   0xf   :  { %309 = vmatpush3.bf16.msra.mxu1 %v322_v7 }
  0xca   :  { %v95_v9 = vpop.f32.mrf.mxu0 }
  0xcb   :  { %v96_v10 = vadd.f32 %v269_v8, %v95_v9 }
  0xcc   :  { %v300_v11 = vpop.f32.mrf.mxu0 }
  0xcd   :  { %v102_v12 = vmul.f32 %v96_v10, %v96_v10 }
  0xce   :  { %v98_v13 = vpop.f32.mrf.mxu0 }
  0xcf   :  { %v104_v14 = vmul.f32 %v102_v12, %v96_v10  ;;  %v99_v15 = vadd.f32 %v269_v8, %v98_v13 }
  0xd0   :  { %v301_v16 = vpop.f32.mrf.mxu0 }
  0xd1   :  { %v106_v17 = vmul.f32 0.044715, %v104_v14  ;;  %v103_v18 = vmul.f32 %v99_v15, %v99_v15 }
  0xd3   :  { %v108_v19 = vadd.f32 %v106_v17, %v96_v10  ;;  %v105_v20 = vmul.f32 %v103_v18, %v99_v15 }
  0xd5   :  { %v110_v21 = vmul.f32 0.7978846, %v108_v19  ;;  %v107_v22 = vmul.f32 0.044715, %v105_v20 }
  0xd7   :  { %324 = vtanh.f32 %v110_v21  ;;  %v109_v23 = vadd.f32 %v107_v22, %v99_v15 }
  0xd9   :  { %v111_v24 = vmul.f32 0.7978846, %v109_v23 }
  0xdb   :  { %326 = vtanh.f32 %v111_v24 }
  0xe4   :  { %v325_v25 = vpop.eup %324 }
  0xe5   :  { %v114_v26 = vadd.f32 1.0, %v325_v25 }
  0xe7   :  { %v116_v28 = vmul.f32 0.5, %v114_v26 }
  0xe8   :  { %v327_v27 = vpop.eup %326 }
  0xe9   :  { %v115_v29 = vadd.f32 1.0, %v327_v27  ;;  %v118_v31 = vmul.f32 %v116_v28, %v96_v10 }
  0xeb   :  { %v117_v30 = vmul.f32 0.5, %v115_v29 }
  0xed   :  { %v119_v32 = vmul.f32 %v117_v30, %v99_v15 }
  0xef   :  { %v120_v33 = vpack.c.bf16 %v119_v32, %v118_v31 }
  0xf1   :  { %311 = vmatmul.mubr.msk.bf16.vlgmr.msra.gmra.mxu1 %vm160_vm2, %v120_v33 }
 0x1b1   :  { %v198_v36 = vpop.f32.mrf.mxu1 }
 0x1b2   :  { %v199_v37 = vadd.f32 %v274_v34, %v198_v36 }
 0x1b3   :  { %v312_v38 = vpop.f32.mrf.mxu1 }
 0x1b4   :  { %v207_v39 = vadd.f32 %v205_v35, %v199_v37 }
 0x1b5   :  { %v201_v41 = vpop.f32.mrf.mxu1 }
 0x1b6   :  { %v202_v42 = vadd.f32 %v274_v34, %v201_v41  ;;  %v211_v43 = vsel %vm57_vm1, %v207_v39, 0.0 }
 0x1b7   :  { %212 = vadd.xlane.f32.xlu0 %v211_v43  ;;  %v313_v44 = vpop.f32.mrf.mxu1 }
 0x1b8   :  { %v208_v45 = vadd.f32 %v206_v40, %v202_v42 }
 0x1ba   :  { %v214_v46 = vsel %vm57_vm1, %v208_v45, 0.0 }
 0x1bb   :  { %215 = vadd.xlane.f32.xlu0 %v214_v46 }
 0x240   :  { %v213_v47 = vpop.xlane.xlu0 %212 }
 0x241   :  { %v218_v48 = vmul.f32 0.03125, %v213_v47 }
 0x243   :  { %v220_v49 = vsub.f32 %v207_v39, %v218_v48 }
 0x244   :  { %v216_v50 = vpop.xlane.xlu0 %215 }
 0x245   :  { %v219_v51 = vmul.f32 0.03125, %v216_v50  ;;  %v222_v52 = vmul.f32 %v220_v49, %v220_v49 }
 0x247   :  { %v221_v53 = vsub.f32 %v208_v45, %v219_v51  ;;  %v224_v54 = vsel %vm57_vm1, %v222_v52, 0.0 }
 0x248   :  { %225 = vadd.xlane.f32.xlu1 %v224_v54 }
 0x249   :  { %v223_v55 = vmul.f32 %v221_v53, %v221_v53 }
 0x24b   :  { %v227_v56 = vsel %vm57_vm1, %v223_v55, 0.0 }
 0x24c   :  { %228 = vadd.xlane.f32.xlu1 %v227_v56 }
 0x2d1   :  { %v226_v57 = vpop.xlane.xlu1 %225 }
 0x2d2   :  { %v230_v58 = vmul.f32 0.03125, %v226_v57 }
 0x2d4   :  { %v232_v59 = vadd.f32 1e-12, %v230_v58 }
 0x2d5   :  { %v229_v60 = vpop.xlane.xlu1 %228 }
 0x2d6   :  { %328 = vrsqrt.f32 %v232_v59  ;;  %v231_v61 = vmul.f32 0.03125, %v229_v60 }
 0x2d8   :  { %v233_v62 = vadd.f32 1e-12, %v231_v61 }
 0x2da   :  { %330 = vrsqrt.f32 %v233_v62 }
 0x2e3   :  { %v329_v63 = vpop.eup %328 }
 0x2e4   :  { %v236_v1 = vmul.f32 %v329_v63, %v220_v49 }
 0x2e6   :  { %v244_v3 = vmul.f32 %v280_v0, %v236_v1 }
 0x2e7   :  { %v331_v4 = vpop.eup %330 }
 0x2e8   :  { %v252_v5 = vadd.f32 %v281_v2, %v244_v3  ;;  %v237_v6 = vmul.f32 %v331_v4, %v221_v53 }
 0x2ea   :  { %v284_v7 = vpack.c.bf16 %v252_v5, %v252_v5  ;;  %v245_v8 = vmul.f32 %v280_v0, %v237_v6 }
 0x2ec   :  { %263 = vst.msk [vmem:[%s425_s7] sm:$0xf] %vm262_vm3, %v284_v7  ;;  %v253_v9 = vadd.f32 %v281_v2, %v245_v8 }
 0x2ee   :  { %v285_v10 = vpack.c.bf16 %v253_v9, %v253_v9 }
 0x2f0   :  { %264 = vst.msk [vmem:[%s425_s7 + $0x4] sm:$0xf] %vm262_vm3, %v285_v10 }

// kernel: _lambda_.25
= control target key start
LH: loop header
LB: loop body
LE: loop exit
PB: predicated region body
PF: predicated region fallthrough
CT: control target
= control target key end

     0   :  { %v241_v1 = vmov 0   ;;  %vm58_vm0 = vcmask 261120   ;;  %v178_v11 = vlaneseq  ;;  %s311_s3 = inlined_call_operand.vmem [shape: bf16[32,256], index: 3, kind: input, shape index: {}]   ;;  %s312_s2 = inlined_call_operand.vmem [shape: bf16[32,256], index: 2, kind: input, shape index: {}]   ;;  %s313_s1 = inlined_call_operand.vmem [shape: bf16[16,32], index: 1, kind: input, shape index: {}]   ;;  %s314_s0 = inlined_call_operand.vmem [shape: bf16[16,32], index: 0, kind: input, shape index: {}]   ;;  %s315_s4 = inlined_call_operand.vmem [shape: f32[1,256], index: 4, kind: input, shape index: {}]   ;;  %s316_s5 = inlined_call_operand.vmem [shape: bf16[16,256], index: 5, kind: output, shape index: {}]  }
   0x1   :  { %v227_v0 = vld [vmem:[%s311_s3 + $0x14] ss:$8 sps:$4 sm:$0xff]   ;;  %94 = vmatprep.mubr.bf16.mxu0 %v241_v1  ;;  %165 = vmatprep.mubr.bf16.mxu1 %v241_v1  ;;  %v231_v3 = vld [vmem:[%s311_s3 + $0x10] ss:$8 sps:$4 sm:$0xff]   ;;  %v233_v5 = vld [vmem:[%s311_s3 + $0x4] ss:$8 sps:$4 sm:$0xff]  }
   0x2   :  { %v229_v2 = vld [vmem:[%s312_s2 + $0x14] ss:$8 sps:$4 sm:$0xff]   ;;  %74 = vmatprep.subr.bf16.mxu0 %v227_v0  ;;  %v232_v4 = vld [vmem:[%s312_s2 + $0x10] ss:$8 sps:$4 sm:$0xff]   ;;  %v235_v6 = vld [vmem:[%s312_s2 + $0x4] ss:$8 sps:$4 sm:$0xff]  }
   0x3   :  { %145 = vmatprep.subr.bf16.mxu1 %v229_v2  ;;  %75 = vmatpush1.bf16.msra.mxu0 %v231_v3  ;;  %v237_v7 = vld [vmem:[%s311_s3] ss:$8 sps:$4 sm:$0xff]   ;;  %v179_v12 = vshrl.u32 %v178_v11, 7 }
   0x4   :  { %146 = vmatpush1.bf16.msra.mxu1 %v232_v4  ;;  %76 = vmatprep.subr.bf16.mxu0 %v233_v5  ;;  %v238_v8 = vld [vmem:[%s312_s2] ss:$8 sps:$4 sm:$0xff]  }
   0x5   :  { %147 = vmatprep.subr.bf16.mxu1 %v235_v6  ;;  %v239_v9 = vld [vmem:[%s313_s1] sm:$0xff]   ;;  %v180_v13 = vsub.s32 0, %v179_v12  ;;  %v184_v14 = vsub.s32 1, %v179_v12 }
   0x6   :  { %v240_v10 = vld [vmem:[%s314_s0] sm:$0xff]  }
   0x7   :  { %77 = vmatpush1.bf16.msra.mxu0 %v237_v7  ;;  %v176_v15 = vld [vmem:[%s315_s4] sm:$0x3] }
   0x8   :  { %148 = vmatpush1.bf16.msra.mxu1 %v238_v8  ;;  %v181_v19 = vrot.slane %v176_v15, %v180_v13  ;;  %v185_v20 = vrot.slane %v176_v15, %v184_v14 }
   0xa   :  { %215 = vmatmul.mubr.msk.bf16.vlgmr.msra.gmra.mxu0 %vm58_vm0, %v239_v9 }
   0xb   :  { %221 = vmatmul.mubr.msk.bf16.vlgmr.msra.gmra.mxu1 %vm58_vm0, %v240_v10 }
  0xca   :  { %v96_v16 = vpop.f32.mrf.mxu0 }
  0xcb   :  { %v167_v17 = vpop.f32.mrf.mxu1 }
  0xcc   :  { %v168_v18 = vadd.f32 %v167_v17, %v96_v16  ;;  %v98_v21 = vpop.f32.mrf.mxu0 }
  0xcd   :  { %v169_v22 = vpop.f32.mrf.mxu1 }
  0xce   :  { %v170_v23 = vadd.f32 %v169_v22, %v98_v21  ;;  %v100_v24 = vpop.f32.mrf.mxu0  ;;  %v188_v26 = vadd.f32 %v181_v19, %v168_v18 }
  0xcf   :  { %v171_v25 = vpop.f32.mrf.mxu1 }
  0xd0   :  { %v189_v27 = vadd.f32 %v185_v20, %v170_v23  ;;  %v172_v28 = vadd.f32 %v171_v25, %v100_v24  ;;  %v102_v29 = vpop.f32.mrf.mxu0 }
  0xd1   :  { %v173_v30 = vpop.f32.mrf.mxu1 }
  0xd2   :  { %v224_v31 = vpack.c.bf16 %v189_v27, %v188_v26  ;;  %v174_v32 = vadd.f32 %v173_v30, %v102_v29  ;;  %v190_v33 = vadd.f32 %v181_v19, %v172_v28 }
  0xd4   :  { %204 = vst [vmem:[%s316_s5] sm:$0xff] %v224_v31  ;;  %v191_v34 = vadd.f32 %v185_v20, %v174_v32 }
  0xd6   :  { %v225_v35 = vpack.c.bf16 %v191_v34, %v190_v33 }
  0xd8   :  { %205 = vst [vmem:[%s316_s5 + $0x8] sm:$0xff] %v225_v35 }

// kernel: _lambda_.27
= control target key start
LH: loop header
LB: loop body
LE: loop exit
PB: predicated region body
PF: predicated region fallthrough
CT: control target
= control target key end

     0   :  { %v149_v0 = vmov 0.0   ;;  %vm150_vm0 = vmmov 0   ;;  %vm55_vm1 = vcmask 523264   ;;  %vm99_vm2 = vcmask 23552   ;;  %s195_s1 = inlined_call_operand.vmem [shape: bf16[64,3], index: 1, kind: input, shape index: {}]   ;;  %s196_s0 = inlined_call_operand.vmem [shape: bf16[8,64], index: 0, kind: input, shape index: {}]   ;;  %s197_s2 = inlined_call_operand.vmem [shape: f32[1,3], index: 2, kind: input, shape index: {}]   ;;  %s198_s3 = inlined_call_operand.vmem [shape: f32[8,3], index: 3, kind: output, shape index: {}]  }
   0x1   :  { %127 = vmatprep.subr.bf16.mxu0 %v149_v0  ;;  %v141_v1 = vld [vmem:[%s195_s1 + $0x18] sm:$0xff]   ;;  %135 = vmatprep.mubr.msk.bf16.mxu0 %vm150_vm0, %v149_v0  ;;  %v142_v2 = vld [vmem:[%s195_s1 + $0x10] sm:$0xff]   ;;  %v143_v3 = vld [vmem:[%s195_s1 + $0x8] sm:$0xff]  }
   0x2   :  { %128 = vmatpush3.bf16.msra.mxu0 %v141_v1  ;;  %v144_v4 = vld [vmem:[%s195_s1] sm:$0xff]  }
   0x3   :  { %129 = vmatprep.subr.bf16.mxu0 %v149_v0  ;;  %v15_v5 = vld [vmem:[%s196_s0] sm:$0xf] }
   0x4   :  { %v116_v6 = vld [vmem:[%s197_s2] ss:$0 sm:$0xff] }
   0x6   :  { %130 = vmatpush3.bf16.msra.mxu0 %v142_v2 }
   0x7   :  { %131 = vmatprep.subr.bf16.mxu0 %v149_v0 }
   0xa   :  { %132 = vmatpush3.bf16.msra.mxu0 %v143_v3 }
   0xb   :  { %133 = vmatprep.subr.bf16.mxu0 %v149_v0 }
   0xe   :  { %134 = vmatpush3.bf16.msra.mxu0 %v144_v4 }
  0x11   :  { %136 = vmatmul.mubr.msk.bf16.vlgmr.msra.gmra.mxu0 %vm55_vm1, %v15_v5 }
  0xd1   :  { %v93_v7 = vpop.f32.mrf.mxu0 }
  0xd2   :  { %v94_v8 = vadd.f32 %v116_v6, %v93_v7 }
  0xd3   :  { %v137_v9 = vpop.f32.mrf.mxu0 }
  0xd4   :  { %v100_v10 = vsel %vm99_vm2, %v94_v8, -inf }
  0xd5   :  { %101 = vmax.xlane.f32.xlu0 %v100_v10  ;;  %v96_v11 = vpop.f32.mrf.mxu0 }
  0xd7   :  { %v138_v12 = vpop.f32.mrf.mxu0 }
 0x15e   :  { %v102_v13 = vpop.xlane.xlu0 %101 }
 0x15f   :  { %v103_v14 = vsub.f32 %v94_v8, %v102_v13 }
 0x161   :  { %v104_v15 = vmul.f32 1.442695, %v103_v14 }
 0x163   :  { %145 = vpow2.f32 %v104_v15 }
 0x170   :  { %v146_v16 = vpop.eup %145 }
 0x171   :  { %v106_v17 = vsel %vm99_vm2, %v146_v16, 0.0 }
 0x172   :  { %107 = vadd.xlane.f32.xlu0 %v106_v17 }
 0x1fb   :  { %v108_v18 = vpop.xlane.xlu0 %107 }
 0x1fc   :  { %147 = vrcp.f32 %v108_v18 }
 0x209   :  { %v148_v19 = vpop.eup %147 }
 0x20a   :  { %v110_v20 = vmul.f32 %v148_v19, %v146_v16 }
 0x20c   :  { %111 = vst.msk [vmem:[%s198_s3] sm:$0xff] %vm99_vm2, %v110_v20 }

// kernel: _lambda_.24
= control target key start
LH: loop header
LB: loop body
LE: loop exit
PB: predicated region body
PF: predicated region fallthrough
CT: control target
= control target key end

     0   :  { %v3215_v1 = vmov 0.0   ;;  %vm3216_vm0 = vmmov 0   ;;  %vm4155_vm1 = vcmask 254976   ;;  %vm166_vm2 = vcmask 261120   ;;  %s3218_s8 = smov 32   ;;  %s3219_s9 = smov 96   ;;  %s4149_s0 = inlined_call_operand.vmem [shape: bf16[2,8,256], index: 0, kind: input, shape index: {}, may-alias: {0,1}]   ;;  %s4150_s1 = inlined_call_operand.vmem [shape: bf16[2,8,256], index: 1, kind: input, shape index: {}, may-alias: {0,1}]   ;;  %s4151_s2 = inlined_call_operand.vmem [shape: bf16[32,128], index: 2, kind: input, shape index: {}]   ;;  %s4152_s3 = inlined_call_operand.vmem [shape: bf16[32,128], index: 3, kind: input, shape index: {}]   ;;  %s4153_s4 = inlined_call_operand.vmem [shape: bf16[2,8,32], index: 4, kind: output, shape index: {0}]   ;;  %s4154_s5 = inlined_call_operand.vmem [shape: bf16[2,8,32], index: 5, kind: output, shape index: {1}]  }
   0x1   :  { %v3253_v0 = vld [vmem:[%s4151_s2 + $0x8] sm:$0xff]   ;;  %2818 = vmatprep.subr.bf16.mxu0 %v3215_v1  ;;  %2826 = vmatprep.subr.bf16.mxu1 %v3215_v1  ;;  %v3266_v3 = vld [vmem:[%s4151_s2] sm:$0xff]   ;;  %136 = vst.msk [vmem:[#allocation2] sm:$0x3] %vm4155_vm1, %v3215_v1  ;;  %137 = vst.msk [vmem:[#allocation3] sm:$0x3] %vm4155_vm1, %v3215_v1 }
   0x2   :  { %v3260_v2 = vld [vmem:[%s4152_s3 + $0x8] sm:$0xff]   ;;  %2819 = vmatpush3.bf16.msra.mxu0 %v3253_v0  ;;  %2822 = vmatprep.mubr.msk.bf16.mxu0 %vm3216_vm0, %v3215_v1  ;;  %v3275_v4 = vld [vmem:[%s4152_s3] sm:$0xff]   ;;  %138 = vst.msk [vmem:[#allocation4] sm:$0x3] %vm4155_vm1, %v3215_v1  ;;  %139 = vst.msk [vmem:[#allocation5] sm:$0x3] %vm4155_vm1, %v3215_v1 }
   0x3   :  { %2827 = vmatpush3.bf16.msra.mxu1 %v3260_v2  ;;  %2820 = vmatprep.subr.bf16.mxu0 %v3215_v1  ;;  %v29_v5 = vld [vmem:[%s4149_s0] sm:$0xf]  ;;  %v31_v6 = vld [vmem:[%s4149_s0 + $0x8] sm:$0xf]  ;;  %v2652_v11 = vld [vmem:[%s4150_s1 + $0x4] sm:$0xf] }
   0x4   :  { %2828 = vmatprep.subr.bf16.mxu1 %v3215_v1  ;;  %2830 = vmatprep.mubr.msk.bf16.mxu1 %vm3216_vm0, %v3215_v1  ;;  %30 = vst [vmem:[#allocation6] sm:$0xf] %v29_v5  ;;  %32 = vst [vmem:[#allocation6 + $0x4] sm:$0xf] %v31_v6  ;;  %v2653_v12 = vld [vmem:[%s4150_s1 + $0xc] sm:$0xf] }
   0x5   :  { %82 = vst [vmem:[#allocation7] sm:$0xf] %v2652_v11  ;;  %84 = vst [vmem:[#allocation7 + $0x4] sm:$0xf] %v2653_v12  ;;  %s3217_s1 = smov 64   ;;  %vm402_vm3 = vcmask 1041409  }
   0x6   :  { %2821 = vmatpush3.bf16.msra.mxu0 %v3266_v3  ;;  %vm4156_vm4 = vcmask 261127   ;;  %vm428_vm5 = vcmask 253952   ;;  %vm716_vm6 = vcmask 1042434   ;;  %vm734_vm7 = vcmask 1047559  }
   0x7   :  { %2829 = vmatpush3.bf16.msra.mxu1 %v3275_v4  ;;  %2834 = vmatprep.subr.bf16.mxu0 %v3215_v1  ;;  %vm721_vm8 = vcmask 256001   ;;  %vm739_vm9 = vcmask 261126   ;;  %vm1024_vm10 = vcmask 1043459   ;;  %vm1042_vm11 = vcmask 1046534  }
   0x8   :  { %2842 = vmatprep.subr.bf16.mxu1 %v3215_v1  ;;  %v152_v7 = vld [vmem:[#allocation2] sm:$0x3]  ;;  %v284_v39 = vld [vmem:[#allocation3] sm:$0x3]  ;;  %vm1029_vm12 = vcmask 257026   ;;  %vm1047_vm13 = vcmask 260101  }
   0x9   :  { %v220_v8 = vld [vmem:[#allocation4] sm:$0x3]  ;;  %v153_v9 = vpack.c.bf16 %v152_v7, %v152_v7  ;;  %v341_v38 = vld [vmem:[#allocation5] sm:$0x3]  ;;  %v300_v43 = vrot.slane %v284_v39, 1  ;;  %vm1334_vm14 = vcmask 1044484  }
   0xa   :  { %v221_v10 = vpack.c.bf16 %v220_v8, %v220_v8  ;;  %v358_v42 = vrot.slane %v341_v38, 2  ;;  %v357_v44 = vrot.slane %v341_v38, 1  ;;  %vm1352_vm15 = vcmask 1045509  }
   0xb   :  { %2823 = vmatmul.mubr.msk.bf16.vlgmr.msra.gmra.mxu0 %vm166_vm2, %v153_v9  ;;  %v148_v13 = vld [vmem:[#allocation6] sm:$0x1]  ;;  %v149_v14 = vld [vmem:[#allocation6 + $0x4] sm:$0x1] }
   0xc   :  { %2831 = vmatmul.mubr.msk.bf16.vlgmr.msra.gmra.mxu1 %vm166_vm2, %v221_v10  ;;  %2835 = vmatpush3.bf16.msra.mxu0 %v3253_v0  ;;  %v150_v15 = vunpack.c.l.bf16 %v148_v13  ;;  %v151_v16 = vunpack.c.l.bf16 %v149_v14  ;;  %v216_v17 = vld [vmem:[#allocation7] sm:$0x8]  ;;  %v217_v19 = vld [vmem:[#allocation7 + $0x4] sm:$0x8] }
   0xd   :  { %2843 = vmatpush3.bf16.msra.mxu1 %v3260_v2  ;;  %2836 = vmatprep.subr.bf16.mxu0 %v3215_v1  ;;  %v218_v24 = vunpack.c.l.bf16 %v216_v17  ;;  %v219_v28 = vunpack.c.l.bf16 %v217_v19 }
   0xe   :  { %2838 = vmatprep.mubr.msk.bf16.mxu0 %vm3216_vm0, %v3215_v1  ;;  %2844 = vmatprep.subr.bf16.mxu1 %v3215_v1 }
   0xf   :  { %2846 = vmatprep.mubr.msk.bf16.mxu1 %vm3216_vm0, %v3215_v1 }
  0x10   :  { %2837 = vmatpush3.bf16.msra.mxu0 %v3266_v3 }
  0x11   :  { %2845 = vmatpush3.bf16.msra.mxu1 %v3275_v4  ;;  %2850 = vmatprep.subr.bf16.mxu0 %v3215_v1 }
  0x12   :  { %2858 = vmatprep.subr.bf16.mxu1 %v3215_v1 }
  0xcb   :  { %v204_v18 = vpop.f32.mrf.mxu0 }
  0xcc   :  { %v271_v20 = vpop.f32.mrf.mxu1  ;;  %v211_v21 = vrot.slane %v204_v18, 1  ;;  %v214_v22 = vadd.f32 %v204_v18, %v150_v15 }
  0xcd   :  { %v2824_v23 = vpop.f32.mrf.mxu0  ;;  %v278_v25 = vrot.slane %v271_v20, 1  ;;  %v279_v29 = vrot.slane %v271_v20, 2 }
  0xce   :  { %v2832_v26 = vpop.f32.mrf.mxu1  ;;  %v215_v27 = vadd.f32 %v211_v21, %v151_v16  ;;  %2955 = vtanh.f32 %v214_v22  ;;  %v2660_v45 = vmul.f32 -1.442695, %v214_v22 }
  0xcf   :  { %v207_v30 = vpop.f32.mrf.mxu0  ;;  %v282_v32 = vadd.f32 %v278_v25, %v218_v24  ;;  %v283_v35 = vadd.f32 %v279_v29, %v219_v28 }
  0xd0   :  { %v274_v31 = vpop.f32.mrf.mxu1  ;;  %2957 = vtanh.f32 %v215_v27  ;;  %v2661_v46 = vmul.f32 -1.442695, %v215_v27 }
  0xd1   :  { %v2825_v33 = vpop.f32.mrf.mxu0  ;;  %2959 = vtanh.f32 %v282_v32  ;;  %v2663_v47 = vmul.f32 -1.442695, %v283_v35  ;;  %v2662_v48 = vmul.f32 -1.442695, %v282_v32 }
  0xd2   :  { %v2833_v34 = vpop.f32.mrf.mxu1  ;;  %2961 = vtanh.f32 %v283_v35 }
  0xd3   :  { %2963 = vpow2.f32 %v2660_v45 }
  0xd4   :  { %2965 = vpow2.f32 %v2661_v46 }
  0xd5   :  { %2967 = vpow2.f32 %v2663_v47 }
  0xd6   :  { %2969 = vpow2.f32 %v2662_v48 }
  0xdb   :  { %v2956_v36 = vpop.eup %2955 }
  0xdc   :  { %311 = vrot.lane.b32.xlu1 %v2956_v36, %s3217_s1 }
  0xdd   :  { %v2958_v37 = vpop.eup %2957 }
  0xde   :  { %313 = vrot.lane.b32.xlu0 %v2958_v37, %s3217_s1  ;;  %v2960_v40 = vpop.eup %2959 }
  0xdf   :  { %v2962_v41 = vpop.eup %2961 }
  0xe0   :  { %369 = vrot.lane.b32.xlu1 %v2960_v40, %s3217_s1  ;;  %v2964_v49 = vpop.eup %2963 }
  0xe1   :  { %v2966_v50 = vpop.eup %2965  ;;  %v291_v51 = vadd.f32 1.0, %v2964_v49 }
  0xe2   :  { %371 = vrot.lane.b32.xlu0 %v2962_v41, %s3217_s1  ;;  %v292_v52 = vadd.f32 1.0, %v2966_v50  ;;  %v2968_v53 = vpop.eup %2967 }
  0xe3   :  { %2971 = vrcp.f32 %v291_v51  ;;  %v349_v54 = vadd.f32 1.0, %v2968_v53  ;;  %v2970_v55 = vpop.eup %2969 }
  0xe4   :  { %361 = vrot.lane.b32.xlu1 %v358_v42, %s3218_s8  ;;  %2973 = vrcp.f32 %v292_v52  ;;  %v348_v56 = vadd.f32 1.0, %v2970_v55  ;;  %v487_v55 = vld [vmem:[#allocation6] sm:$0x1] }
  0xe5   :  { %2975 = vrcp.f32 %v349_v54  ;;  %v488_v54 = vld [vmem:[#allocation6 + $0x4] sm:$0x1] }
  0xe6   :  { %303 = vrot.lane.b32.xlu0 %v300_v43, %s3218_s8  ;;  %2977 = vrcp.f32 %v348_v56  ;;  %v490_v56 = vunpack.c.l.bf16 %v488_v54 }
  0xea   :  { %301 = vrot.lane.b32.xlu0 %v284_v39, %s3218_s8 }
  0xee   :  { %359 = vrot.lane.b32.xlu0 %v357_v44, %s3218_s8 }
  0xf0   :  { %v2972_v57 = vpop.eup %2971 }
  0xf1   :  { %v2974_v60 = vpop.eup %2973 }
  0xf2   :  { %v2976_v63 = vpop.eup %2975 }
  0xf3   :  { %v2978_v8 = vpop.eup %2977 }
 0x14e   :  { %v312_v58 = vpop.permute.xlu1 %311 }
 0x14f   :  { %v317_v59 = vmul.f32 %v2972_v57, %v312_v58 }
 0x150   :  { %v314_v61 = vpop.permute.xlu0 %313 }
 0x151   :  { %321 = vrot.lane.b32.xlu0 %v317_v59, %s3218_s8  ;;  %v318_v62 = vmul.f32 %v2974_v60, %v314_v61  ;;  %v542_v59 = vld [vmem:[#allocation7] sm:$0x8] }
 0x152   :  { %v370_v7 = vpop.permute.xlu1 %369 }
 0x153   :  { %323 = vrot.lane.b32.xlu1 %v318_v62, %s3218_s8  ;;  %v375_v9 = vmul.f32 %v2978_v8, %v370_v7 }
 0x154   :  { %v372_v5 = vpop.permute.xlu0 %371 }
 0x155   :  { %v376_v6 = vmul.f32 %v2976_v63, %v372_v5 }
 0x156   :  { %v362_v12 = vpop.permute.xlu1 %361 }
 0x157   :  { %381 = vrot.lane.b32.xlu1 %v376_v6, %s3218_s8  ;;  %v366_v21 = vmul.f32 %v2976_v63, %v362_v12  ;;  %v544_v6 = vunpack.c.l.bf16 %v542_v59 }
 0x158   :  { %v304_v10 = vpop.permute.xlu0 %303 }
 0x159   :  { %v308_v14 = vmul.f32 %v2974_v60, %v304_v10 }
 0x15b   :  { %379 = vrot.lane.b32.xlu1 %v375_v9, %s3218_s8 }
 0x15c   :  { %v302_v11 = vpop.permute.xlu0 %301 }
 0x15d   :  { %v307_v17 = vmul.f32 %v2972_v57, %v302_v11 }
 0x160   :  { %v360_v13 = vpop.permute.xlu0 %359 }
 0x161   :  { %v365_v25 = vmul.f32 %v2978_v8, %v360_v13 }
 0x1c3   :  { %v322_v15 = vpop.permute.xlu0 %321 }
 0x1c4   :  { %v327_v19 = vadd.f32 %v322_v15, %v307_v17 }
 0x1c5   :  { %v324_v16 = vpop.permute.xlu1 %323 }
 0x1c6   :  { %v328_v18 = vadd.f32 %v324_v16, %v308_v14 }
 0x1c8   :  { %2979 = vtanh.f32 %v328_v18  ;;  %v411_v20 = vrot.slane %v328_v18, 7 }
 0x1c9   :  { %v382_v22 = vpop.permute.xlu1 %381  ;;  %2981 = vtanh.f32 %v327_v19 }
 0x1ca   :  { %v412_v23 = vsel %vm402_vm3, %v411_v20, %v327_v19  ;;  %v386_v24 = vadd.f32 %v382_v22, %v366_v21 }
 0x1cc   :  { %2983 = vtanh.f32 %v386_v24  ;;  %v432_v43 = vrot.slane %v386_v24, 7 }
 0x1cd   :  { %v380_v26 = vpop.permute.xlu1 %379 }
 0x1ce   :  { %v385_v27 = vadd.f32 %v380_v26, %v365_v25 }
 0x1d0   :  { %2985 = vtanh.f32 %v385_v27 }
 0x1d5   :  { %v2980_v28 = vpop.eup %2979 }
 0x1d6   :  { %335 = vrot.lane.b32.xlu0 %v2980_v28, %s3217_s1  ;;  %v2982_v29 = vpop.eup %2981 }
 0x1d9   :  { %v2984_v30 = vpop.eup %2983 }
 0x1da   :  { %333 = vrot.lane.b32.xlu0 %v2982_v29, %s3217_s1  ;;  %393 = vrot.lane.b32.xlu1 %v2984_v30, %s3217_s1 }
 0x1dd   :  { %v2986_v31 = vpop.eup %2985 }
 0x1de   :  { %391 = vrot.lane.b32.xlu1 %v2986_v31, %s3217_s1 }
 0x248   :  { %v336_v32 = vpop.permute.xlu0 %335 }
 0x249   :  { %v3335_v33 = vmul.f32 %v2974_v60, %v336_v32  ;;  %v543_v60 = vld [vmem:[#allocation7 + $0x4] sm:$0x8] }
 0x24a   :  { %v545_v7 = vunpack.c.l.bf16 %v543_v60 }
 0x24b   :  { %v401_v35 = vrot.slane %v3335_v33, 7 }
 0x24c   :  { %v334_v34 = vpop.permute.xlu0 %333  ;;  %v394_v36 = vpop.permute.xlu1 %393 }
 0x24d   :  { %v3338_v37 = vmul.f32 %v2972_v57, %v334_v34  ;;  %v3340_v38 = vmul.f32 %v2976_v63, %v394_v36  ;;  %v489_v57 = vunpack.c.l.bf16 %v487_v55 }
 0x24f   :  { %v403_v39 = vsel %vm402_vm3, %v401_v35, %v3338_v37  ;;  %v419_v41 = vrot.slane %v3340_v38, 7 }
 0x250   :  { %404 = vrot.lane.b32.xlu0 %v403_v39, %s3218_s8  ;;  %v392_v40 = vpop.permute.xlu1 %391 }
 0x251   :  { %v3346_v42 = vmul.f32 %v2978_v8, %v392_v40 }
 0x253   :  { %420 = vrot.lane.b32.xlu1 %v3346_v42, %s3218_s8 }
 0x254   :  { %422 = vrot.lane.b32.xlu0 %v419_v41, %s3218_s8 }
 0x257   :  { %413 = vrot.lane.b32.xlu1 %v412_v23, %s3219_s9 }
 0x258   :  { %433 = vrot.lane.b32.xlu0 %v385_v27, %s3219_s9 }
 0x25b   :  { %435 = vrot.lane.b32.xlu1 %v432_v43, %s3219_s9 }
 0x2c2   :  { %v405_v44 = vpop.permute.xlu0 %404 }
 0x2c3   :  { %408 = vst.msk [vmem:[#allocation2] sm:$0x3] %vm4155_vm1, %v405_v44 }
 0x2c5   :  { %v421_v45 = vpop.permute.xlu1 %420 }
 0x2c6   :  { %v423_v46 = vpop.permute.xlu0 %422  ;;  %427 = vst.msk [vmem:[#allocation4 - $0x7] sm:$0x80] %vm4156_vm4, %v421_v45 }
 0x2c7   :  { %429 = vst.msk [vmem:[#allocation4 + $0x1] sm:$0x1] %vm428_vm5, %v423_v46 }
 0x2c9   :  { %v414_v47 = vpop.permute.xlu1 %413 }
 0x2ca   :  { %v434_v48 = vpop.permute.xlu0 %433  ;;  %v491_v49 = vld [vmem:[#allocation2] sm:$0x3]  ;;  %416 = vst.msk [vmem:[#allocation3] sm:$0x3] %vm4155_vm1, %v414_v47  ;;  %vm1339_vm1 = vcmask 258051  }
 0x2cb   :  { %439 = vst.msk [vmem:[#allocation5 - $0x7] sm:$0x80] %vm4156_vm4, %v434_v48  ;;  %v492_v50 = vpack.c.bf16 %v491_v49, %v491_v49  ;;  %vm1357_vm4 = vcmask 259076  }
 0x2cd   :  { %2839 = vmatmul.mubr.msk.bf16.vlgmr.msra.gmra.mxu0 %vm166_vm2, %v492_v50  ;;  %v436_v51 = vpop.permute.xlu1 %435 }
 0x2ce   :  { %v546_v52 = vld [vmem:[#allocation4] sm:$0x3]  ;;  %2851 = vmatpush3.bf16.msra.mxu0 %v3253_v0  ;;  %2854 = vmatprep.mubr.msk.bf16.mxu0 %vm3216_vm0, %v3215_v1  ;;  %440 = vst.msk [vmem:[#allocation5 + $0x1] sm:$0x1] %vm428_vm5, %v436_v51 }
 0x2cf   :  { %v547_v53 = vpack.c.bf16 %v546_v52, %v546_v52  ;;  %2852 = vmatprep.subr.bf16.mxu0 %v3215_v1 }
 0x2d1   :  { %2847 = vmatmul.mubr.msk.bf16.vlgmr.msra.gmra.mxu1 %vm166_vm2, %v547_v53  ;;  %v598_v22 = vld [vmem:[#allocation3] sm:$0x3] }
 0x2d2   :  { %2853 = vmatpush3.bf16.msra.mxu0 %v3266_v3  ;;  %2859 = vmatpush3.bf16.msra.mxu1 %v3260_v2  ;;  %v614_v23 = vrot.slane %v598_v22, 7 }
 0x2d3   :  { %2860 = vmatprep.subr.bf16.mxu1 %v3215_v1  ;;  %2862 = vmatprep.mubr.msk.bf16.mxu1 %vm3216_vm0, %v3215_v1 }
 0x2d4   :  { %2866 = vmatprep.subr.bf16.mxu0 %v3215_v1 }
 0x2d5   :  { %v655_v24 = vld [vmem:[#allocation5] sm:$0x3] }
 0x2d6   :  { %2861 = vmatpush3.bf16.msra.mxu1 %v3275_v4  ;;  %v672_v25 = vrot.slane %v655_v24, 3  ;;  %v671_v26 = vrot.slane %v655_v24, 2 }
 0x2d7   :  { %2874 = vmatprep.subr.bf16.mxu1 %v3215_v1 }
 0x38d   :  { %v530_v58 = vpop.f32.mrf.mxu0 }
 0x38e   :  { %v537_v61 = vrot.slane %v530_v58, 7  ;;  %v541_v62 = vadd.f32 %v530_v58, %v490_v56 }
 0x38f   :  { %v2840_v63 = vpop.f32.mrf.mxu0 }
 0x390   :  { %v540_v5 = vadd.f32 %v537_v61, %v489_v57  ;;  %2987 = vtanh.f32 %v541_v62  ;;  %v2671_v27 = vmul.f32 -1.442695, %v541_v62 }
 0x391   :  { %v533_v8 = vpop.f32.mrf.mxu0  ;;  %v585_v9 = vpop.f32.mrf.mxu1 }
 0x392   :  { %v592_v10 = vrot.slane %v585_v9, 2  ;;  %v593_v11 = vrot.slane %v585_v9, 3  ;;  %2989 = vtanh.f32 %v540_v5  ;;  %v2670_v28 = vmul.f32 -1.442695, %v540_v5 }
 0x393   :  { %v2841_v12 = vpop.f32.mrf.mxu0  ;;  %v2848_v13 = vpop.f32.mrf.mxu1 }
 0x394   :  { %v596_v14 = vadd.f32 %v592_v10, %v544_v6  ;;  %v597_v15 = vadd.f32 %v593_v11, %v545_v7 }
 0x395   :  { %v588_v16 = vpop.f32.mrf.mxu1 }
 0x396   :  { %2991 = vtanh.f32 %v596_v14  ;;  %v2672_v29 = vmul.f32 -1.442695, %v596_v14  ;;  %v2673_v30 = vmul.f32 -1.442695, %v597_v15 }
 0x397   :  { %2993 = vtanh.f32 %v597_v15  ;;  %v2849_v17 = vpop.f32.mrf.mxu1 }
 0x398   :  { %2995 = vpow2.f32 %v2671_v27 }
 0x399   :  { %2997 = vpow2.f32 %v2670_v28 }
 0x39a   :  { %2999 = vpow2.f32 %v2672_v29 }
 0x39b   :  { %3001 = vpow2.f32 %v2673_v30 }
 0x39d   :  { %v2988_v18 = vpop.eup %2987 }
 0x39e   :  { %627 = vrot.lane.b32.xlu0 %v2988_v18, %s3217_s1 }
 0x39f   :  { %v2990_v19 = vpop.eup %2989 }
 0x3a0   :  { %625 = vrot.lane.b32.xlu1 %v2990_v19, %s3217_s1 }
 0x3a3   :  { %v2992_v20 = vpop.eup %2991 }
 0x3a4   :  { %v2994_v21 = vpop.eup %2993  ;;  %683 = vrot.lane.b32.xlu1 %v2992_v20, %s3217_s1 }
 0x3a5   :  { %685 = vrot.lane.b32.xlu0 %v2994_v21, %s3217_s1  ;;  %v2996_v31 = vpop.eup %2995 }
 0x3a6   :  { %v606_v32 = vadd.f32 1.0, %v2996_v31  ;;  %v2998_v34 = vpop.eup %2997 }
 0x3a7   :  { %v3000_v35 = vpop.eup %2999  ;;  %v605_v36 = vadd.f32 1.0, %v2998_v34 }
 0x3a8   :  { %615 = vrot.lane.b32.xlu1 %v614_v23, %s3218_s8  ;;  %3003 = vrcp.f32 %v606_v32  ;;  %v3002_v39 = vpop.eup %3001  ;;  %v662_v40 = vadd.f32 1.0, %v3000_v35 }
 0x3a9   :  { %617 = vrot.lane.b32.xlu0 %v598_v22, %s3218_s8  ;;  %3005 = vrcp.f32 %v605_v36  ;;  %v663_v41 = vadd.f32 1.0, %v3002_v39 }
 0x3aa   :  { %3007 = vrcp.f32 %v662_v40 }
 0x3ab   :  { %3009 = vrcp.f32 %v663_v41 }
 0x3ac   :  { %675 = vrot.lane.b32.xlu1 %v672_v25, %s3218_s8 }
 0x3b0   :  { %673 = vrot.lane.b32.xlu1 %v671_v26, %s3218_s8 }
 0x3b5   :  { %v3004_v43 = vpop.eup %3003 }
 0x3b6   :  { %v3006_v47 = vpop.eup %3005 }
 0x3b7   :  { %v3008_v49 = vpop.eup %3007 }
 0x3b8   :  { %v3010_v52 = vpop.eup %3009 }
 0x410   :  { %v628_v44 = vpop.permute.xlu0 %627 }
 0x411   :  { %v632_v45 = vmul.f32 %v3004_v43, %v628_v44  ;;  %v794_v44 = vld [vmem:[#allocation6 + $0x4] sm:$0x2] }
 0x412   :  { %v626_v46 = vpop.permute.xlu1 %625 }
 0x413   :  { %637 = vrot.lane.b32.xlu0 %v632_v45, %s3218_s8  ;;  %v631_v48 = vmul.f32 %v3006_v47, %v626_v46  ;;  %v796_v46 = vunpack.c.l.bf16 %v794_v44 }
 0x416   :  { %v684_v50 = vpop.permute.xlu1 %683 }
 0x417   :  { %v686_v51 = vpop.permute.xlu0 %685  ;;  %635 = vrot.lane.b32.xlu0 %v631_v48, %s3218_s8  ;;  %v689_v53 = vmul.f32 %v3008_v49, %v684_v50 }
 0x418   :  { %v690_v54 = vmul.f32 %v3010_v52, %v686_v51  ;;  %v849_v51 = vld [vmem:[#allocation7] sm:$0x4] }
 0x419   :  { %693 = vrot.lane.b32.xlu1 %v689_v53, %s3218_s8 }
 0x41a   :  { %v616_v55 = vpop.permute.xlu1 %615 }
 0x41b   :  { %695 = vrot.lane.b32.xlu0 %v690_v54, %s3218_s8  ;;  %v618_v56 = vpop.permute.xlu0 %617  ;;  %v621_v61 = vmul.f32 %v3006_v47, %v616_v55  ;;  %v851_v55 = vunpack.c.l.bf16 %v849_v51 }
 0x41c   :  { %v622_v58 = vmul.f32 %v3004_v43, %v618_v56 }
 0x41e   :  { %v676_v57 = vpop.permute.xlu1 %675 }
 0x41f   :  { %v680_v8 = vmul.f32 %v3010_v52, %v676_v57 }
 0x422   :  { %v674_v62 = vpop.permute.xlu1 %673 }
 0x423   :  { %v679_v7 = vmul.f32 %v3008_v49, %v674_v62 }
 0x485   :  { %v638_v59 = vpop.permute.xlu0 %637 }
 0x486   :  { %v642_v60 = vadd.f32 %v638_v59, %v622_v58 }
 0x488   :  { %3011 = vtanh.f32 %v642_v60  ;;  %v725_v5 = vrot.slane %v642_v60, 7 }
 0x489   :  { %v636_v63 = vpop.permute.xlu0 %635 }
 0x48a   :  { %v641_v6 = vadd.f32 %v636_v63, %v621_v61 }
 0x48b   :  { %v694_v9 = vpop.permute.xlu1 %693 }
 0x48c   :  { %3013 = vtanh.f32 %v641_v6  ;;  %v726_v10 = vsel %vm716_vm6, %v725_v5, %v641_v6  ;;  %v699_v11 = vadd.f32 %v694_v9, %v679_v7 }
 0x48d   :  { %v696_v12 = vpop.permute.xlu0 %695 }
 0x48e   :  { %v700_v13 = vadd.f32 %v696_v12, %v680_v8  ;;  %3015 = vtanh.f32 %v699_v11 }
 0x490   :  { %3017 = vtanh.f32 %v700_v13  ;;  %v743_v14 = vrot.slane %v700_v13, 7 }
 0x492   :  { %v744_v15 = vsel %vm734_vm7, %v743_v14, %v699_v11 }
 0x495   :  { %v3012_v16 = vpop.eup %3011 }
 0x496   :  { %649 = vrot.lane.b32.xlu0 %v3012_v16, %s3217_s1 }
 0x499   :  { %v3014_v17 = vpop.eup %3013 }
 0x49a   :  { %647 = vrot.lane.b32.xlu1 %v3014_v17, %s3217_s1 }
 0x49b   :  { %v3016_v18 = vpop.eup %3015 }
 0x49d   :  { %v3018_v19 = vpop.eup %3017 }
 0x49e   :  { %705 = vrot.lane.b32.xlu1 %v3016_v18, %s3217_s1  ;;  %707 = vrot.lane.b32.xlu0 %v3018_v19, %s3217_s1 }
 0x508   :  { %v650_v20 = vpop.permute.xlu0 %649 }
 0x509   :  { %v3392_v21 = vmul.f32 %v3004_v43, %v650_v20 }
 0x50b   :  { %v715_v23 = vrot.slane %v3392_v21, 7 }
 0x50c   :  { %v648_v22 = vpop.permute.xlu1 %647 }
 0x50d   :  { %v3395_v24 = vmul.f32 %v3006_v47, %v648_v22 }
 0x50f   :  { %v717_v25 = vsel %vm716_vm6, %v715_v23, %v3395_v24 }
 0x510   :  { %v706_v26 = vpop.permute.xlu1 %705  ;;  %718 = vrot.lane.b32.xlu0 %v717_v25, %s3218_s8  ;;  %v708_v27 = vpop.permute.xlu0 %707 }
 0x511   :  { %v3400_v28 = vmul.f32 %v3010_v52, %v708_v27  ;;  %v3402_v29 = vmul.f32 %v3008_v49, %v706_v26  ;;  %v850_v52 = vld [vmem:[#allocation7 + $0x4] sm:$0x4] }
 0x512   :  { %v852_v56 = vunpack.c.l.bf16 %v850_v52 }
 0x513   :  { %v733_v30 = vrot.slane %v3400_v28, 7 }
 0x514   :  { %727 = vrot.lane.b32.xlu0 %v726_v10, %s3219_s9 }
 0x515   :  { %v735_v31 = vsel %vm734_vm7, %v733_v30, %v3402_v29 }
 0x516   :  { %736 = vrot.lane.b32.xlu1 %v735_v31, %s3218_s8 }
 0x51a   :  { %745 = vrot.lane.b32.xlu1 %v744_v15, %s3219_s9 }
 0x582   :  { %v719_v32 = vpop.permute.xlu0 %718 }
 0x583   :  { %722 = vst.msk [vmem:[#allocation2 - $0x1] sm:$0x6] %vm721_vm8, %v719_v32 }
 0x586   :  { %v728_v34 = vpop.permute.xlu0 %727 }
 0x587   :  { %730 = vst.msk [vmem:[#allocation3 - $0x1] sm:$0x6] %vm721_vm8, %v728_v34 }
 0x588   :  { %v737_v35 = vpop.permute.xlu1 %736 }
 0x589   :  { %740 = vst.msk [vmem:[#allocation4 - $0x6] sm:$0xc0] %vm739_vm9, %v737_v35 }
 0x58a   :  { %v797_v36 = vld [vmem:[#allocation2] sm:$0x3] }
 0x58b   :  { %v798_v39 = vpack.c.bf16 %v797_v36, %v797_v36 }
 0x58c   :  { %v746_v40 = vpop.permute.xlu1 %745 }
 0x58d   :  { %748 = vst.msk [vmem:[#allocation5 - $0x6] sm:$0xc0] %vm739_vm9, %v746_v40  ;;  %2855 = vmatmul.mubr.msk.bf16.vlgmr.msra.gmra.mxu0 %vm166_vm2, %v798_v39 }
 0x58e   :  { %2867 = vmatpush3.bf16.msra.mxu0 %v3253_v0  ;;  %2870 = vmatprep.mubr.msk.bf16.mxu0 %vm3216_vm0, %v3215_v1  ;;  %v793_v0 = vld [vmem:[#allocation6] sm:$0x2]  ;;  %v905_v10 = vld [vmem:[#allocation3] sm:$0x3] }
 0x58f   :  { %2868 = vmatprep.subr.bf16.mxu0 %v3215_v1  ;;  %v795_v45 = vunpack.c.l.bf16 %v793_v0  ;;  %v921_v12 = vrot.slane %v905_v10, 6  ;;  %v922_v13 = vrot.slane %v905_v10, 7 }
 0x590   :  { %v853_v41 = vld [vmem:[#allocation4] sm:$0x3] }
 0x591   :  { %v854_v43 = vpack.c.bf16 %v853_v41, %v853_v41 }
 0x592   :  { %2869 = vmatpush3.bf16.msra.mxu0 %v3266_v3 }
 0x593   :  { %2863 = vmatmul.mubr.msk.bf16.vlgmr.msra.gmra.mxu1 %vm166_vm2, %v854_v43  ;;  %2882 = vmatprep.subr.bf16.mxu0 %v3215_v1 }
 0x594   :  { %2875 = vmatpush3.bf16.msra.mxu1 %v3260_v2  ;;  %2878 = vmatprep.mubr.msk.bf16.mxu1 %vm3216_vm0, %v3215_v1  ;;  %v963_v14 = vld [vmem:[#allocation5] sm:$0x3] }
 0x595   :  { %2876 = vmatprep.subr.bf16.mxu1 %v3215_v1  ;;  %v980_v15 = vrot.slane %v963_v14, 4  ;;  %v979_v16 = vrot.slane %v963_v14, 3 }
 0x598   :  { %2877 = vmatpush3.bf16.msra.mxu1 %v3275_v4 }
 0x599   :  { %2890 = vmatprep.subr.bf16.mxu1 %v3215_v1 }
 0x64d   :  { %v836_v47 = vpop.f32.mrf.mxu0 }
 0x64e   :  { %v843_v48 = vrot.slane %v836_v47, 6  ;;  %v844_v49 = vrot.slane %v836_v47, 7 }
 0x64f   :  { %v2856_v50 = vpop.f32.mrf.mxu0 }
 0x650   :  { %v847_v2 = vadd.f32 %v843_v48, %v795_v45  ;;  %v848_v53 = vadd.f32 %v844_v49, %v796_v46 }
 0x651   :  { %v839_v54 = vpop.f32.mrf.mxu0 }
 0x652   :  { %3019 = vtanh.f32 %v847_v2  ;;  %v2681_v17 = vmul.f32 -1.442695, %v848_v53  ;;  %v2680_v18 = vmul.f32 -1.442695, %v847_v2 }
 0x653   :  { %3021 = vtanh.f32 %v848_v53  ;;  %v2857_v57 = vpop.f32.mrf.mxu0  ;;  %v892_v58 = vpop.f32.mrf.mxu1 }
 0x654   :  { %v899_v59 = vrot.slane %v892_v58, 3  ;;  %v900_v60 = vrot.slane %v892_v58, 4 }
 0x655   :  { %v2864_v61 = vpop.f32.mrf.mxu1 }
 0x656   :  { %v903_v62 = vadd.f32 %v899_v59, %v851_v55  ;;  %v904_v63 = vadd.f32 %v900_v60, %v852_v56 }
 0x657   :  { %v895_v5 = vpop.f32.mrf.mxu1 }
 0x658   :  { %3023 = vtanh.f32 %v903_v62  ;;  %v2682_v19 = vmul.f32 -1.442695, %v903_v62  ;;  %v2683_v20 = vmul.f32 -1.442695, %v904_v63 }
 0x659   :  { %3025 = vtanh.f32 %v904_v63  ;;  %v2865_v6 = vpop.f32.mrf.mxu1 }
 0x65a   :  { %3027 = vpow2.f32 %v2681_v17 }
 0x65b   :  { %3029 = vpow2.f32 %v2680_v18 }
 0x65c   :  { %3031 = vpow2.f32 %v2682_v19 }
 0x65d   :  { %3033 = vpow2.f32 %v2683_v20 }
 0x65f   :  { %v3020_v7 = vpop.eup %3019 }
 0x660   :  { %v3022_v8 = vpop.eup %3021  ;;  %933 = vrot.lane.b32.xlu1 %v3020_v7, %s3217_s1 }
 0x661   :  { %935 = vrot.lane.b32.xlu0 %v3022_v8, %s3217_s1 }
 0x665   :  { %v3024_v9 = vpop.eup %3023 }
 0x666   :  { %v3026_v11 = vpop.eup %3025  ;;  %991 = vrot.lane.b32.xlu1 %v3024_v9, %s3217_s1 }
 0x667   :  { %993 = vrot.lane.b32.xlu0 %v3026_v11, %s3217_s1  ;;  %v3028_v22 = vpop.eup %3027 }
 0x668   :  { %v913_v23 = vadd.f32 1.0, %v3028_v22  ;;  %v3030_v25 = vpop.eup %3029 }
 0x669   :  { %v3032_v26 = vpop.eup %3031  ;;  %v912_v27 = vadd.f32 1.0, %v3030_v25 }
 0x66a   :  { %923 = vrot.lane.b32.xlu1 %v921_v12, %s3218_s8  ;;  %3035 = vrcp.f32 %v913_v23  ;;  %v3034_v30 = vpop.eup %3033  ;;  %v970_v31 = vadd.f32 1.0, %v3032_v26 }
 0x66b   :  { %925 = vrot.lane.b32.xlu0 %v922_v13, %s3218_s8  ;;  %3037 = vrcp.f32 %v912_v27  ;;  %v971_v32 = vadd.f32 1.0, %v3034_v30 }
 0x66c   :  { %3039 = vrcp.f32 %v970_v31 }
 0x66d   :  { %3041 = vrcp.f32 %v971_v32 }
 0x66e   :  { %983 = vrot.lane.b32.xlu1 %v980_v15, %s3218_s8 }
 0x672   :  { %981 = vrot.lane.b32.xlu1 %v979_v16, %s3218_s8 }
 0x677   :  { %v3036_v34 = vpop.eup %3035 }
 0x678   :  { %v3038_v40 = vpop.eup %3037 }
 0x679   :  { %v3040_v41 = vpop.eup %3039 }
 0x67a   :  { %v3042_v46 = vpop.eup %3041 }
 0x6d2   :  { %v934_v36 = vpop.permute.xlu1 %933 }
 0x6d3   :  { %v936_v35 = vpop.permute.xlu0 %935  ;;  %v939_v43 = vmul.f32 %v3038_v40, %v934_v36 }
 0x6d4   :  { %v940_v39 = vmul.f32 %v3036_v34, %v936_v35  ;;  %v3472_v35 = vld [vmem:[%s4151_s2 + $0x8] sm:$0xff]  }
 0x6d6   :  { %945 = vrot.lane.b32.xlu0 %v940_v39, %s3218_s8 }
 0x6d8   :  { %v992_v0 = vpop.permute.xlu1 %991 }
 0x6d9   :  { %v997_v44 = vmul.f32 %v3040_v41, %v992_v0  ;;  %v994_v45 = vpop.permute.xlu0 %993 }
 0x6da   :  { %943 = vrot.lane.b32.xlu0 %v939_v43, %s3218_s8  ;;  %v998_v47 = vmul.f32 %v3042_v46, %v994_v45 }
 0x6db   :  { %1001 = vrot.lane.b32.xlu1 %v997_v44, %s3218_s8 }
 0x6dc   :  { %v924_v48 = vpop.permute.xlu1 %923 }
 0x6dd   :  { %v926_v50 = vpop.permute.xlu0 %925  ;;  %v929_v54 = vmul.f32 %v3038_v40, %v924_v48  ;;  %v1159_v48 = vld [vmem:[#allocation7] sm:$0x4] }
 0x6de   :  { %1003 = vrot.lane.b32.xlu0 %v998_v47, %s3218_s8  ;;  %v930_v51 = vmul.f32 %v3036_v34, %v926_v50 }
 0x6e0   :  { %v984_v49 = vpop.permute.xlu1 %983 }
 0x6e1   :  { %v988_v61 = vmul.f32 %v3042_v46, %v984_v49  ;;  %v1160_v49 = vld [vmem:[#allocation7 + $0x4] sm:$0x4] }
 0x6e4   :  { %v982_v2 = vpop.permute.xlu1 %981 }
 0x6e5   :  { %v987_v55 = vmul.f32 %v3040_v41, %v982_v2  ;;  %v1161_v2 = vunpack.c.l.bf16 %v1159_v48 }
 0x748   :  { %v946_v52 = vpop.permute.xlu0 %945 }
 0x749   :  { %v950_v53 = vadd.f32 %v946_v52, %v930_v51 }
 0x74b   :  { %3043 = vtanh.f32 %v950_v53  ;;  %v1033_v57 = vrot.slane %v950_v53, 7  ;;  %v1162_v53 = vunpack.c.l.bf16 %v1160_v49 }
 0x74c   :  { %v944_v56 = vpop.permute.xlu0 %943 }
 0x74d   :  { %v949_v58 = vadd.f32 %v944_v56, %v929_v54  ;;  %v1002_v59 = vpop.permute.xlu1 %1001 }
 0x74e   :  { %v1007_v60 = vadd.f32 %v1002_v59, %v987_v55 }
 0x74f   :  { %3045 = vtanh.f32 %v949_v58  ;;  %v1034_v62 = vsel %vm1024_vm10, %v1033_v57, %v949_v58 }
 0x750   :  { %v1004_v63 = vpop.permute.xlu0 %1003  ;;  %3047 = vtanh.f32 %v1007_v60 }
 0x751   :  { %v1008_v5 = vadd.f32 %v1004_v63, %v988_v61 }
 0x753   :  { %3049 = vtanh.f32 %v1008_v5  ;;  %v1051_v6 = vrot.slane %v1008_v5, 7 }
 0x755   :  { %v1052_v7 = vsel %vm1042_vm11, %v1051_v6, %v1007_v60 }
 0x758   :  { %v3044_v8 = vpop.eup %3043 }
 0x759   :  { %957 = vrot.lane.b32.xlu0 %v3044_v8, %s3217_s1 }
 0x75c   :  { %v3046_v9 = vpop.eup %3045 }
 0x75d   :  { %955 = vrot.lane.b32.xlu1 %v3046_v9, %s3217_s1  ;;  %v3048_v10 = vpop.eup %3047 }
 0x760   :  { %v3050_v11 = vpop.eup %3049 }
 0x761   :  { %1013 = vrot.lane.b32.xlu1 %v3048_v10, %s3217_s1  ;;  %1015 = vrot.lane.b32.xlu0 %v3050_v11, %s3217_s1 }
 0x7cb   :  { %v958_v12 = vpop.permute.xlu0 %957 }
 0x7cc   :  { %v3446_v13 = vmul.f32 %v3036_v34, %v958_v12 }
 0x7ce   :  { %v1023_v15 = vrot.slane %v3446_v13, 7 }
 0x7cf   :  { %v956_v14 = vpop.permute.xlu1 %955 }
 0x7d0   :  { %v3449_v16 = vmul.f32 %v3038_v40, %v956_v14  ;;  %v3484_v40 = vld [vmem:[%s4152_s3 + $0x8] sm:$0xff]  }
 0x7d2   :  { %v1025_v17 = vsel %vm1024_vm10, %v1023_v15, %v3449_v16 }
 0x7d3   :  { %v1014_v18 = vpop.permute.xlu1 %1013  ;;  %1026 = vrot.lane.b32.xlu0 %v1025_v17, %s3218_s8  ;;  %v1016_v19 = vpop.permute.xlu0 %1015 }
 0x7d4   :  { %v3454_v20 = vmul.f32 %v3042_v46, %v1016_v19  ;;  %v3456_v22 = vmul.f32 %v3040_v41, %v1014_v18  ;;  %v1104_v41 = vld [vmem:[#allocation6 + $0x4] sm:$0x2] }
 0x7d5   :  { %v1106_v0 = vunpack.c.l.bf16 %v1104_v41 }
 0x7d6   :  { %v1041_v23 = vrot.slane %v3454_v20, 7 }
 0x7d7   :  { %1035 = vrot.lane.b32.xlu0 %v1034_v62, %s3219_s9 }
 0x7d8   :  { %v1043_v25 = vsel %vm1042_vm11, %v1041_v23, %v3456_v22 }
 0x7d9   :  { %1044 = vrot.lane.b32.xlu1 %v1043_v25, %s3218_s8 }
 0x7dd   :  { %1053 = vrot.lane.b32.xlu1 %v1052_v7, %s3219_s9 }
 0x845   :  { %v1027_v26 = vpop.permute.xlu0 %1026 }
 0x846   :  { %1030 = vst.msk [vmem:[#allocation2 - $0x2] sm:$0xc] %vm1029_vm12, %v1027_v26 }
 0x849   :  { %v1036_v27 = vpop.permute.xlu0 %1035 }
 0x84a   :  { %1038 = vst.msk [vmem:[#allocation3 - $0x2] sm:$0xc] %vm1029_vm12, %v1036_v27 }
 0x84b   :  { %v1045_v30 = vpop.permute.xlu1 %1044 }
 0x84c   :  { %1048 = vst.msk [vmem:[#allocation4 - $0x5] sm:$0x60] %vm1047_vm13, %v1045_v30 }
 0x84d   :  { %v1107_v31 = vld [vmem:[#allocation2] sm:$0x3] }
 0x84e   :  { %v1108_v32 = vpack.c.bf16 %v1107_v31, %v1107_v31 }
 0x84f   :  { %v1054_v34 = vpop.permute.xlu1 %1053 }
 0x850   :  { %1056 = vst.msk [vmem:[#allocation5 - $0x5] sm:$0x60] %vm1047_vm13, %v1054_v34  ;;  %2871 = vmatmul.mubr.msk.bf16.vlgmr.msra.gmra.mxu0 %vm166_vm2, %v1108_v32 }
 0x851   :  { %2883 = vmatpush3.bf16.msra.mxu0 %v3472_v35  ;;  %2886 = vmatprep.mubr.msk.bf16.mxu0 %vm3216_vm0, %v3215_v1  ;;  %v1215_v6 = vld [vmem:[#allocation3] sm:$0x3] }
 0x852   :  { %2884 = vmatprep.subr.bf16.mxu0 %v3215_v1  ;;  %v1231_v8 = vrot.slane %v1215_v6, 5  ;;  %v1232_v9 = vrot.slane %v1215_v6, 6 }
 0x853   :  { %v1163_v36 = vld [vmem:[#allocation4] sm:$0x3] }
 0x854   :  { %v1164_v39 = vpack.c.bf16 %v1163_v36, %v1163_v36 }
 0x855   :  { %2885 = vmatpush3.bf16.msra.mxu0 %v3266_v3  ;;  %v1103_v3 = vld [vmem:[#allocation6] sm:$0x2] }
 0x856   :  { %2879 = vmatmul.mubr.msk.bf16.vlgmr.msra.gmra.mxu1 %vm166_vm2, %v1164_v39  ;;  %2898 = vmatprep.subr.bf16.mxu0 %v3215_v1  ;;  %v1105_v43 = vunpack.c.l.bf16 %v1103_v3 }
 0x857   :  { %2891 = vmatpush3.bf16.msra.mxu1 %v3484_v40  ;;  %2894 = vmatprep.mubr.msk.bf16.mxu1 %vm3216_vm0, %v3215_v1  ;;  %v1273_v10 = vld [vmem:[#allocation5] sm:$0x3] }
 0x858   :  { %2892 = vmatprep.subr.bf16.mxu1 %v3215_v1  ;;  %v1290_v11 = vrot.slane %v1273_v10, 5  ;;  %v1289_v12 = vrot.slane %v1273_v10, 4 }
 0x85b   :  { %2893 = vmatpush3.bf16.msra.mxu1 %v3275_v4 }
 0x85c   :  { %2906 = vmatprep.subr.bf16.mxu1 %v3215_v1 }
 0x910   :  { %v1146_v44 = vpop.f32.mrf.mxu0 }
 0x911   :  { %v1153_v45 = vrot.slane %v1146_v44, 5  ;;  %v1154_v46 = vrot.slane %v1146_v44, 6 }
 0x912   :  { %v2872_v47 = vpop.f32.mrf.mxu0 }
 0x913   :  { %v1157_v50 = vadd.f32 %v1153_v45, %v1105_v43  ;;  %v1158_v51 = vadd.f32 %v1154_v46, %v1106_v0 }
 0x914   :  { %v1149_v52 = vpop.f32.mrf.mxu0 }
 0x915   :  { %3051 = vtanh.f32 %v1157_v50  ;;  %v2691_v14 = vmul.f32 -1.442695, %v1158_v51  ;;  %v2690_v15 = vmul.f32 -1.442695, %v1157_v50 }
 0x916   :  { %3053 = vtanh.f32 %v1158_v51  ;;  %v2873_v4 = vpop.f32.mrf.mxu0  ;;  %v1202_v54 = vpop.f32.mrf.mxu1 }
 0x917   :  { %v1209_v55 = vrot.slane %v1202_v54, 4  ;;  %v1210_v56 = vrot.slane %v1202_v54, 5 }
 0x918   :  { %v2880_v57 = vpop.f32.mrf.mxu1 }
 0x919   :  { %v1213_v58 = vadd.f32 %v1209_v55, %v1161_v2  ;;  %v1214_v59 = vadd.f32 %v1210_v56, %v1162_v53 }
 0x91a   :  { %v1205_v60 = vpop.f32.mrf.mxu1 }
 0x91b   :  { %3055 = vtanh.f32 %v1213_v58  ;;  %v2692_v17 = vmul.f32 -1.442695, %v1213_v58  ;;  %v2693_v18 = vmul.f32 -1.442695, %v1214_v59 }
 0x91c   :  { %3057 = vtanh.f32 %v1214_v59  ;;  %v2881_v61 = vpop.f32.mrf.mxu1 }
 0x91d   :  { %3059 = vpow2.f32 %v2691_v14 }
 0x91e   :  { %3061 = vpow2.f32 %v2690_v15 }
 0x91f   :  { %3063 = vpow2.f32 %v2692_v17 }
 0x920   :  { %3065 = vpow2.f32 %v2693_v18 }
 0x922   :  { %v3052_v62 = vpop.eup %3051 }
 0x923   :  { %v3054_v63 = vpop.eup %3053  ;;  %1243 = vrot.lane.b32.xlu1 %v3052_v62, %s3217_s1 }
 0x924   :  { %1245 = vrot.lane.b32.xlu0 %v3054_v63, %s3217_s1 }
 0x928   :  { %v3056_v5 = vpop.eup %3055 }
 0x929   :  { %v3058_v7 = vpop.eup %3057  ;;  %1301 = vrot.lane.b32.xlu1 %v3056_v5, %s3217_s1 }
 0x92a   :  { %1303 = vrot.lane.b32.xlu0 %v3058_v7, %s3217_s1  ;;  %v3060_v19 = vpop.eup %3059 }
 0x92b   :  { %v1223_v23 = vadd.f32 1.0, %v3060_v19  ;;  %v3062_v25 = vpop.eup %3061 }
 0x92c   :  { %v3064_v26 = vpop.eup %3063  ;;  %v1222_v27 = vadd.f32 1.0, %v3062_v25 }
 0x92d   :  { %1233 = vrot.lane.b32.xlu1 %v1231_v8, %s3218_s8  ;;  %3067 = vrcp.f32 %v1223_v23  ;;  %v3066_v30 = vpop.eup %3065  ;;  %v1280_v31 = vadd.f32 1.0, %v3064_v26 }
 0x92e   :  { %1235 = vrot.lane.b32.xlu0 %v1232_v9, %s3218_s8  ;;  %3069 = vrcp.f32 %v1222_v27  ;;  %v1281_v32 = vadd.f32 1.0, %v3066_v30 }
 0x92f   :  { %3071 = vrcp.f32 %v1280_v31 }
 0x930   :  { %3073 = vrcp.f32 %v1281_v32 }
 0x931   :  { %1293 = vrot.lane.b32.xlu1 %v1290_v11, %s3218_s8 }
 0x935   :  { %1291 = vrot.lane.b32.xlu1 %v1289_v12, %s3218_s8 }
 0x93a   :  { %v3068_v34 = vpop.eup %3067 }
 0x93b   :  { %v3070_v41 = vpop.eup %3069 }
 0x93c   :  { %v3072_v43 = vpop.eup %3071 }
 0x93d   :  { %v3074_v47 = vpop.eup %3073 }
 0x995   :  { %v1244_v39 = vpop.permute.xlu1 %1243 }
 0x996   :  { %v1246_v36 = vpop.permute.xlu0 %1245  ;;  %v1249_v0 = vmul.f32 %v3070_v41, %v1244_v39 }
 0x997   :  { %v1250_v3 = vmul.f32 %v3068_v34, %v1246_v36 }
 0x999   :  { %1255 = vrot.lane.b32.xlu0 %v1250_v3, %s3218_s8 }
 0x99b   :  { %v1302_v44 = vpop.permute.xlu1 %1301 }
 0x99c   :  { %v1307_v45 = vmul.f32 %v3072_v43, %v1302_v44  ;;  %v1304_v46 = vpop.permute.xlu0 %1303  ;;  %v3540_v44 = vld [vmem:[%s4151_s2] sm:$0xff]  }
 0x99d   :  { %1253 = vrot.lane.b32.xlu0 %v1249_v0, %s3218_s8  ;;  %v1308_v48 = vmul.f32 %v3074_v47, %v1304_v46  ;;  %v1411_v46 = vld [vmem:[#allocation6] sm:$0x4] }
 0x99e   :  { %1311 = vrot.lane.b32.xlu1 %v1307_v45, %s3218_s8  ;;  %v3552_v45 = vld [vmem:[%s4152_s3] sm:$0xff]  }
 0x99f   :  { %v1234_v49 = vpop.permute.xlu1 %1233 }
 0x9a0   :  { %v1236_v51 = vpop.permute.xlu0 %1235  ;;  %v1239_v54 = vmul.f32 %v3070_v41, %v1234_v49 }
 0x9a1   :  { %1313 = vrot.lane.b32.xlu0 %v1308_v48, %s3218_s8  ;;  %v1240_v52 = vmul.f32 %v3068_v34, %v1236_v51  ;;  %v1413_v48 = vunpack.c.l.bf16 %v1411_v46 }
 0x9a3   :  { %v1294_v50 = vpop.permute.xlu1 %1293 }
 0x9a4   :  { %v1298_v61 = vmul.f32 %v3074_v47, %v1294_v50 }
 0x9a7   :  { %v1292_v53 = vpop.permute.xlu1 %1291 }
 0x9a8   :  { %v1297_v55 = vmul.f32 %v3072_v43, %v1292_v53  ;;  %v1467_v53 = vld [vmem:[#allocation7] sm:$0x2] }
 0xa0b   :  { %v1256_v2 = vpop.permute.xlu0 %1255 }
 0xa0c   :  { %v1260_v4 = vadd.f32 %v1256_v2, %v1240_v52 }
 0xa0e   :  { %3075 = vtanh.f32 %v1260_v4  ;;  %v1343_v57 = vrot.slane %v1260_v4, 7  ;;  %v1468_v4 = vld [vmem:[#allocation7 + $0x4] sm:$0x2] }
 0xa0f   :  { %v1254_v56 = vpop.permute.xlu0 %1253 }
 0xa10   :  { %v1259_v58 = vadd.f32 %v1254_v56, %v1239_v54  ;;  %v1312_v59 = vpop.permute.xlu1 %1311 }
 0xa11   :  { %v1317_v60 = vadd.f32 %v1312_v59, %v1297_v55 }
 0xa12   :  { %3077 = vtanh.f32 %v1259_v58  ;;  %v1344_v62 = vsel %vm1334_vm14, %v1343_v57, %v1259_v58  ;;  %v1469_v57 = vunpack.c.l.bf16 %v1467_v53  ;;  %v1470_v58 = vunpack.c.l.bf16 %v1468_v4 }
 0xa13   :  { %v1314_v63 = vpop.permute.xlu0 %1313  ;;  %3079 = vtanh.f32 %v1317_v60 }
 0xa14   :  { %v1318_v5 = vadd.f32 %v1314_v63, %v1298_v61 }
 0xa16   :  { %3081 = vtanh.f32 %v1318_v5  ;;  %v1361_v6 = vrot.slane %v1318_v5, 7 }
 0xa18   :  { %v1362_v7 = vsel %vm1352_vm15, %v1361_v6, %v1317_v60 }
 0xa1b   :  { %v3076_v8 = vpop.eup %3075 }
 0xa1c   :  { %1267 = vrot.lane.b32.xlu0 %v3076_v8, %s3217_s1 }
 0xa1f   :  { %v3078_v9 = vpop.eup %3077 }
 0xa20   :  { %1265 = vrot.lane.b32.xlu1 %v3078_v9, %s3217_s1  ;;  %v3080_v10 = vpop.eup %3079 }
 0xa23   :  { %v3082_v11 = vpop.eup %3081 }
 0xa24   :  { %1323 = vrot.lane.b32.xlu1 %v3080_v10, %s3217_s1  ;;  %1325 = vrot.lane.b32.xlu0 %v3082_v11, %s3217_s1 }
 0xa8e   :  { %v1268_v12 = vpop.permute.xlu0 %1267 }
 0xa8f   :  { %v3510_v14 = vmul.f32 %v3068_v34, %v1268_v12 }
 0xa91   :  { %v1333_v17 = vrot.slane %v3510_v14, 7 }
 0xa92   :  { %v1266_v15 = vpop.permute.xlu1 %1265 }
 0xa93   :  { %v3513_v18 = vmul.f32 %v3070_v41, %v1266_v15 }
 0xa95   :  { %v1335_v19 = vsel %vm1334_vm14, %v1333_v17, %v3513_v18 }
 0xa96   :  { %v1324_v23 = vpop.permute.xlu1 %1323  ;;  %1336 = vrot.lane.b32.xlu0 %v1335_v19, %s3218_s8  ;;  %v1326_v25 = vpop.permute.xlu0 %1325 }
 0xa97   :  { %v3518_v26 = vmul.f32 %v3074_v47, %v1326_v25  ;;  %v3520_v27 = vmul.f32 %v3072_v43, %v1324_v23  ;;  %v1412_v47 = vld [vmem:[#allocation6 + $0x4] sm:$0x4] }
 0xa98   :  { %v1414_v49 = vunpack.c.l.bf16 %v1412_v47 }
 0xa99   :  { %v1351_v30 = vrot.slane %v3518_v26, 7 }
 0xa9a   :  { %1345 = vrot.lane.b32.xlu0 %v1344_v62, %s3219_s9 }
 0xa9b   :  { %v1353_v31 = vsel %vm1352_vm15, %v1351_v30, %v3520_v27 }
 0xa9c   :  { %1354 = vrot.lane.b32.xlu1 %v1353_v31, %s3218_s8 }
 0xaa0   :  { %1363 = vrot.lane.b32.xlu1 %v1362_v7, %s3219_s9 }
 0xb08   :  { %v1337_v32 = vpop.permute.xlu0 %1336 }
 0xb09   :  { %1340 = vst.msk [vmem:[#allocation2 - $0x3] sm:$0x18] %vm1339_vm1, %v1337_v32 }
 0xb0c   :  { %v1346_v34 = vpop.permute.xlu0 %1345 }
 0xb0d   :  { %1348 = vst.msk [vmem:[#allocation3 - $0x3] sm:$0x18] %vm1339_vm1, %v1346_v34 }
 0xb0e   :  { %v1355_v36 = vpop.permute.xlu1 %1354 }
 0xb0f   :  { %1358 = vst.msk [vmem:[#allocation4 - $0x4] sm:$0x30] %vm1357_vm4, %v1355_v36 }
 0xb10   :  { %v1415_v39 = vld [vmem:[#allocation2] sm:$0x3] }
 0xb11   :  { %v1416_v3 = vpack.c.bf16 %v1415_v39, %v1415_v39 }
 0xb12   :  { %v1364_v41 = vpop.permute.xlu1 %1363 }
 0xb13   :  { %1366 = vst.msk [vmem:[#allocation5 - $0x4] sm:$0x30] %vm1357_vm4, %v1364_v41  ;;  %2887 = vmatmul.mubr.msk.bf16.vlgmr.msra.gmra.mxu0 %vm166_vm2, %v1416_v3 }
 0xb14   :  { %2899 = vmatpush3.bf16.msra.mxu0 %v3472_v35  ;;  %2902 = vmatprep.mubr.msk.bf16.mxu0 %vm3216_vm0, %v3215_v1  ;;  %v1523_v12 = vld [vmem:[#allocation3] sm:$0x3] }
 0xb15   :  { %2900 = vmatprep.subr.bf16.mxu0 %v3215_v1  ;;  %v1539_v17 = vrot.slane %v1523_v12, 4  ;;  %v1540_v19 = vrot.slane %v1523_v12, 5 }
 0xb16   :  { %v1471_v43 = vld [vmem:[#allocation4] sm:$0x3] }
 0xb17   :  { %v1472_v0 = vpack.c.bf16 %v1471_v43, %v1471_v43 }
 0xb18   :  { %2901 = vmatpush3.bf16.msra.mxu0 %v3540_v44 }
 0xb19   :  { %2895 = vmatmul.mubr.msk.bf16.vlgmr.msra.gmra.mxu1 %vm166_vm2, %v1472_v0  ;;  %2914 = vmatprep.subr.bf16.mxu0 %v3215_v1 }
 0xb1a   :  { %2907 = vmatpush3.bf16.msra.mxu1 %v3484_v40  ;;  %2910 = vmatprep.mubr.msk.bf16.mxu1 %vm3216_vm0, %v3215_v1  ;;  %v1581_v23 = vld [vmem:[#allocation5] sm:$0x3] }
 0xb1b   :  { %2908 = vmatprep.subr.bf16.mxu1 %v3215_v1  ;;  %v1598_v25 = vrot.slane %v1581_v23, 6  ;;  %v1597_v30 = vrot.slane %v1581_v23, 5 }
 0xb1e   :  { %2909 = vmatpush3.bf16.msra.mxu1 %v3552_v45 }
 0xb1f   :  { %2922 = vmatprep.subr.bf16.mxu1 %v3215_v1 }
 0xbd3   :  { %v1454_v50 = vpop.f32.mrf.mxu0 }
 0xbd4   :  { %v1461_v51 = vrot.slane %v1454_v50, 4  ;;  %v1462_v52 = vrot.slane %v1454_v50, 5 }
 0xbd5   :  { %v2888_v2 = vpop.f32.mrf.mxu0 }
 0xbd6   :  { %v1465_v54 = vadd.f32 %v1461_v51, %v1413_v48  ;;  %v1466_v55 = vadd.f32 %v1462_v52, %v1414_v49 }
 0xbd7   :  { %v1457_v56 = vpop.f32.mrf.mxu0 }
 0xbd8   :  { %3083 = vtanh.f32 %v1465_v54  ;;  %v2701_v31 = vmul.f32 -1.442695, %v1466_v55  ;;  %v2700_v32 = vmul.f32 -1.442695, %v1465_v54 }
 0xbd9   :  { %3085 = vtanh.f32 %v1466_v55  ;;  %v2889_v59 = vpop.f32.mrf.mxu0  ;;  %v1510_v60 = vpop.f32.mrf.mxu1 }
 0xbda   :  { %v1517_v61 = vrot.slane %v1510_v60, 5  ;;  %v1518_v62 = vrot.slane %v1510_v60, 6 }
 0xbdb   :  { %v2896_v63 = vpop.f32.mrf.mxu1 }
 0xbdc   :  { %v1521_v5 = vadd.f32 %v1517_v61, %v1469_v57  ;;  %v1522_v6 = vadd.f32 %v1518_v62, %v1470_v58 }
 0xbdd   :  { %v1513_v7 = vpop.f32.mrf.mxu1 }
 0xbde   :  { %3087 = vtanh.f32 %v1521_v5  ;;  %v2702_v34 = vmul.f32 -1.442695, %v1521_v5  ;;  %v2703_v36 = vmul.f32 -1.442695, %v1522_v6 }
 0xbdf   :  { %3089 = vtanh.f32 %v1522_v6  ;;  %v2897_v8 = vpop.f32.mrf.mxu1 }
 0xbe0   :  { %3091 = vpow2.f32 %v2701_v31 }
 0xbe1   :  { %3093 = vpow2.f32 %v2700_v32 }
 0xbe2   :  { %3095 = vpow2.f32 %v2702_v34 }
 0xbe3   :  { %3097 = vpow2.f32 %v2703_v36 }
 0xbe5   :  { %v3084_v9 = vpop.eup %3083 }
 0xbe6   :  { %v3086_v10 = vpop.eup %3085  ;;  %1551 = vrot.lane.b32.xlu1 %v3084_v9, %s3217_s1 }
 0xbe7   :  { %1553 = vrot.lane.b32.xlu0 %v3086_v10, %s3217_s1 }
 0xbeb   :  { %v3088_v11 = vpop.eup %3087 }
 0xbec   :  { %v3090_v15 = vpop.eup %3089  ;;  %1609 = vrot.lane.b32.xlu1 %v3088_v11, %s3217_s1 }
 0xbed   :  { %1611 = vrot.lane.b32.xlu0 %v3090_v15, %s3217_s1  ;;  %v3092_v39 = vpop.eup %3091 }
 0xbee   :  { %v1531_v3 = vadd.f32 1.0, %v3092_v39  ;;  %v3094_v41 = vpop.eup %3093 }
 0xbef   :  { %v3096_v43 = vpop.eup %3095  ;;  %v1530_v0 = vadd.f32 1.0, %v3094_v41 }
 0xbf0   :  { %1541 = vrot.lane.b32.xlu1 %v1539_v17, %s3218_s8  ;;  %3099 = vrcp.f32 %v1531_v3  ;;  %v3098_v46 = vpop.eup %3097  ;;  %v1588_v47 = vadd.f32 1.0, %v3096_v43 }
 0xbf1   :  { %1543 = vrot.lane.b32.xlu0 %v1540_v19, %s3218_s8  ;;  %3101 = vrcp.f32 %v1530_v0  ;;  %v1589_v48 = vadd.f32 1.0, %v3098_v46 }
 0xbf2   :  { %3103 = vrcp.f32 %v1588_v47 }
 0xbf3   :  { %3105 = vrcp.f32 %v1589_v48 }
 0xbf4   :  { %1601 = vrot.lane.b32.xlu1 %v1598_v25, %s3218_s8 }
 0xbf8   :  { %1599 = vrot.lane.b32.xlu1 %v1597_v30, %s3218_s8 }
 0xbfd   :  { %v3100_v49 = vpop.eup %3099 }
 0xbfe   :  { %v3102_v2 = vpop.eup %3101 }
 0xbff   :  { %v3104_v53 = vpop.eup %3103 }
 0xc00   :  { %v3106_v57 = vpop.eup %3105 }
 0xc58   :  { %v1552_v51 = vpop.permute.xlu1 %1551 }
 0xc59   :  { %v1554_v50 = vpop.permute.xlu0 %1553  ;;  %v1557_v4 = vmul.f32 %v3102_v2, %v1552_v51 }
 0xc5a   :  { %v1558_v52 = vmul.f32 %v3100_v49, %v1554_v50 }
 0xc5c   :  { %1563 = vrot.lane.b32.xlu0 %v1558_v52, %s3218_s8 }
 0xc5e   :  { %v1610_v54 = vpop.permute.xlu1 %1609 }
 0xc5f   :  { %v1615_v55 = vmul.f32 %v3104_v53, %v1610_v54  ;;  %v1612_v56 = vpop.permute.xlu0 %1611 }
 0xc60   :  { %1561 = vrot.lane.b32.xlu0 %v1557_v4, %s3218_s8  ;;  %v1616_v58 = vmul.f32 %v3106_v57, %v1612_v56 }
 0xc61   :  { %1619 = vrot.lane.b32.xlu1 %v1615_v55, %s3218_s8 }
 0xc62   :  { %v1542_v59 = vpop.permute.xlu1 %1541 }
 0xc63   :  { %v1544_v61 = vpop.permute.xlu0 %1543  ;;  %v1547_v7 = vmul.f32 %v3102_v2, %v1542_v59 }
 0xc64   :  { %1621 = vrot.lane.b32.xlu0 %v1616_v58, %s3218_s8  ;;  %v1548_v62 = vmul.f32 %v3100_v49, %v1544_v61  ;;  %v1712_v61 = vld [vmem:[#allocation6 + $0x4] sm:$0x4] }
 0xc66   :  { %v1602_v60 = vpop.permute.xlu1 %1601 }
 0xc67   :  { %v1606_v17 = vmul.f32 %v3106_v57, %v1602_v60  ;;  %v1711_v60 = vld [vmem:[#allocation6] sm:$0x4] }
 0xc6a   :  { %v1600_v5 = vpop.permute.xlu1 %1599 }
 0xc6b   :  { %v1605_v8 = vmul.f32 %v3104_v53, %v1600_v5 }
 0xcce   :  { %v1564_v63 = vpop.permute.xlu0 %1563 }
 0xccf   :  { %v1568_v6 = vadd.f32 %v1564_v63, %v1548_v62  ;;  %v1713_v62 = vunpack.c.l.bf16 %v1711_v60  ;;  %v1714_v63 = vunpack.c.l.bf16 %v1712_v61 }
 0xcd1   :  { %3107 = vtanh.f32 %v1568_v6  ;;  %v1649_v10 = vrot.slane %v1568_v6, 7 }
 0xcd2   :  { %v1562_v9 = vpop.permute.xlu0 %1561 }
 0xcd3   :  { %v1567_v11 = vadd.f32 %v1562_v9, %v1547_v7  ;;  %v1620_v12 = vpop.permute.xlu1 %1619  ;;  %v1767_v9 = vld [vmem:[#allocation7] sm:$0x2] }
 0xcd4   :  { %v1625_v15 = vadd.f32 %v1620_v12, %v1605_v8 }
 0xcd5   :  { %3109 = vtanh.f32 %v1567_v11  ;;  %v1650_v19 = vsel %vm1352_vm15, %v1649_v10, %v1567_v11  ;;  %v1768_v10 = vld [vmem:[#allocation7 + $0x4] sm:$0x2] }
 0xcd6   :  { %v1622_v23 = vpop.permute.xlu0 %1621  ;;  %3111 = vtanh.f32 %v1625_v15 }
 0xcd7   :  { %v1626_v25 = vadd.f32 %v1622_v23, %v1606_v17  ;;  %v1769_v17 = vunpack.c.l.bf16 %v1767_v9 }
 0xcd9   :  { %3113 = vtanh.f32 %v1626_v25  ;;  %v1665_v30 = vrot.slane %v1626_v25, 7 }
 0xcdb   :  { %v1666_v31 = vsel %vm1334_vm14, %v1665_v30, %v1625_v15 }
 0xcde   :  { %v3108_v32 = vpop.eup %3107 }
 0xcdf   :  { %1575 = vrot.lane.b32.xlu0 %v3108_v32, %s3217_s1 }
 0xce2   :  { %v3110_v34 = vpop.eup %3109 }
 0xce3   :  { %1573 = vrot.lane.b32.xlu1 %v3110_v34, %s3217_s1  ;;  %v3112_v36 = vpop.eup %3111 }
 0xce6   :  { %v3114_v39 = vpop.eup %3113 }
 0xce7   :  { %1631 = vrot.lane.b32.xlu1 %v3112_v36, %s3217_s1  ;;  %1633 = vrot.lane.b32.xlu0 %v3114_v39, %s3217_s1 }
 0xd51   :  { %v1576_v3 = vpop.permute.xlu0 %1575 }
 0xd52   :  { %v3574_v41 = vmul.f32 %v3100_v49, %v1576_v3 }
 0xd54   :  { %v1641_v0 = vrot.slane %v3574_v41, 7 }
 0xd55   :  { %v1574_v43 = vpop.permute.xlu1 %1573 }
 0xd56   :  { %v3577_v46 = vmul.f32 %v3102_v2, %v1574_v43 }
 0xd58   :  { %v1642_v47 = vsel %vm1352_vm15, %v1641_v0, %v3577_v46  ;;  %vm1381_vm15 = vsmask.f32 7942 }
 0xd59   :  { %v1632_v48 = vpop.permute.xlu1 %1631  ;;  %1643 = vrot.lane.b32.xlu0 %v1642_v47, %s3218_s8  ;;  %v1634_v50 = vpop.permute.xlu0 %1633 }
 0xd5a   :  { %v3582_v51 = vmul.f32 %v3106_v57, %v1634_v50  ;;  %v3584_v52 = vmul.f32 %v3104_v53, %v1632_v48 }
 0xd5c   :  { %v1657_v4 = vrot.slane %v3582_v51, 7 }
 0xd5d   :  { %1651 = vrot.lane.b32.xlu0 %v1650_v19, %s3219_s9  ;;  %v1770_v19 = vunpack.c.l.bf16 %v1768_v10 }
 0xd5e   :  { %v1658_v49 = vsel %vm1334_vm14, %v1657_v4, %v3584_v52 }
 0xd5f   :  { %1659 = vrot.lane.b32.xlu1 %v1658_v49, %s3218_s8 }
 0xd63   :  { %1667 = vrot.lane.b32.xlu1 %v1666_v31, %s3219_s9 }
 0xdcb   :  { %v1644_v2 = vpop.permute.xlu0 %1643 }
 0xdcc   :  { %1646 = vst.msk [vmem:[#allocation2 - $0x4] sm:$0x30] %vm1357_vm4, %v1644_v2 }
 0xdcf   :  { %v1652_v54 = vpop.permute.xlu0 %1651 }
 0xdd0   :  { %1654 = vst.msk [vmem:[#allocation3 - $0x4] sm:$0x30] %vm1357_vm4, %v1652_v54  ;;  %vm479_vm4 = vsmask.f32 7950 }
 0xdd1   :  { %v1660_v55 = vpop.permute.xlu1 %1659 }
 0xdd2   :  { %1662 = vst.msk [vmem:[#allocation4 - $0x3] sm:$0x18] %vm1339_vm1, %v1660_v55 }
 0xdd3   :  { %v1715_v53 = vld [vmem:[#allocation2] sm:$0x3] }
 0xdd4   :  { %v1716_v56 = vpack.c.bf16 %v1715_v53, %v1715_v53 }
 0xdd5   :  { %v1668_v57 = vpop.permute.xlu1 %1667 }
 0xdd6   :  { %1670 = vst.msk [vmem:[#allocation5 - $0x3] sm:$0x18] %vm1339_vm1, %v1668_v57  ;;  %2903 = vmatmul.mubr.msk.bf16.vlgmr.msra.gmra.mxu0 %vm166_vm2, %v1716_v56 }
 0xdd7   :  { %2915 = vmatpush3.bf16.msra.mxu0 %v3472_v35  ;;  %2918 = vmatprep.mubr.msk.bf16.mxu0 %vm3216_vm0, %v3215_v1  ;;  %v1823_v48 = vld [vmem:[#allocation3] sm:$0x3] }
 0xdd8   :  { %2916 = vmatprep.subr.bf16.mxu0 %v3215_v1  ;;  %v1839_v4 = vrot.slane %v1823_v48, 3  ;;  %v1840_v49 = vrot.slane %v1823_v48, 4 }
 0xdd9   :  { %v1771_v58 = vld [vmem:[#allocation4] sm:$0x3] }
 0xdda   :  { %v1772_v59 = vpack.c.bf16 %v1771_v58, %v1771_v58 }
 0xddb   :  { %2917 = vmatpush3.bf16.msra.mxu0 %v3540_v44 }
 0xddc   :  { %2911 = vmatmul.mubr.msk.bf16.vlgmr.msra.gmra.mxu1 %vm166_vm2, %v1772_v59  ;;  %2930 = vmatprep.subr.bf16.mxu0 %v3215_v1 }
 0xddd   :  { %2923 = vmatpush3.bf16.msra.mxu1 %v3484_v40  ;;  %2926 = vmatprep.mubr.msk.bf16.mxu1 %vm3216_vm0, %v3215_v1  ;;  %v1881_v2 = vld [vmem:[#allocation5] sm:$0x3] }
 0xdde   :  { %2924 = vmatprep.subr.bf16.mxu1 %v3215_v1  ;;  %v1898_v54 = vrot.slane %v1881_v2, 7  ;;  %v1897_v55 = vrot.slane %v1881_v2, 6 }
 0xde1   :  { %2925 = vmatpush3.bf16.msra.mxu1 %v3552_v45 }
 0xde2   :  { %2938 = vmatprep.subr.bf16.mxu1 %v3215_v1 }
 0xe96   :  { %v1754_v5 = vpop.f32.mrf.mxu0 }
 0xe97   :  { %v1761_v6 = vrot.slane %v1754_v5, 3  ;;  %v1762_v7 = vrot.slane %v1754_v5, 4 }
 0xe98   :  { %v2904_v8 = vpop.f32.mrf.mxu0 }
 0xe99   :  { %v1765_v11 = vadd.f32 %v1761_v6, %v1713_v62  ;;  %v1766_v12 = vadd.f32 %v1762_v7, %v1714_v63 }
 0xe9a   :  { %v1757_v15 = vpop.f32.mrf.mxu0 }
 0xe9b   :  { %3115 = vtanh.f32 %v1765_v11  ;;  %v2711_v53 = vmul.f32 -1.442695, %v1766_v12  ;;  %v2710_v56 = vmul.f32 -1.442695, %v1765_v11 }
 0xe9c   :  { %3117 = vtanh.f32 %v1766_v12  ;;  %v2905_v23 = vpop.f32.mrf.mxu0  ;;  %v1810_v25 = vpop.f32.mrf.mxu1 }
 0xe9d   :  { %v1817_v30 = vrot.slane %v1810_v25, 6  ;;  %v1818_v31 = vrot.slane %v1810_v25, 7 }
 0xe9e   :  { %v2912_v32 = vpop.f32.mrf.mxu1 }
 0xe9f   :  { %v1821_v34 = vadd.f32 %v1817_v30, %v1769_v17  ;;  %v1822_v36 = vadd.f32 %v1818_v31, %v1770_v19 }
 0xea0   :  { %v1813_v39 = vpop.f32.mrf.mxu1 }
 0xea1   :  { %3119 = vtanh.f32 %v1821_v34  ;;  %v2712_v57 = vmul.f32 -1.442695, %v1821_v34  ;;  %v2713_v58 = vmul.f32 -1.442695, %v1822_v36 }
 0xea2   :  { %3121 = vtanh.f32 %v1822_v36  ;;  %v2913_v3 = vpop.f32.mrf.mxu1 }
 0xea3   :  { %3123 = vpow2.f32 %v2711_v53 }
 0xea4   :  { %3125 = vpow2.f32 %v2710_v56 }
 0xea5   :  { %3127 = vpow2.f32 %v2712_v57 }
 0xea6   :  { %3129 = vpow2.f32 %v2713_v58 }
 0xea8   :  { %v3116_v43 = vpop.eup %3115 }
 0xea9   :  { %v3118_v0 = vpop.eup %3117  ;;  %1851 = vrot.lane.b32.xlu1 %v3116_v43, %s3217_s1 }
 0xeaa   :  { %1853 = vrot.lane.b32.xlu0 %v3118_v0, %s3217_s1 }
 0xeae   :  { %v3120_v47 = vpop.eup %3119 }
 0xeaf   :  { %v3122_v50 = vpop.eup %3121  ;;  %1909 = vrot.lane.b32.xlu1 %v3120_v47, %s3217_s1 }
 0xeb0   :  { %1911 = vrot.lane.b32.xlu0 %v3122_v50, %s3217_s1  ;;  %v3124_v59 = vpop.eup %3123 }
 0xeb1   :  { %v1831_v60 = vadd.f32 1.0, %v3124_v59  ;;  %v3126_v61 = vpop.eup %3125 }
 0xeb2   :  { %v3128_v62 = vpop.eup %3127  ;;  %v1830_v63 = vadd.f32 1.0, %v3126_v61 }
 0xeb3   :  { %1841 = vrot.lane.b32.xlu1 %v1839_v4, %s3218_s8  ;;  %3131 = vrcp.f32 %v1831_v60  ;;  %v3130_v5 = vpop.eup %3129  ;;  %v1888_v6 = vadd.f32 1.0, %v3128_v62 }
 0xeb4   :  { %1843 = vrot.lane.b32.xlu0 %v1840_v49, %s3218_s8  ;;  %3133 = vrcp.f32 %v1830_v63  ;;  %v1889_v7 = vadd.f32 1.0, %v3130_v5 }
 0xeb5   :  { %3135 = vrcp.f32 %v1888_v6 }
 0xeb6   :  { %3137 = vrcp.f32 %v1889_v7 }
 0xeb7   :  { %1901 = vrot.lane.b32.xlu1 %v1898_v54, %s3218_s8 }
 0xebb   :  { %1899 = vrot.lane.b32.xlu1 %v1897_v55, %s3218_s8 }
 0xec0   :  { %v3132_v8 = vpop.eup %3131 }
 0xec1   :  { %v3134_v12 = vpop.eup %3133 }
 0xec2   :  { %v3136_v15 = vpop.eup %3135 }
 0xec3   :  { %v3138_v30 = vpop.eup %3137 }
 0xf1b   :  { %v1852_v10 = vpop.permute.xlu1 %1851 }
 0xf1c   :  { %v1854_v9 = vpop.permute.xlu0 %1853  ;;  %v1857_v17 = vmul.f32 %v3134_v12, %v1852_v10 }
 0xf1d   :  { %v1858_v11 = vmul.f32 %v3132_v8, %v1854_v9 }
 0xf1f   :  { %1863 = vrot.lane.b32.xlu0 %v1858_v11, %s3218_s8 }
 0xf21   :  { %v1910_v19 = vpop.permute.xlu1 %1909 }
 0xf22   :  { %v1915_v23 = vmul.f32 %v3136_v15, %v1910_v19  ;;  %v1912_v25 = vpop.permute.xlu0 %1911 }
 0xf23   :  { %1861 = vrot.lane.b32.xlu0 %v1857_v17, %s3218_s8  ;;  %v1916_v31 = vmul.f32 %v3138_v30, %v1912_v25 }
 0xf24   :  { %1919 = vrot.lane.b32.xlu1 %v1915_v23, %s3218_s8 }
 0xf25   :  { %v1842_v32 = vpop.permute.xlu1 %1841 }
 0xf26   :  { %v1844_v36 = vpop.permute.xlu0 %1843  ;;  %v1847_v47 = vmul.f32 %v3134_v12, %v1842_v32 }
 0xf27   :  { %1921 = vrot.lane.b32.xlu0 %v1916_v31, %s3218_s8  ;;  %v1848_v39 = vmul.f32 %v3132_v8, %v1844_v36 }
 0xf29   :  { %v1902_v34 = vpop.permute.xlu1 %1901 }
 0xf2a   :  { %v1906_v55 = vmul.f32 %v3138_v30, %v1902_v34 }
 0xf2d   :  { %v1900_v43 = vpop.permute.xlu1 %1899 }
 0xf2e   :  { %v1905_v48 = vmul.f32 %v3136_v15, %v1900_v43  ;;  %v2011_v43 = vld [vmem:[#allocation6] sm:$0x8] }
 0xf91   :  { %v1864_v3 = vpop.permute.xlu0 %1863 }
 0xf92   :  { %v1868_v0 = vadd.f32 %v1864_v3, %v1848_v39 }
 0xf94   :  { %3139 = vtanh.f32 %v1868_v0  ;;  %v1949_v4 = vrot.slane %v1868_v0, 7 }
 0xf95   :  { %v1862_v50 = vpop.permute.xlu0 %1861 }
 0xf96   :  { %v1867_v49 = vadd.f32 %v1862_v50, %v1847_v47  ;;  %v1920_v2 = vpop.permute.xlu1 %1919 }
 0xf97   :  { %v1925_v54 = vadd.f32 %v1920_v2, %v1905_v48  ;;  %v2068_v48 = vld [vmem:[#allocation7 + $0x4] sm:$0x1]  ;;  %v2067_v2 = vld [vmem:[#allocation7] sm:$0x1] }
 0xf98   :  { %3141 = vtanh.f32 %v1867_v49  ;;  %v1950_v53 = vsel %vm1042_vm11, %v1949_v4, %v1867_v49  ;;  %v2013_v4 = vunpack.c.l.bf16 %v2011_v43 }
 0xf99   :  { %v1922_v56 = vpop.permute.xlu0 %1921  ;;  %3143 = vtanh.f32 %v1925_v54 }
 0xf9a   :  { %v1926_v57 = vadd.f32 %v1922_v56, %v1906_v55  ;;  %v2070_v55 = vunpack.c.l.bf16 %v2068_v48 }
 0xf9c   :  { %3145 = vtanh.f32 %v1926_v57  ;;  %v1965_v58 = vrot.slane %v1926_v57, 7 }
 0xf9e   :  { %v1966_v59 = vsel %vm1024_vm10, %v1965_v58, %v1925_v54 }
 0xfa1   :  { %v3140_v60 = vpop.eup %3139 }
 0xfa2   :  { %1875 = vrot.lane.b32.xlu0 %v3140_v60, %s3217_s1 }
 0xfa5   :  { %v3142_v61 = vpop.eup %3141 }
 0xfa6   :  { %1873 = vrot.lane.b32.xlu1 %v3142_v61, %s3217_s1  ;;  %v3144_v62 = vpop.eup %3143 }
 0xfa9   :  { %v3146_v63 = vpop.eup %3145 }
 0xfaa   :  { %1931 = vrot.lane.b32.xlu1 %v3144_v62, %s3217_s1  ;;  %1933 = vrot.lane.b32.xlu0 %v3146_v63, %s3217_s1 }
0x1014   :  { %v1876_v5 = vpop.permute.xlu0 %1875 }
0x1015   :  { %v3628_v6 = vmul.f32 %v3132_v8, %v1876_v5 }
0x1017   :  { %v1941_v9 = vrot.slane %v3628_v6, 7 }
0x1018   :  { %v1874_v7 = vpop.permute.xlu1 %1873 }
0x1019   :  { %v3631_v10 = vmul.f32 %v3134_v12, %v1874_v7 }
0x101b   :  { %v1942_v11 = vsel %vm1042_vm11, %v1941_v9, %v3631_v10  ;;  %vm1095_vm11 = vsmask.f32 7946 }
0x101c   :  { %v1932_v17 = vpop.permute.xlu1 %1931  ;;  %1943 = vrot.lane.b32.xlu0 %v1942_v11, %s3218_s8  ;;  %v1934_v19 = vpop.permute.xlu0 %1933 }
0x101d   :  { %v3636_v23 = vmul.f32 %v3138_v30, %v1934_v19  ;;  %v3638_v25 = vmul.f32 %v3136_v15, %v1932_v17 }
0x101f   :  { %v1957_v31 = vrot.slane %v3636_v23, 7 }
0x1020   :  { %1951 = vrot.lane.b32.xlu0 %v1950_v53, %s3219_s9  ;;  %v2069_v53 = vunpack.c.l.bf16 %v2067_v2 }
0x1021   :  { %v1958_v8 = vsel %vm1024_vm10, %v1957_v31, %v3638_v25  ;;  %vm1094_vm10 = vcmask 256002  }
0x1022   :  { %1959 = vrot.lane.b32.xlu1 %v1958_v8, %s3218_s8 }
0x1026   :  { %1967 = vrot.lane.b32.xlu1 %v1966_v59, %s3219_s9 }
0x108e   :  { %v1944_v12 = vpop.permute.xlu0 %1943 }
0x108f   :  { %1946 = vst.msk [vmem:[#allocation2 - $0x5] sm:$0x60] %vm1047_vm13, %v1944_v12 }
0x1092   :  { %v1952_v32 = vpop.permute.xlu0 %1951 }
0x1093   :  { %1954 = vst.msk [vmem:[#allocation3 - $0x5] sm:$0x60] %vm1047_vm13, %v1952_v32  ;;  %vm1403_vm13 = vsmask.f32 2304 }
0x1094   :  { %v1960_v30 = vpop.permute.xlu1 %1959  ;;  %vm3920_vm14 = vmand %vm1094_vm10, %vm1403_vm13 }
0x1095   :  { %1962 = vst.msk [vmem:[#allocation4 - $0x2] sm:$0xc] %vm1029_vm12, %v1960_v30 }
0x1096   :  { %v2015_v15 = vld [vmem:[#allocation2] sm:$0x3] }
0x1097   :  { %v2016_v34 = vpack.c.bf16 %v2015_v15, %v2015_v15 }
0x1098   :  { %v1968_v36 = vpop.permute.xlu1 %1967 }
0x1099   :  { %1970 = vst.msk [vmem:[#allocation5 - $0x2] sm:$0xc] %vm1029_vm12, %v1968_v36  ;;  %2919 = vmatmul.mubr.msk.bf16.vlgmr.msra.gmra.mxu0 %vm166_vm2, %v2016_v34  ;;  %vm3900_vm12 = vmand %vm1094_vm10, %vm1095_vm11 }
0x109a   :  { %2931 = vmatpush3.bf16.msra.mxu0 %v3472_v35  ;;  %2934 = vmatprep.mubr.msk.bf16.mxu0 %vm3216_vm0, %v3215_v1  ;;  %v2012_v35 = vld [vmem:[#allocation6 + $0x4] sm:$0x8]  ;;  %v2122_v9 = vld [vmem:[#allocation3] sm:$0x3] }
0x109b   :  { %2932 = vmatprep.subr.bf16.mxu0 %v3215_v1  ;;  %v2014_v0 = vunpack.c.l.bf16 %v2012_v35  ;;  %v2139_v17 = vrot.slane %v2122_v9, 3  ;;  %v2138_v31 = vrot.slane %v2122_v9, 2 }
0x109c   :  { %v2071_v39 = vld [vmem:[#allocation4] sm:$0x3] }
0x109d   :  { %v2072_v3 = vpack.c.bf16 %v2071_v39, %v2071_v39 }
0x109e   :  { %2933 = vmatpush3.bf16.msra.mxu0 %v3540_v44 }
0x109f   :  { %2927 = vmatmul.mubr.msk.bf16.vlgmr.msra.gmra.mxu1 %vm166_vm2, %v2072_v3 }
0x10a0   :  { %2939 = vmatpush3.bf16.msra.mxu1 %v3484_v40  ;;  %2942 = vmatprep.mubr.msk.bf16.mxu1 %vm3216_vm0, %v3215_v1  ;;  %v2180_v19 = vld [vmem:[#allocation5] sm:$0x3]  ;;  %vm456_vm0 = vsmask.f32 256 }
0x10a1   :  { %2940 = vmatprep.subr.bf16.mxu1 %v3215_v1  ;;  %v2196_v8 = vrot.slane %v2180_v19, 7  ;;  %vm3750_vm1 = vmand %vm428_vm5, %vm456_vm0 }
0x10a4   :  { %2941 = vmatpush3.bf16.msra.mxu1 %v3552_v45 }
0x1159   :  { %v2054_v47 = vpop.f32.mrf.mxu0 }
0x115a   :  { %v2062_v50 = vrot.slane %v2054_v47, 3  ;;  %v2061_v49 = vrot.slane %v2054_v47, 2 }
0x115b   :  { %v2920_v44 = vpop.f32.mrf.mxu0 }
0x115c   :  { %v2066_v54 = vadd.f32 %v2062_v50, %v2014_v0  ;;  %v2065_v56 = vadd.f32 %v2061_v49, %v2013_v4 }
0x115d   :  { %v2057_v40 = vpop.f32.mrf.mxu0 }
0x115e   :  { %3147 = vtanh.f32 %v2066_v54  ;;  %v2720_v32 = vmul.f32 -1.442695, %v2065_v56  ;;  %v2721_v30 = vmul.f32 -1.442695, %v2066_v54 }
0x115f   :  { %v2921_v57 = vpop.f32.mrf.mxu0  ;;  %v2110_v1 = vpop.f32.mrf.mxu1 }
0x1160   :  { %v2117_v58 = vrot.slane %v2110_v1, 7  ;;  %v2121_v45 = vadd.f32 %v2110_v1, %v2070_v55 }
0x1161   :  { %v2928_v59 = vpop.f32.mrf.mxu1 }
0x1162   :  { %v2120_v60 = vadd.f32 %v2117_v58, %v2069_v53  ;;  %3149 = vtanh.f32 %v2121_v45  ;;  %v2723_v12 = vmul.f32 -1.442695, %v2121_v45 }
0x1163   :  { %3151 = vtanh.f32 %v2065_v56  ;;  %v2113_v61 = vpop.f32.mrf.mxu1 }
0x1164   :  { %3153 = vtanh.f32 %v2120_v60  ;;  %v2722_v15 = vmul.f32 -1.442695, %v2120_v60 }
0x1165   :  { %v2929_v62 = vpop.f32.mrf.mxu1  ;;  %3155 = vpow2.f32 %v2723_v12 }
0x1166   :  { %3157 = vpow2.f32 %v2720_v32 }
0x1167   :  { %3159 = vpow2.f32 %v2721_v30 }
0x1168   :  { %3161 = vpow2.f32 %v2722_v15 }
0x116b   :  { %v3148_v63 = vpop.eup %3147 }
0x116c   :  { %2152 = vrot.lane.b32.xlu0 %v3148_v63, %s3217_s1 }
0x116f   :  { %v3150_v5 = vpop.eup %3149 }
0x1170   :  { %v3152_v7 = vpop.eup %3151  ;;  %2209 = vrot.lane.b32.xlu1 %v3150_v5, %s3217_s1 }
0x1171   :  { %2150 = vrot.lane.b32.xlu0 %v3152_v7, %s3217_s1  ;;  %v3154_v11 = vpop.eup %3153 }
0x1172   :  { %v3156_v34 = vpop.eup %3155 }
0x1173   :  { %v3158_v36 = vpop.eup %3157  ;;  %v2188_v39 = vadd.f32 1.0, %v3156_v34 }
0x1174   :  { %2207 = vrot.lane.b32.xlu1 %v3154_v11, %s3217_s1  ;;  %v3160_v3 = vpop.eup %3159  ;;  %v2129_v35 = vadd.f32 1.0, %v3158_v36 }
0x1175   :  { %2142 = vrot.lane.b32.xlu0 %v2139_v17, %s3218_s8  ;;  %v2130_v43 = vadd.f32 1.0, %v3160_v3  ;;  %3163 = vrcp.f32 %v2188_v39  ;;  %v3162_v0 = vpop.eup %3161 }
0x1176   :  { %3165 = vrcp.f32 %v2129_v35  ;;  %v2187_v47 = vadd.f32 1.0, %v3162_v0 }
0x1177   :  { %3167 = vrcp.f32 %v2130_v43 }
0x1178   :  { %2199 = vrot.lane.b32.xlu1 %v2180_v19, %s3218_s8  ;;  %3169 = vrcp.f32 %v2187_v47 }
0x1179   :  { %2140 = vrot.lane.b32.xlu0 %v2138_v31, %s3218_s8 }
0x117d   :  { %2197 = vrot.lane.b32.xlu0 %v2196_v8, %s3218_s8 }
0x1182   :  { %v3164_v50 = vpop.eup %3163 }
0x1183   :  { %v3166_v49 = vpop.eup %3165 }
0x1184   :  { %v3168_v55 = vpop.eup %3167 }
0x1185   :  { %v3170_v56 = vpop.eup %3169 }
0x11de   :  { %v2153_v48 = vpop.permute.xlu0 %2152 }
0x11df   :  { %v2157_v40 = vmul.f32 %v3168_v55, %v2153_v48 }
0x11e2   :  { %v2210_v4 = vpop.permute.xlu1 %2209 }
0x11e3   :  { %v2214_v44 = vmul.f32 %v3164_v50, %v2210_v4  ;;  %v2151_v2 = vpop.permute.xlu0 %2150 }
0x11e4   :  { %v2156_v54 = vmul.f32 %v3166_v49, %v2151_v2 }
0x11e5   :  { %2219 = vrot.lane.b32.xlu1 %v2214_v44, %s3218_s8 }
0x11e6   :  { %2160 = vrot.lane.b32.xlu0 %v2156_v54, %s3218_s8  ;;  %v2208_v53 = vpop.permute.xlu1 %2207 }
0x11e7   :  { %v2213_v57 = vmul.f32 %v3170_v56, %v2208_v53  ;;  %v2143_v1 = vpop.permute.xlu0 %2142 }
0x11e8   :  { %v2147_v63 = vmul.f32 %v3168_v55, %v2143_v1 }
0x11e9   :  { %2162 = vrot.lane.b32.xlu1 %v2157_v40, %s3218_s8 }
0x11ea   :  { %v2200_v45 = vpop.permute.xlu1 %2199 }
0x11eb   :  { %v2141_v58 = vpop.permute.xlu0 %2140  ;;  %v2204_v59 = vmul.f32 %v3164_v50, %v2200_v45 }
0x11ec   :  { %v2146_v7 = vmul.f32 %v3166_v49, %v2141_v58 }
0x11ed   :  { %2217 = vrot.lane.b32.xlu1 %v2213_v57, %s3218_s8 }
0x11ef   :  { %v2198_v60 = vpop.permute.xlu0 %2197 }
0x11f0   :  { %v2203_v19 = vmul.f32 %v3170_v56, %v2198_v60  ;;  %v2309_v60 = vld [vmem:[#allocation6] sm:$0x8] }
0x1257   :  { %v2220_v61 = vpop.permute.xlu1 %2219 }
0x1258   :  { %v2224_v62 = vadd.f32 %v2220_v61, %v2204_v59  ;;  %v2161_v5 = vpop.permute.xlu0 %2160  ;;  %v2310_v61 = vld [vmem:[#allocation6 + $0x4] sm:$0x8] }
0x1259   :  { %v2166_v17 = vadd.f32 %v2161_v5, %v2146_v7  ;;  %v2312_v5 = vunpack.c.l.bf16 %v2310_v61 }
0x125a   :  { %3171 = vtanh.f32 %v2224_v62  ;;  %v2263_v12 = vrot.slane %v2224_v62, 7  ;;  %v2365_v62 = vld [vmem:[#allocation7] sm:$0x1] }
0x125b   :  { %v2163_v9 = vpop.permute.xlu1 %2162 }
0x125c   :  { %v2167_v11 = vadd.f32 %v2163_v9, %v2147_v63  ;;  %v2311_v63 = vunpack.c.l.bf16 %v2309_v60  ;;  %v2366_v9 = vld [vmem:[#allocation7 + $0x4] sm:$0x1] }
0x125e   :  { %3173 = vtanh.f32 %v2167_v11  ;;  %v2247_v31 = vrot.slane %v2167_v11, 7 }
0x125f   :  { %v2218_v8 = vpop.permute.xlu1 %2217  ;;  %3175 = vtanh.f32 %v2166_v17 }
0x1260   :  { %v2223_v32 = vadd.f32 %v2218_v8, %v2203_v19  ;;  %v2248_v30 = vsel %vm734_vm7, %v2247_v31, %v2166_v17  ;;  %v2367_v31 = vunpack.c.l.bf16 %v2365_v62 }
0x1262   :  { %3177 = vtanh.f32 %v2223_v32  ;;  %v2264_v15 = vsel %vm716_vm6, %v2263_v12, %v2223_v32 }
0x1267   :  { %v3172_v34 = vpop.eup %3171 }
0x1268   :  { %2231 = vrot.lane.b32.xlu1 %v3172_v34, %s3217_s1 }
0x126b   :  { %v3174_v36 = vpop.eup %3173 }
0x126c   :  { %2174 = vrot.lane.b32.xlu0 %v3174_v36, %s3217_s1  ;;  %v3176_v39 = vpop.eup %3175 }
0x126f   :  { %v3178_v3 = vpop.eup %3177 }
0x1270   :  { %2229 = vrot.lane.b32.xlu1 %v3178_v3, %s3217_s1  ;;  %2172 = vrot.lane.b32.xlu0 %v3176_v39, %s3217_s1 }
0x12da   :  { %v2232_v35 = vpop.permute.xlu1 %2231 }
0x12db   :  { %v3680_v0 = vmul.f32 %v3164_v50, %v2232_v35 }
0x12dd   :  { %v2255_v44 = vrot.slane %v3680_v0, 7 }
0x12de   :  { %v2175_v43 = vpop.permute.xlu0 %2174 }
0x12df   :  { %v3682_v47 = vmul.f32 %v3168_v55, %v2175_v43 }
0x12e1   :  { %v2239_v2 = vrot.slane %v3682_v47, 7 }
0x12e2   :  { %v2230_v48 = vpop.permute.xlu1 %2229  ;;  %v2173_v4 = vpop.permute.xlu0 %2172 }
0x12e3   :  { %v3686_v54 = vmul.f32 %v3170_v56, %v2230_v48  ;;  %v3688_v40 = vmul.f32 %v3166_v49, %v2173_v4 }
0x12e5   :  { %v2256_v53 = vsel %vm716_vm6, %v2255_v44, %v3686_v54  ;;  %v2240_v57 = vsel %vm734_vm7, %v2239_v2, %v3688_v40  ;;  %vm1071_vm7 = vcmask 254977  }
0x12e6   :  { %2257 = vrot.lane.b32.xlu1 %v2256_v53, %s3218_s8  ;;  %2241 = vrot.lane.b32.xlu0 %v2240_v57, %s3218_s8  ;;  %vm3943_vm0 = vmand %vm1071_vm7, %vm1381_vm15 }
0x12ea   :  { %2265 = vrot.lane.b32.xlu1 %v2264_v15, %s3219_s9  ;;  %2249 = vrot.lane.b32.xlu0 %v2248_v30, %s3219_s9  ;;  %v2368_v15 = vunpack.c.l.bf16 %v2366_v9 }
0x1358   :  { %v2258_v50 = vpop.permute.xlu1 %2257  ;;  %v2242_v55 = vpop.permute.xlu0 %2241 }
0x1359   :  { %2260 = vst.msk [vmem:[#allocation4 - $0x1] sm:$0x6] %vm721_vm8, %v2258_v50 }
0x135a   :  { %2244 = vst.msk [vmem:[#allocation2 - $0x6] sm:$0xc0] %vm739_vm9, %v2242_v55 }
0x135c   :  { %v2266_v49 = vpop.permute.xlu1 %2265  ;;  %v2250_v56 = vpop.permute.xlu0 %2249 }
0x135d   :  { %2268 = vst.msk [vmem:[#allocation5 - $0x1] sm:$0x6] %vm721_vm8, %v2266_v49  ;;  %vm1072_vm8 = vsmask.f32 1280 }
0x135e   :  { %2252 = vst.msk [vmem:[#allocation3 - $0x6] sm:$0xc0] %vm739_vm9, %v2250_v56  ;;  %vm3797_vm9 = vmand %vm1071_vm7, %vm1072_vm8  ;;  %vm4173_vm8 = vcmask 261127  }
0x1360   :  { %v2369_v58 = vld [vmem:[#allocation4] sm:$0x3] }
0x1361   :  { %v2313_v1 = vld [vmem:[#allocation2] sm:$0x3]  ;;  %v2370_v59 = vpack.c.bf16 %v2369_v58, %v2369_v58 }
0x1362   :  { %v2314_v45 = vpack.c.bf16 %v2313_v1, %v2313_v1 }
0x1363   :  { %2943 = vmatmul.mubr.msk.bf16.vlgmr.msra.gmra.mxu1 %vm166_vm2, %v2370_v59 }
0x1364   :  { %2935 = vmatmul.mubr.msk.bf16.vlgmr.msra.gmra.mxu0 %vm166_vm2, %v2314_v45  ;;  %v2478_v49 = vld [vmem:[#allocation5] sm:$0x3]  ;;  %vm478_vm2 = vcmask 257027  }
0x1365   :  { %v2420_v53 = vld [vmem:[#allocation3] sm:$0x3]  ;;  %v2494_v56 = vrot.slane %v2478_v49, 1  ;;  %vm3771_vm6 = vmand %vm478_vm2, %vm479_vm4  ;;  %vm785_vm4 = vsmask.f32 3328 }
0x1366   :  { %v2436_v50 = vrot.slane %v2420_v53, 1  ;;  %v2437_v55 = vrot.slane %v2420_v53, 2  ;;  %vm3967_vm7 = vmand %vm478_vm2, %vm785_vm4 }
0x1423   :  { %v2408_v11 = vpop.f32.mrf.mxu1 }
0x1424   :  { %v2352_v7 = vpop.f32.mrf.mxu0  ;;  %v2415_v34 = vrot.slane %v2408_v11, 1  ;;  %v2418_v3 = vadd.f32 %v2408_v11, %v2367_v31 }
0x1425   :  { %v2359_v17 = vrot.slane %v2352_v7, 1  ;;  %v2360_v19 = vrot.slane %v2352_v7, 2  ;;  %v2944_v12 = vpop.f32.mrf.mxu1 }
0x1426   :  { %v2936_v8 = vpop.f32.mrf.mxu0  ;;  %v2419_v48 = vadd.f32 %v2415_v34, %v2368_v15  ;;  %v2732_v45 = vmul.f32 -1.442695, %v2418_v3 }
0x1427   :  { %v2363_v32 = vadd.f32 %v2359_v17, %v2311_v63  ;;  %v2364_v30 = vadd.f32 %v2360_v19, %v2312_v5  ;;  %v2411_v39 = vpop.f32.mrf.mxu1 }
0x1428   :  { %v2355_v36 = vpop.f32.mrf.mxu0  ;;  %v2733_v59 = vmul.f32 -1.442695, %v2419_v48 }
0x1429   :  { %3179 = vtanh.f32 %v2363_v32  ;;  %v2945_v43 = vpop.f32.mrf.mxu1  ;;  %v2730_v1 = vmul.f32 -1.442695, %v2363_v32  ;;  %v2731_v58 = vmul.f32 -1.442695, %v2364_v30 }
0x142a   :  { %3181 = vtanh.f32 %v2364_v30  ;;  %v2937_v35 = vpop.f32.mrf.mxu0  ;;  %v2739_v43 = vpack.c.bf16 %v3335_v33, %v3335_v33  ;;  %v2747_v33 = vpack.c.bf16 %v3446_v13, %v3446_v13 }
0x142b   :  { %3183 = vtanh.f32 %v2418_v3  ;;  %v2738_v35 = vpack.c.bf16 %v3338_v37, %v3338_v37  ;;  %v2746_v37 = vpack.c.bf16 %v3449_v16, %v3449_v16 }
0x142c   :  { %3185 = vtanh.f32 %v2419_v48  ;;  %v2740_v48 = vpack.c.bf16 %v3346_v42, %v3346_v42 }
0x142d   :  { %3187 = vpow2.f32 %v2730_v1 }
0x142e   :  { %3189 = vpow2.f32 %v2731_v58  ;;  %v458_v58 = vld [vmem:[%s4153_s4] sm:$0x1] }
0x142f   :  { %3191 = vpow2.f32 %v2732_v45 }
0x1430   :  { %3193 = vpow2.f32 %v2733_v59 }
0x1436   :  { %v3180_v4 = vpop.eup %3179 }
0x1437   :  { %v3182_v44 = vpop.eup %3181  ;;  %2448 = vrot.lane.b32.xlu0 %v3180_v4, %s3217_s1  ;;  %v2741_v4 = vpack.c.bf16 %v3340_v38, %v3340_v38 }
0x1438   :  { %2450 = vrot.lane.b32.xlu1 %v3182_v44, %s3217_s1  ;;  %v3184_v2 = vpop.eup %3183 }
0x1439   :  { %v3186_v57 = vpop.eup %3185 }
0x143a   :  { %v3188_v60 = vpop.eup %3187 }
0x143b   :  { %2505 = vrot.lane.b32.xlu0 %v3184_v2, %s3217_s1  ;;  %v3190_v61 = vpop.eup %3189  ;;  %v2427_v62 = vadd.f32 1.0, %v3188_v60 }
0x143c   :  { %2507 = vrot.lane.b32.xlu1 %v3186_v57, %s3217_s1  ;;  %v3192_v63 = vpop.eup %3191  ;;  %v2428_v5 = vadd.f32 1.0, %v3190_v61  ;;  %v461_v61 = vld [vmem:[%s4153_s4 + $0x4] sm:$0x1] }
0x143d   :  { %v3194_v7 = vpop.eup %3193  ;;  %3195 = vrcp.f32 %v2427_v62  ;;  %v2485_v9 = vadd.f32 1.0, %v3192_v63 }
0x143e   :  { %3197 = vrcp.f32 %v2428_v5  ;;  %v2486_v11 = vadd.f32 1.0, %v3194_v7 }
0x143f   :  { %2438 = vrot.lane.b32.xlu0 %v2436_v50, %s3218_s8  ;;  %3199 = vrcp.f32 %v2485_v9 }
0x1440   :  { %2440 = vrot.lane.b32.xlu1 %v2437_v55, %s3218_s8  ;;  %3201 = vrcp.f32 %v2486_v11 }
0x1443   :  { %2495 = vrot.lane.b32.xlu0 %v2478_v49, %s3218_s8 }
0x1444   :  { %2497 = vrot.lane.b32.xlu1 %v2494_v56, %s3218_s8 }
0x144a   :  { %v3712_v17 = vpop.eup %3195 }
0x144b   :  { %v3714_v31 = vpop.eup %3197 }
0x144c   :  { %v3719_v30 = vpop.eup %3199 }
0x144d   :  { %v3723_v36 = vpop.eup %3201 }
0x14a9   :  { %v2449_v19 = vpop.permute.xlu0 %2448 }
0x14aa   :  { %v2451_v8 = vpop.permute.xlu1 %2450  ;;  %v2454_v12 = vmul.f32 %v3712_v17, %v2449_v19  ;;  %v481_v19 = vld [vmem:[%s4154_s5] sm:$0x8] }
0x14ab   :  { %v2455_v32 = vmul.f32 %v3714_v31, %v2451_v8 }
0x14ac   :  { %2458 = vrot.lane.b32.xlu0 %v2454_v12, %s3218_s8 }
0x14ad   :  { %2460 = vrot.lane.b32.xlu1 %v2455_v32, %s3218_s8  ;;  %v2506_v15 = vpop.permute.xlu0 %2505  ;;  %v484_v32 = vld [vmem:[%s4154_s5 + $0x4] sm:$0x8] }
0x14ae   :  { %v2511_v34 = vmul.f32 %v3719_v30, %v2506_v15  ;;  %v2508_v39 = vpop.permute.xlu1 %2507 }
0x14af   :  { %v2512_v3 = vmul.f32 %v3723_v36, %v2508_v39 }
0x14b0   :  { %2515 = vrot.lane.b32.xlu0 %v2511_v34, %s3218_s8 }
0x14b1   :  { %2517 = vrot.lane.b32.xlu1 %v2512_v3, %s3218_s8  ;;  %v2439_v42 = vpop.permute.xlu0 %2438 }
0x14b2   :  { %v2441_v44 = vpop.permute.xlu1 %2440  ;;  %v2444_v16 = vmul.f32 %v3712_v17, %v2439_v42 }
0x14b3   :  { %v2445_v45 = vmul.f32 %v3714_v31, %v2441_v44 }
0x14b4   :  { %449 = vrot.lane.b32.xlu0 %v2738_v35, %s3218_s8  ;;  %v1074_v35 = vld [vmem:[%s4153_s4] sm:$0x2] }
0x14b5   :  { %451 = vrot.lane.b32.xlu1 %v2739_v43, %s3218_s8  ;;  %v2496_v2 = vpop.permute.xlu0 %2495 }
0x14b6   :  { %v2498_v53 = vpop.permute.xlu1 %2497  ;;  %v2501_v50 = vmul.f32 %v3719_v30, %v2496_v2 }
0x14b7   :  { %v2502_v49 = vmul.f32 %v3723_v36, %v2498_v53 }
0x14b8   :  { %472 = vrot.lane.b32.xlu0 %v2740_v48, %s3218_s8  ;;  %v1077_v48 = vld [vmem:[%s4153_s4 + $0x4] sm:$0x2] }
0x14b9   :  { %474 = vrot.lane.b32.xlu1 %v2741_v4, %s3218_s8 }
0x14bc   :  { %1065 = vrot.lane.b32.xlu0 %v2746_v37, %s3218_s8 }
0x14bd   :  { %1067 = vrot.lane.b32.xlu1 %v2747_v33, %s3218_s8 }
0x151e   :  { %v2459_v57 = vpop.permute.xlu0 %2458 }
0x151f   :  { %v2461_v38 = vpop.permute.xlu1 %2460  ;;  %v3758_v59 = vadd.f32 %v2459_v57, %v2444_v16  ;;  %v2755_v16 = vpack.c.bf16 %v3574_v41, %v3574_v41  ;;  %v2763_v41 = vpack.c.bf16 %v3682_v47, %v3682_v47  ;;  %v2743_v47 = vpack.c.bf16 %v3392_v21, %v3392_v21 }
0x1520   :  { %v3763_v63 = vadd.f32 %v2461_v38, %v2445_v45  ;;  %v2748_v38 = vpack.c.bf16 %v3456_v22, %v3456_v22  ;;  %v2756_v22 = vpack.c.bf16 %v3584_v52, %v3584_v52  ;;  %v2764_v52 = vpack.c.bf16 %v3686_v54, %v3686_v54 }
0x1521   :  { %v2744_v54 = vpack.c.bf16 %v3402_v29, %v3402_v29  ;;  %v2751_v21 = vpack.c.bf16 %v3510_v14, %v3510_v14  ;;  %v2752_v29 = vpack.c.bf16 %v3520_v27, %v3520_v27  ;;  %v2759_v14 = vpack.c.bf16 %v3628_v6, %v3628_v6 }
0x1522   :  { %v2516_v55 = vpop.permute.xlu0 %2515  ;;  %v2760_v27 = vpack.c.bf16 %v3638_v25, %v3638_v25 }
0x1523   :  { %v2521_v56 = vadd.f32 %v2516_v55, %v2501_v50  ;;  %v2518_v13 = vpop.permute.xlu1 %2517  ;;  %v2749_v50 = vpack.c.bf16 %v3454_v20, %v3454_v20  ;;  %v2754_v55 = vpack.c.bf16 %v3577_v46, %v3577_v46  ;;  %v2757_v20 = vpack.c.bf16 %v3582_v51, %v3582_v51 }
0x1524   :  { %v2522_v60 = vadd.f32 %v2518_v13, %v2502_v49  ;;  %v2762_v46 = vpack.c.bf16 %v3688_v40, %v3688_v40  ;;  %v2765_v51 = vpack.c.bf16 %v3680_v0, %v3680_v0  ;;  %v2742_v40 = vpack.c.bf16 %v3395_v24, %v3395_v24 }
0x1525   :  { %3203 = vtanh.f32 %v2521_v56  ;;  %v2745_v0 = vpack.c.bf16 %v3400_v28, %v3400_v28  ;;  %v2750_v24 = vpack.c.bf16 %v3513_v18, %v3513_v18  ;;  %v2753_v28 = vpack.c.bf16 %v3518_v26, %v3518_v26 }
0x1526   :  { %v450_v62 = vpop.permute.xlu0 %449  ;;  %3205 = vtanh.f32 %v2522_v60  ;;  %v2567_v5 = vrot.slane %v2522_v60, 7  ;;  %v2758_v18 = vpack.c.bf16 %v3631_v10, %v3631_v10  ;;  %v2761_v26 = vpack.c.bf16 %v3636_v23, %v3636_v23 }
0x1527   :  { %v459_v7 = vsel %vm3750_vm1, %v450_v62, %v458_v58  ;;  %v452_v9 = vpop.permute.xlu1 %451  ;;  %3207 = vtanh.f32 %v3758_v59  ;;  %v2548_v10 = vrot.slane %v3763_v63, 7 }
0x1528   :  { %460 = vst [vmem:[%s4153_s4] sm:$0x1] %v459_v7  ;;  %v462_v8 = vsel %vm3750_vm1, %v452_v9, %v461_v61  ;;  %v3782_v12 = vsel %vm402_vm3, %v2567_v5, %v2521_v56  ;;  %3209 = vtanh.f32 %v3763_v63  ;;  %v1100_v61 = vld [vmem:[%s4154_s5 + $0x4] sm:$0x4] }
0x1529   :  { %463 = vst [vmem:[%s4153_s4 + $0x4] sm:$0x1] %v462_v8 }
0x152a   :  { %v473_v15 = vpop.permute.xlu0 %472 }
0x152b   :  { %v482_v34 = vsel %vm3771_vm6, %v473_v15, %v481_v19  ;;  %v475_v39 = vpop.permute.xlu1 %474 }
0x152c   :  { %483 = vst [vmem:[%s4154_s5] sm:$0x8] %v482_v34  ;;  %v485_v43 = vsel %vm3771_vm6, %v475_v39, %v484_v32  ;;  %v1688_v32 = vld [vmem:[%s4153_s4 + $0x4] sm:$0x4] }
0x152d   :  { %486 = vst [vmem:[%s4154_s5 + $0x4] sm:$0x8] %v485_v43 }
0x152e   :  { %v1066_v4 = vpop.permute.xlu0 %1065 }
0x152f   :  { %v1075_v37 = vsel %vm3797_vm9, %v1066_v4, %v1074_v35  ;;  %v1068_v33 = vpop.permute.xlu1 %1067 }
0x1530   :  { %1076 = vst [vmem:[%s4153_s4] sm:$0x2] %v1075_v37  ;;  %v1078_v42 = vsel %vm3797_vm9, %v1068_v33, %v1077_v48  ;;  %v1705_v48 = vld [vmem:[%s4154_s5] sm:$0x2]  ;;  %v1708_v37 = vld [vmem:[%s4154_s5 + $0x4] sm:$0x2] }
0x1531   :  { %1079 = vst [vmem:[%s4153_s4 + $0x4] sm:$0x2] %v1078_v42 }
0x1532   :  { %v3204_v44 = vpop.eup %3203 }
0x1533   :  { %2527 = vrot.lane.b32.xlu0 %v3204_v44, %s3217_s1  ;;  %v3206_v2 = vpop.eup %3205 }
0x1534   :  { %2529 = vrot.lane.b32.xlu1 %v3206_v2, %s3217_s1  ;;  %v3208_v53 = vpop.eup %3207 }
0x1535   :  { %v3210_v57 = vpop.eup %3209 }
0x1537   :  { %2470 = vrot.lane.b32.xlu0 %v3208_v53, %s3217_s1 }
0x1538   :  { %2472 = vrot.lane.b32.xlu1 %v3210_v57, %s3217_s1  ;;  %v2283_v57 = vld [vmem:[%s4153_s4] sm:$0x8] }
0x153b   :  { %1088 = vrot.lane.b32.xlu0 %v2748_v38, %s3218_s8 }
0x153c   :  { %1090 = vrot.lane.b32.xlu1 %v2749_v50, %s3218_s8  ;;  %v2286_v50 = vld [vmem:[%s4153_s4 + $0x4] sm:$0x8] }
0x153f   :  { %1679 = vrot.lane.b32.xlu0 %v2754_v55, %s3218_s8 }
0x1540   :  { %1681 = vrot.lane.b32.xlu1 %v2755_v16, %s3218_s8 }
0x1543   :  { %1699 = vrot.lane.b32.xlu0 %v2756_v22, %s3218_s8 }
0x1544   :  { %1701 = vrot.lane.b32.xlu1 %v2757_v20, %s3218_s8  ;;  %v2303_v20 = vld [vmem:[%s4154_s5] sm:$0x1] }
0x1547   :  { %2277 = vrot.lane.b32.xlu0 %v2762_v46, %s3218_s8 }
0x1548   :  { %2279 = vrot.lane.b32.xlu1 %v2763_v41, %s3218_s8  ;;  %v2306_v41 = vld [vmem:[%s4154_s5 + $0x4] sm:$0x1] }
0x154b   :  { %2297 = vrot.lane.b32.xlu0 %v2764_v52, %s3218_s8 }
0x154c   :  { %2299 = vrot.lane.b32.xlu1 %v2765_v51, %s3218_s8 }
0x154f   :  { %757 = vrot.lane.b32.xlu0 %v2742_v40, %s3218_s8 }
0x1550   :  { %759 = vrot.lane.b32.xlu1 %v2743_v47, %s3218_s8 }
0x1553   :  { %779 = vrot.lane.b32.xlu0 %v2744_v54, %s3218_s8  ;;  %v765_v54 = vld [vmem:[%s4153_s4] sm:$0x1] }
0x1554   :  { %781 = vrot.lane.b32.xlu1 %v2745_v0, %s3218_s8 }
0x1557   :  { %1375 = vrot.lane.b32.xlu0 %v2750_v24, %s3218_s8 }
0x1558   :  { %1377 = vrot.lane.b32.xlu1 %v2751_v21, %s3218_s8  ;;  %v768_v21 = vld [vmem:[%s4153_s4 + $0x4] sm:$0x1] }
0x155b   :  { %1397 = vrot.lane.b32.xlu0 %v2752_v29, %s3218_s8 }
0x155c   :  { %1399 = vrot.lane.b32.xlu1 %v2753_v28, %s3218_s8 }
0x155f   :  { %1979 = vrot.lane.b32.xlu0 %v2758_v18, %s3218_s8  ;;  %v787_v18 = vld [vmem:[%s4154_s5] sm:$0x8] }
0x1560   :  { %1981 = vrot.lane.b32.xlu1 %v2759_v14, %s3218_s8 }
0x1563   :  { %1999 = vrot.lane.b32.xlu0 %v2760_v27, %s3218_s8 }
0x1564   :  { %2001 = vrot.lane.b32.xlu1 %v2761_v26, %s3218_s8  ;;  %v790_v26 = vld [vmem:[%s4154_s5 + $0x4] sm:$0x8] }
0x1567   :  { %2549 = vrot.lane.b32.xlu0 %v3758_v59, %s3219_s9 }
0x1568   :  { %2551 = vrot.lane.b32.xlu1 %v2548_v10, %s3219_s9 }
0x15a5   :  { %v2528_v6 = vpop.permute.xlu0 %2527 }
0x15a6   :  { %v2533_v49 = vmul.f32 %v3719_v30, %v2528_v6  ;;  %v2530_v25 = vpop.permute.xlu1 %2529  ;;  %v1097_v30 = vld [vmem:[%s4154_s5] sm:$0x4] }
0x15a7   :  { %v2534_v56 = vmul.f32 %v3723_v36, %v2530_v25 }
0x15a8   :  { %v2768_v13 = vpack.c.bf16 %v2533_v49, %v2533_v49 }
0x15a9   :  { %v2471_v23 = vpop.permute.xlu0 %2470  ;;  %v2769_v58 = vpack.c.bf16 %v2534_v56, %v2534_v56  ;;  %v2559_v8 = vrot.slane %v2534_v56, 7 }
0x15aa   :  { %2601 = vrot.lane.b32.xlu0 %v2768_v13, %s3218_s8  ;;  %v2473_v45 = vpop.permute.xlu1 %2472  ;;  %v2476_v36 = vmul.f32 %v3712_v17, %v2471_v23  ;;  %v1386_v13 = vld [vmem:[%s4153_s4 + $0x4] sm:$0x2] }
0x15ab   :  { %v2477_v59 = vmul.f32 %v3714_v31, %v2473_v45  ;;  %2603 = vrot.lane.b32.xlu1 %v2769_v58, %s3218_s8  ;;  %v1685_v31 = vld [vmem:[%s4153_s4] sm:$0x4]  ;;  %v2560_v42 = vsel %vm402_vm3, %v2559_v8, %v2533_v49  ;;  %vm763_vm3 = vsmask.f32 7938  ;;  %v1383_v49 = vld [vmem:[%s4153_s4] sm:$0x2] }
0x15ac   :  { %v2766_v9 = vpack.c.bf16 %v2476_v36, %v2476_v36  ;;  %vm3990_vm2 = vmand %vm428_vm5, %vm763_vm3 }
0x15ad   :  { %v1089_v62 = vpop.permute.xlu0 %1088  ;;  %v2767_v63 = vpack.c.bf16 %v2477_v59, %v2477_v59  ;;  %v2537_v34 = vrot.slane %v2477_v59, 7 }
0x15ae   :  { %v1098_v5 = vsel %vm3900_vm12, %v1089_v62, %v1097_v30  ;;  %2538 = vrot.lane.b32.xlu0 %v2476_v36, %s3218_s8  ;;  %v1091_v7 = vpop.permute.xlu1 %1090 }
0x15af   :  { %1099 = vst [vmem:[%s4154_s5] sm:$0x4] %v1098_v5  ;;  %v1101_v19 = vsel %vm3900_vm12, %v1091_v7, %v1100_v61  ;;  %2583 = vrot.lane.b32.xlu1 %v2767_v63, %s3218_s8 }
0x15b0   :  { %1102 = vst [vmem:[%s4154_s5 + $0x4] sm:$0x4] %v1101_v19 }
0x15b1   :  { %v1680_v15 = vpop.permute.xlu0 %1679 }
0x15b2   :  { %v1686_v39 = vsel %vm3920_vm14, %v1680_v15, %v1685_v31  ;;  %2581 = vrot.lane.b32.xlu0 %v2766_v9, %s3218_s8  ;;  %v1682_v35 = vpop.permute.xlu1 %1681 }
0x15b3   :  { %1687 = vst [vmem:[%s4153_s4] sm:$0x4] %v1686_v39  ;;  %v1689_v4 = vsel %vm3920_vm14, %v1682_v35, %v1688_v32  ;;  %2540 = vrot.lane.b32.xlu1 %v2537_v34, %s3218_s8 }
0x15b4   :  { %1690 = vst [vmem:[%s4153_s4 + $0x4] sm:$0x4] %v1689_v4 }
0x15b5   :  { %v1700_v33 = vpop.permute.xlu0 %1699 }
0x15b6   :  { %v1706_v44 = vsel %vm3943_vm0, %v1700_v33, %v1705_v48  ;;  %2561 = vrot.lane.b32.xlu0 %v2560_v42, %s3218_s8  ;;  %v1702_v2 = vpop.permute.xlu1 %1701  ;;  %v1405_v45 = vld [vmem:[%s4154_s5] sm:$0x4] }
0x15b7   :  { %1707 = vst [vmem:[%s4154_s5] sm:$0x2] %v1706_v44  ;;  %v1709_v38 = vsel %vm3943_vm0, %v1702_v2, %v1708_v37  ;;  %2569 = vrot.lane.b32.xlu1 %v3782_v12, %s3219_s9  ;;  %v1408_v36 = vld [vmem:[%s4154_s5 + $0x4] sm:$0x4] }
0x15b8   :  { %1710 = vst [vmem:[%s4154_s5 + $0x4] sm:$0x2] %v1709_v38 }
0x15b9   :  { %v2278_v55 = vpop.permute.xlu0 %2277 }
0x15ba   :  { %v2284_v16 = vsel %vm3967_vm7, %v2278_v55, %v2283_v57  ;;  %v2280_v22 = vpop.permute.xlu1 %2279  ;;  %v1985_v63 = vld [vmem:[%s4153_s4] sm:$0x4] }
0x15bb   :  { %2285 = vst [vmem:[%s4153_s4] sm:$0x8] %v2284_v16  ;;  %v2287_v46 = vsel %vm3967_vm7, %v2280_v22, %v2286_v50  ;;  %v1988_v31 = vld [vmem:[%s4153_s4 + $0x4] sm:$0x4] }
0x15bc   :  { %2288 = vst [vmem:[%s4153_s4 + $0x4] sm:$0x8] %v2287_v46 }
0x15bd   :  { %v2298_v52 = vpop.permute.xlu0 %2297 }
0x15be   :  { %v2304_v51 = vsel %vm3990_vm2, %v2298_v52, %v2303_v20  ;;  %v2300_v40 = vpop.permute.xlu1 %2299  ;;  %v2005_v19 = vld [vmem:[%s4154_s5] sm:$0x2] }
0x15bf   :  { %2305 = vst [vmem:[%s4154_s5] sm:$0x1] %v2304_v51  ;;  %v2307_v47 = vsel %vm3990_vm2, %v2300_v40, %v2306_v41  ;;  %v2008_v15 = vld [vmem:[%s4154_s5 + $0x4] sm:$0x2] }
0x15c0   :  { %2308 = vst [vmem:[%s4154_s5 + $0x4] sm:$0x1] %v2307_v47 }
0x15c1   :  { %v758_v0 = vpop.permute.xlu0 %757 }
0x15c2   :  { %v766_v24 = vsel %vm3990_vm2, %v758_v0, %v765_v54  ;;  %v760_v29 = vpop.permute.xlu1 %759  ;;  %v2587_v1 = vld [vmem:[%s4153_s4] sm:$0x8] }
0x15c3   :  { %767 = vst [vmem:[%s4153_s4] sm:$0x1] %v766_v24  ;;  %v769_v28 = vsel %vm3990_vm2, %v760_v29, %v768_v21  ;;  %v2590_v44 = vld [vmem:[%s4153_s4 + $0x4] sm:$0x8] }
0x15c4   :  { %770 = vst [vmem:[%s4153_s4 + $0x4] sm:$0x1] %v769_v28 }
0x15c5   :  { %v780_v14 = vpop.permute.xlu0 %779 }
0x15c6   :  { %v788_v27 = vsel %vm3967_vm7, %v780_v14, %v787_v18  ;;  %v782_v10 = vpop.permute.xlu1 %781  ;;  %v2607_v43 = vld [vmem:[%s4154_s5] sm:$0x1] }
0x15c7   :  { %789 = vst [vmem:[%s4154_s5] sm:$0x8] %v788_v27  ;;  %v791_v6 = vsel %vm3967_vm7, %v782_v10, %v790_v26  ;;  %v2610_v3 = vld [vmem:[%s4154_s5 + $0x4] sm:$0x1] }
0x15c8   :  { %792 = vst [vmem:[%s4154_s5 + $0x4] sm:$0x8] %v791_v6 }
0x15c9   :  { %v1376_v25 = vpop.permute.xlu0 %1375 }
0x15ca   :  { %v1384_v56 = vsel %vm3943_vm0, %v1376_v25, %v1383_v49  ;;  %v1378_v23 = vpop.permute.xlu1 %1377 }
0x15cb   :  { %1385 = vst [vmem:[%s4153_s4] sm:$0x2] %v1384_v56  ;;  %v1387_v58 = vsel %vm3943_vm0, %v1378_v23, %v1386_v13 }
0x15cc   :  { %1388 = vst [vmem:[%s4153_s4 + $0x4] sm:$0x2] %v1387_v58 }
0x15cd   :  { %v1398_v30 = vpop.permute.xlu0 %1397 }
0x15ce   :  { %v1406_v59 = vsel %vm3920_vm14, %v1398_v30, %v1405_v45  ;;  %v1400_v61 = vpop.permute.xlu1 %1399 }
0x15cf   :  { %1407 = vst [vmem:[%s4154_s5] sm:$0x4] %v1406_v59  ;;  %v1409_v62 = vsel %vm3920_vm14, %v1400_v61, %v1408_v36 }
0x15d0   :  { %1410 = vst [vmem:[%s4154_s5 + $0x4] sm:$0x4] %v1409_v62 }
0x15d1   :  { %v1980_v5 = vpop.permute.xlu0 %1979 }
0x15d2   :  { %v1986_v7 = vsel %vm3900_vm12, %v1980_v5, %v1985_v63  ;;  %v1982_v9 = vpop.permute.xlu1 %1981 }
0x15d3   :  { %1987 = vst [vmem:[%s4153_s4] sm:$0x4] %v1986_v7  ;;  %v1989_v17 = vsel %vm3900_vm12, %v1982_v9, %v1988_v31 }
0x15d4   :  { %1990 = vst [vmem:[%s4153_s4 + $0x4] sm:$0x4] %v1989_v17 }
0x15d5   :  { %v2000_v8 = vpop.permute.xlu0 %1999 }
0x15d6   :  { %v2006_v32 = vsel %vm3797_vm9, %v2000_v8, %v2005_v19  ;;  %v2002_v34 = vpop.permute.xlu1 %2001 }
0x15d7   :  { %2007 = vst [vmem:[%s4154_s5] sm:$0x2] %v2006_v32  ;;  %v2009_v60 = vsel %vm3797_vm9, %v2002_v34, %v2008_v15  ;;  %vm4174_vm9 = vmmov %vm4173_vm8 }
0x15d8   :  { %2010 = vst [vmem:[%s4154_s5 + $0x4] sm:$0x2] %v2009_v60 }
0x15d9   :  { %v2550_v39 = vpop.permute.xlu0 %2549 }
0x15da   :  { %2555 = vst.msk [vmem:[#allocation3 - $0x7] sm:$0x80] %vm4173_vm8, %v2550_v39  ;;  %v2552_v35 = vpop.permute.xlu1 %2551 }
0x15db   :  { %2556 = vst.msk [vmem:[#allocation3 + $0x1] sm:$0x1] %vm428_vm5, %v2552_v35 }
0x161c   :  { %v2602_v48 = vpop.permute.xlu0 %2601 }
0x161d   :  { %v2608_v4 = vsel %vm3750_vm1, %v2602_v48, %v2607_v43  ;;  %v2604_v37 = vpop.permute.xlu1 %2603 }
0x161e   :  { %2609 = vst [vmem:[%s4154_s5] sm:$0x1] %v2608_v4  ;;  %v2611_v33 = vsel %vm3750_vm1, %v2604_v37, %v2610_v3  ;;  %vm4175_vm1 = vcmask 254976  }
0x161f   :  { %2612 = vst [vmem:[%s4154_s5 + $0x4] sm:$0x1] %v2611_v33  ;;  %vm4176_vm10 = vmmov %vm4175_vm1 }
0x1620   :  { %v2539_v42 = vpop.permute.xlu0 %2538 }
0x1621   :  { %2544 = vst.msk [vmem:[#allocation2 - $0x7] sm:$0x80] %vm4174_vm9, %v2539_v42  ;;  %v2584_v2 = vpop.permute.xlu1 %2583 }
0x1622   :  { %v2591_v53 = vsel %vm3771_vm6, %v2584_v2, %v2590_v44 }
0x1623   :  { %2592 = vst [vmem:[%s4153_s4 + $0x4] sm:$0x8] %v2591_v53 }
0x1624   :  { %v2582_v57 = vpop.permute.xlu0 %2581 }
0x1625   :  { %v2588_v38 = vsel %vm3771_vm6, %v2582_v57, %v2587_v1  ;;  %v2541_v50 = vpop.permute.xlu1 %2540 }
0x1626   :  { %2589 = vst [vmem:[%s4153_s4] sm:$0x8] %v2588_v38  ;;  %2545 = vst.msk [vmem:[#allocation2 + $0x1] sm:$0x1] %vm428_vm5, %v2541_v50 }
0x1628   :  { %v2562_v55 = vpop.permute.xlu0 %2561 }
0x1629   :  { %2564 = vst.msk [vmem:[#allocation4] sm:$0x3] %vm4175_vm1, %v2562_v55  ;;  %v2570_v16 = vpop.permute.xlu1 %2569 }
0x162a   :  { %2572 = vst.msk [vmem:[#allocation5] sm:$0x3] %vm4176_vm10, %v2570_v16 }

</bundles_post_ra>
